<compile_context>
chip_gen: v5e
topology: v5e:2x2
jax: 0.10.0
libtpu: 0.0.40
codegen_flags: <defaults>
</compile_context>

<pallas_src>
import functools

import numpy as np
import jax
import jax.numpy as jnp
from jax.experimental import pallas as pl
from jax.experimental.pallas import tpu as pltpu


# ----------------------------------------------------------------------------
# Pallas kernel: out = act((A @ W) + bias), bias per output column.
# A and W are bf16 (halves HBM traffic, native MXU path); accumulation and the
# epilogue math are f32; the output dtype is configurable (bf16 between
# layers, f32 for the final conv).
# ----------------------------------------------------------------------------
def _matmul_kernel(a_ref, w_ref, b_ref, o_ref, acc_ref, *, act):
    k = pl.program_id(2)

    @pl.when(k == 0)
    def _():
        acc_ref[...] = jnp.zeros_like(acc_ref)

    acc_ref[...] += jnp.dot(a_ref[...], w_ref[...],
                            preferred_element_type=jnp.float32)

    @pl.when(k == pl.num_programs(2) - 1)
    def _():
        y = acc_ref[...] + b_ref[...]
        if act:  # LeakyReLU, PyTorch default negative_slope = 0.01
            y = jnp.where(y >= 0, y, 0.01 * y)
        o_ref[...] = y.astype(o_ref.dtype)


def _round_up(x, m):
    return ((x + m - 1) // m) * m


def _choose_kn(K, N):
    """Tile / padded sizes that depend only on the weight shape (static at init)."""
    if N >= 512:
        tn = 512          # wide N tiles -> fewer grid steps on the big layers
    elif N >= 256:
        tn = 256
    else:
        tn = 128
    Np = _round_up(N, tn)

    Kp = _round_up(K, 16)                 # bf16 sublane packing
    max_k = 8192                          # single K step up to ~8 MiB bf16 tile
    if Kp > max_k:
        n_steps = -(-Kp // max_k)
        tk = _round_up(-(-Kp // n_steps), 128)   # lane-aligned, balanced split
        Kp = tk * n_steps
    else:
        tk = Kp                           # single K step (block == full dim)
    return tk, tn, Kp, Np


def _choose_m(M):
    if M <= 256:
        tm = _round_up(max(M, 1), 16)     # single M block, bf16-friendly rows
    else:
        tm = 256                          # >=2 parallel M blocks (megacore)
    return tm, _round_up(M, tm)


@functools.lru_cache(maxsize=None)
def _build_matmul(Mp, Kp, Np, tm, tk, tn, act, out_dtype_name):
    grid = (Mp // tm, Np // tn, Kp // tk)
    out_dtype = jnp.dtype(out_dtype_name)
    return pl.pallas_call(
        functools.partial(_matmul_kernel, act=act),
        out_shape=jax.ShapeDtypeStruct((Mp, Np), out_dtype),
        grid_spec=pltpu.PrefetchScalarGridSpec(
            num_scalar_prefetch=0,
            grid=grid,
            in_specs=[
                pl.BlockSpec((tm, tk), lambda i, j, k: (i, k)),
                pl.BlockSpec((tk, tn), lambda i, j, k: (k, j)),
                pl.BlockSpec((1, tn), lambda i, j, k: (0, j)),
            ],
            out_specs=pl.BlockSpec((tm, tn), lambda i, j, k: (i, j)),
            scratch_shapes=[pltpu.VMEM((tm, tn), jnp.float32)],
        ),
        compiler_params=pltpu.CompilerParams(
            dimension_semantics=("parallel", "parallel", "arbitrary"),
            vmem_limit_bytes=32 * 1024 * 1024),
    )


def _pad2d(x, rows, cols):
    r, c = x.shape
    if r == rows and c == cols:
        return x
    return jnp.pad(x, ((0, rows - r), (0, cols - c)))


# ----------------------------------------------------------------------------
# Pre-packed conv weights (padded, bf16, BN-folded) built once at init.
# ----------------------------------------------------------------------------
def pack_weight(w2d, bias):
    """w2d: (K, N) f32 with any BN scale already folded in; bias: (N,) f32."""
    K, N = w2d.shape
    tk, tn, Kp, Np = _choose_kn(K, N)
    w_p = _pad2d(w2d.astype(jnp.bfloat16), Kp, Np)
    b_p = jnp.pad(bias.astype(jnp.float32)[None, :], ((0, 0), (0, Np - N)))
    return dict(w=w_p, b=b_p, K=K, N=N, Kp=Kp, Np=Np, tk=tk, tn=tn)


def apply_packed(a, pw, act=False, out_dtype=jnp.bfloat16):
    """a: (M, K) bf16 activation matrix -> (M, N) with fused bias (+LeakyReLU)."""
    M, K = a.shape
    assert K == pw["K"], (K, pw["K"])
    tm, Mp = _choose_m(M)
    a_p = _pad2d(a.astype(jnp.bfloat16), Mp, pw["Kp"])
    fn = _build_matmul(Mp, pw["Kp"], pw["Np"], tm, pw["tk"], pw["tn"],
                       act, jnp.dtype(out_dtype).name)
    out = fn(a_p, pw["w"], pw["b"])
    return out[:M, :pw["N"]]


# ----------------------------------------------------------------------------
# Conv / upsample helpers (im2col & reshapes are glue; matmuls run in Pallas).
# ----------------------------------------------------------------------------
def _im2col_3x3(x):  # x: (N,H,W,C) bf16 -> (N,H,W,9*C), zero pad 1 (same conv)
    n, h, w, c = x.shape
    xp = jnp.pad(x, ((0, 0), (1, 1), (1, 1), (0, 0)))
    patches = [xp[:, dy:dy + h, dx:dx + w, :] for dy in range(3) for dx in range(3)]
    return jnp.concatenate(patches, axis=-1)
    # TODO(synk): the 9 taps could be accumulated inside the kernel's K loop
    # (no im2col materialization at all) via per-tap shifted windows.


def conv1x1(x, pw, act=False, out_dtype=jnp.bfloat16):
    n, h, wd, c = x.shape
    out = apply_packed(x.reshape(n * h * wd, c), pw, act, out_dtype)
    return out.reshape(n, h, wd, -1)


def conv3x3(x, pw, act=False, out_dtype=jnp.bfloat16):
    n, h, wd, c = x.shape
    cols = _im2col_3x3(x).reshape(n * h * wd, 9 * c)
    out = apply_packed(cols, pw, act, out_dtype)
    return out.reshape(n, h, wd, -1)


@functools.lru_cache(maxsize=None)
def _interp_indices(n_out, n_in):
    """1-D bilinear align_corners=True gather indices + fractions (host numpy)."""
    if n_in == 1 or n_out == 1:
        i0 = np.zeros((n_out,), np.int32)
        return i0, i0, np.zeros((n_out,), np.float32)
    pos = np.arange(n_out, dtype=np.float64) * (n_in - 1) / (n_out - 1)
    i0 = np.clip(np.floor(pos), 0, n_in - 1).astype(np.int32)
    i1 = np.minimum(i0 + 1, n_in - 1).astype(np.int32)
    frac = (pos - i0).astype(np.float32)
    return i0, i1, frac


def upsample_bilinear_ac(x, h_out, w_out):
    # Separable bilinear(align_corners=True) as a static gather + lerp in jnp.
    # (Per perf review: near-zero FLOPs — not worth ~190 Pallas grid steps.)
    n, h, w, c = x.shape
    dt = x.dtype
    if h != h_out:
        i0, i1, fr = _interp_indices(h_out, h)
        x0 = jnp.take(x, jnp.asarray(i0), axis=1).astype(jnp.float32)
        x1 = jnp.take(x, jnp.asarray(i1), axis=1).astype(jnp.float32)
        fr = jnp.asarray(fr)[None, :, None, None]
        x = (x0 + (x1 - x0) * fr).astype(dt)
    if w != w_out:
        i0, i1, fr = _interp_indices(w_out, w)
        x0 = jnp.take(x, jnp.asarray(i0), axis=2).astype(jnp.float32)
        x1 = jnp.take(x, jnp.asarray(i1), axis=2).astype(jnp.float32)
        fr = jnp.asarray(fr)[None, None, :, None]
        x = (x0 + (x1 - x0) * fr).astype(dt)
    return x


# ----------------------------------------------------------------------------
# Parameter init (deterministic, synthetic) + BN folding into the weights.
# ----------------------------------------------------------------------------
def _init_conv(key, kh, kw, cin, cout):
    k1, k2 = jax.random.split(key)
    fan_in = kh * kw * cin
    w = jax.random.normal(k1, (kh, kw, cin, cout), jnp.float32) / jnp.sqrt(fan_in)
    b = 0.01 * jax.random.normal(k2, (cout,), jnp.float32)
    return w, b


def _init_bn(key, c):
    k1, k2 = jax.random.split(key)
    gamma = 1.0 + 0.1 * jax.random.normal(k1, (c,), jnp.float32)
    beta = 0.1 * jax.random.normal(k2, (c,), jnp.float32)
    mean = jnp.zeros((c,), jnp.float32)   # running stats (eval mode)
    var = jnp.ones((c,), jnp.float32)
    return gamma, beta, mean, var


def _fold_bn(conv_b, gamma, beta, mean, var, eps=1e-5):
    s = gamma / jnp.sqrt(var + eps)
    b = (conv_b - mean) * s + beta
    return s, b


def init_decoder(key, num_classes=4):
    keys = jax.random.split(key, 8)
    params = {}

    # conv2: 1x1, no BN, no activation
    w, b = _init_conv(keys[0], 1, 1, 2048, 2048)
    params["conv2"] = pack_weight(w.reshape(2048, 2048), b)

    def init_up(k, cin, cout):
        k1, k2, k3, k4 = jax.random.split(k, 4)
        w1, cb1 = _init_conv(k1, 3, 3, cin, cout)
        s1, b1 = _fold_bn(cb1, *_init_bn(k2, cout))
        w2, cb2 = _init_conv(k3, 3, 3, cout, cout)
        s2, b2 = _fold_bn(cb2, *_init_bn(k4, cout))
        pw1 = pack_weight((w1 * s1).reshape(9 * cin, cout), b1)   # BN scale folded
        pw2 = pack_weight((w2 * s2).reshape(9 * cout, cout), b2)
        return (pw1, pw2)

    params["up1"] = init_up(keys[1], 2048 + 176, 1024)
    params["up2"] = init_up(keys[2], 1024 + 64, 512)
    params["up3"] = init_up(keys[3], 512 + 40, 256)
    params["up4"] = init_up(keys[4], 256 + 24, 128)

    # conv3: 3x3, no BN, no activation
    w, b = _init_conv(keys[5], 3, 3, 128, num_classes)
    params["conv3"] = pack_weight(w.reshape(9 * 128, num_classes), b)
    return params


# ----------------------------------------------------------------------------
# Decoder forward (mirrors the PyTorch module).
# ----------------------------------------------------------------------------
def _upsample_bn_block(block_params, x, skip):
    _, hs, ws, _ = skip.shape
    up = upsample_bilinear_ac(x, hs, ws)
    f = jnp.concatenate([up, skip], axis=-1)        # bf16 concat
    pw1, pw2 = block_params
    h = conv3x3(f, pw1, act=True)   # Conv -> BN -> LeakyReLU (folded), bf16 out
    h = conv3x3(h, pw2, act=True)   # Conv -> BN -> LeakyReLU (folded), bf16 out
    return h


def decoder_forward(params, features):
    # features are NCHW (PyTorch); convert to NHWC bf16 internally.
    x_block0, x_block1, x_block2, x_block3, x_block4 = (
        features[4], features[5], features[6], features[8], features[11])
    to_nhwc = lambda t: jnp.transpose(t, (0, 2, 3, 1)).astype(jnp.bfloat16)
    b0, b1, b2, b3, b4 = map(to_nhwc, (x_block0, x_block1, x_block2, x_block3, x_block4))

    x_d0 = conv1x1(b4, params["conv2"], act=False)
    x_d1 = _upsample_bn_block(params["up1"], x_d0, b3)
    x_d2 = _upsample_bn_block(params["up2"], x_d1, b2)
    x_d3 = _upsample_bn_block(params["up3"], x_d2, b1)
    x_d4 = _upsample_bn_block(params["up4"], x_d3, b0)
    out = conv3x3(x_d4, params["conv3"], act=False, out_dtype=jnp.float32)
    return jnp.transpose(out, (0, 3, 1, 2))  # back to NCHW, f32


# ----------------------------------------------------------------------------
if __name__ == "__main__":
    key = jax.random.PRNGKey(0)
    k_feat, k_par = jax.random.split(key)
    ks = jax.random.split(k_feat, 5)

    nb = 1
    # Small spatial sizes consistent with an EfficientNet-style feature pyramid.
    x_block4 = jax.random.normal(ks[0], (nb, 2048, 2, 2), jnp.float32)   # features[11]
    x_block3 = jax.random.normal(ks[1], (nb, 176, 4, 4), jnp.float32)    # features[8]
    x_block2 = jax.random.normal(ks[2], (nb, 64, 8, 8), jnp.float32)     # features[6]
    x_block1 = jax.random.normal(ks[3], (nb, 40, 16, 16), jnp.float32)   # features[5]
    x_block0 = jax.random.normal(ks[4], (nb, 24, 32, 32), jnp.float32)   # features[4]

    features = [None] * 12
    features[4] = x_block0
    features[5] = x_block1
    features[6] = x_block2
    features[8] = x_block3
    features[11] = x_block4

    params = init_decoder(k_par, num_classes=4)
    out = decoder_forward(params, features)
    out = jax.block_until_ready(out)
    assert out.shape == (nb, 4, 32, 32), out.shape
    assert out.dtype == jnp.float32
    assert bool(jnp.all(jnp.isfinite(out)))
    print("KERNEL_OK")
</pallas_src>

<mosaic_0001>
module attributes {stable_mosaic.version = 11 : i64} {
  func.func @_matmul_kernel(%arg0: i32, %arg1: i32, %arg2: i32, %arg3: memref<16x2048xbf16, #tpu.memory_space<vmem>>, %arg4: memref<2048x512xbf16, #tpu.memory_space<vmem>>, %arg5: memref<1x512xf32, #tpu.memory_space<vmem>>, %arg6: memref<16x512xbf16, #tpu.memory_space<vmem>>, %arg7: memref<16x512xf32, #tpu.memory_space<vmem>>) attributes {dimension_semantics = [#tpu.dimension_semantics<parallel>, #tpu.dimension_semantics<parallel>, #tpu.dimension_semantics<arbitrary>], iteration_bounds = array<i64: 1, 4, 1>, scalar_prefetch = 0 : i64, scratch_operands = 1 : i64, tpu.core_type = #tpu.core_type<tc>, window_params = [{transform_indices = @transform_0, window_bounds = array<i64: 16, 2048>}, {transform_indices = @transform_1, window_bounds = array<i64: 2048, 512>}, {transform_indices = @transform_2, window_bounds = array<i64: 1, 512>}, {transform_indices = @transform_3, window_bounds = array<i64: 16, 512>}]} {
    %c0_i32 = arith.constant 0 : i32
    %0 = arith.cmpi eq, %arg2, %c0_i32 : i32
    %1 = arith.extui %0 : i1 to i32
    %c0_i32_0 = arith.constant 0 : i32
    %2 = arith.cmpi ne, %1, %c0_i32_0 : i32
    scf.if %2 {
      %cst_10 = arith.constant 0.000000e+00 : f32
      %12 = vector.broadcast %cst_10 : f32 to vector<16x512xf32>
      %c0_11 = arith.constant 0 : index
      %c0_12 = arith.constant 0 : index
      %13 = vector.load %arg7[%c0_11, %c0_12] : memref<16x512xf32, #tpu.memory_space<vmem>>, vector<16x512xf32>
      tpu.vector_store %arg7[%c0_11, %c0_12], %12 {strides = array<i32>} : memref<16x512xf32, #tpu.memory_space<vmem>>, vector<16x512xf32>,
    } else {
    }
    %c0 = arith.constant 0 : index
    %c0_1 = arith.constant 0 : index
    %3 = vector.load %arg7[%c0, %c0_1] : memref<16x512xf32, #tpu.memory_space<vmem>>, vector<16x512xf32>
    %c0_2 = arith.constant 0 : index
    %c0_3 = arith.constant 0 : index
    %4 = vector.load %arg3[%c0_2, %c0_3] : memref<16x2048xbf16, #tpu.memory_space<vmem>>, vector<16x2048xbf16>
    %c0_4 = arith.constant 0 : index
    %c0_5 = arith.constant 0 : index
    %5 = vector.load %arg4[%c0_4, %c0_5] : memref<2048x512xbf16, #tpu.memory_space<vmem>>, vector<2048x512xbf16>
    %cst = arith.constant dense<0.000000e+00> : vector<16x512xf32>
    %6 = tpu.matmul %4, %5, %cst {dimension_numbers = #tpu.dot_dimension_numbers<[1], [0], [0], [1], [0, 0, 1, 1], [], []>} : vector<16x2048xbf16>, vector<2048x512xbf16>, vector<16x512xf32> -> vector<16x512xf32>
    %7 = arith.addf %3, %6 : vector<16x512xf32>
    %c0_6 = arith.constant 0 : index
    %c0_7 = arith.constant 0 : index
    %8 = vector.load %arg7[%c0_6, %c0_7] : memref<16x512xf32, #tpu.memory_space<vmem>>, vector<16x512xf32>
    tpu.vector_store %arg7[%c0_6, %c0_7], %7 {strides = array<i32>} : memref<16x512xf32, #tpu.memory_space<vmem>>, vector<16x512xf32>,
    %c0_i32_8 = arith.constant 0 : i32
    %9 = arith.cmpi eq, %arg2, %c0_i32_8 : i32
    %10 = arith.extui %9 : i1 to i32
    %c0_i32_9 = arith.constant 0 : i32
    %11 = arith.cmpi ne, %10, %c0_i32_9 : i32
    scf.if %11 {
      %c0_10 = arith.constant 0 : index
      %c0_11 = arith.constant 0 : index
      %12 = vector.load %arg7[%c0_10, %c0_11] : memref<16x512xf32, #tpu.memory_space<vmem>>, vector<16x512xf32>
      %c0_12 = arith.constant 0 : index
      %c0_13 = arith.constant 0 : index
      %13 = vector.load %arg5[%c0_12, %c0_13] : memref<1x512xf32, #tpu.memory_space<vmem>>, vector<1x512xf32>
      %14 = vector.broadcast %13 : vector<1x512xf32> to vector<16x512xf32>
      %15 = arith.addf %12, %14 : vector<16x512xf32>
      %16 = arith.truncf %15 : vector<16x512xf32> to vector<16x512xbf16>
      %c0_14 = arith.constant 0 : index
      %c0_15 = arith.constant 0 : index
      %17 = vector.load %arg6[%c0_14, %c0_15] : memref<16x512xbf16, #tpu.memory_space<vmem>>, vector<16x512xbf16>
      tpu.vector_store %arg6[%c0_14, %c0_15], %16 {strides = array<i32>} : memref<16x512xbf16, #tpu.memory_space<vmem>>, vector<16x512xbf16>,
    } else {
    }
    return
  }
  func.func @transform_0(%arg0: i32, %arg1: i32, %arg2: i32) -> (i32, i32) {
    %c0_i32 = arith.constant 0 : i32
    return %arg0, %arg2 : i32, i32
  }
  func.func @transform_1(%arg0: i32, %arg1: i32, %arg2: i32) -> (i32, i32) {
    %c0_i32 = arith.constant 0 : i32
    return %arg2, %arg1 : i32, i32
  }
  func.func @transform_2(%arg0: i32, %arg1: i32, %arg2: i32) -> (i32, i32) {
    %c0_i32 = arith.constant 0 : i32
    %c0_i32_0 = arith.constant 0 : i32
    return %c0_i32, %arg1 : i32, i32
  }
  func.func @transform_3(%arg0: i32, %arg1: i32, %arg2: i32) -> (i32, i32) {
    %c0_i32 = arith.constant 0 : i32
    return %arg0, %arg1 : i32, i32
  }
}

</mosaic_0001>

<bundles_post_ra>
// kernel: tpu_custom_call.1
= control target key start
LH: loop header
LB: loop body
LE: loop exit
PB: predicated region body
PF: predicated region fallthrough
CT: control target
= control target key end

     0   :  { %s8983_s0 = inlined_call_operand.hbm [shape: bf16[16,2048], index: 0, kind: input, shape index: {}]   ;;  %s8984_s1 = inlined_call_operand.hbm [shape: bf16[2048,2048], index: 1, kind: input, shape index: {}]   ;;  %s8985_s2 = inlined_call_operand.hbm [shape: f32[1,2048], index: 2, kind: input, shape index: {}]   ;;  %s8986_s3 = inlined_call_operand.hbm [shape: bf16[16,2048], index: 3, kind: output, shape index: {}]  }
   0x1   :  { %8991 = sst [smem:[#allocation16_spill]] %s8983_s0 }
   0x2   :  { %8992 = sst [smem:[#allocation17_spill]] %s8984_s1 }
   0x3   :  { %8 = vsyncpa [#allocation4], 0 }
   0x4   :  { %9 = vsyncpa [#allocation7], 0 }
   0x5   :  { %11 = vsyncpa [#allocation7 + $0x1], 0 }
   0x6   :  { %12 = vsyncpa [#allocation5], 0 }
   0x7   :  { %14 = vsyncpa [#allocation5 + $0x1], 0  ;;  %s7527_s12 = smov 0   ;;  %s7529_s13 = smov 0  }
   0x8   :  { %s7531_s14 = smov 0   ;;  %s7533_s15 = smov 0  }
   0x9   :  { %s7535_s16 = smov 0   ;;  %s7537_s17 = smov 0  }
   0xa LB: > { %s35_s18 = sadd.s32 1, %s7493_s16  ;;  %s76_s19 = sadd.s32 1, %s7485_s14  ;;  %s7497_s17 = sphi %s7537_s17, %s20_s17   ;;  %s7493_s16 = sphi %s7535_s16, %s9012_s16   ;;  %s7489_s15 = sphi %s7533_s15, %s9011_s15   ;;  %s7485_s14 = sphi %s7531_s14, %s9010_s14   ;;  %s7481_s13 = sphi %s7529_s13, %s9009_s13   ;;  %s7477_s12 = sphi %s7527_s12, %s9008_s12  }
   0xb   : > { %p37_p0 = scmp.ge.s32.totalorder %s35_s18, 4  ;;  %p83_p1 = scmp.ne.s32.totalorder %s7485_s14, %s7481_s13 }
   0xc   : > { %p84_p2 = scmp.eq.s32.totalorder %s7497_s17, 0  ;;  %p7261_p4 = scmp.lt.s32.totalorder %s7497_s17, 4 }
   0xd   : > { %s9014_s18 = smov (%p37_p0, %s35_s18), 0  ;;  %s187_s22 = sand.u32 1, %s7497_s17  }
   0xe   : > { %p7567_p3 = por %p84_p2, %p83_p1  ;;  %s72_s21 = ssub.s32 %s7493_s16, %s9014_s18 }
   0xf   : > { %p74_p5 = scmp.eq.s32.totalorder %s72_s21, 0  ;;  %s189_s23 = sand.u32 1, %s7485_s14  }
  0x10   : > { %s4578_s25 = sshll.u32 %s189_s23, 12  ;;  %s6705_s26 = sshll.u32 %s7493_s16, 4 }
  0x11   : > { %s7577_s24 = scalar_select %p74_p5, %s7485_s14, %s76_s19  }
  0x12   : > { %s8994_s1 = sld [smem:[#allocation17_spill]]  ;;  %s191_s4 = scalar_lea.vmem [#allocation6], %s4578_s25 }
  0x13   : > { %s202_s5 = sshll.u32 %s191_s4, 4  ;;  %p7589_p6 = pnand %p7261_p4, %p7567_p3  ;;  %s203_s5 = int_to_ptr.vmem [resolvable:$true] %s202_s5 }
  0x14   : > { %s7593_s7 = scalar_lea.sflag [#allocation7], %s187_s22  ;;  %s8987_s8 = smov 1024  }
  0x15   : > { %s7500_s9 = smov 256   ;;  %s7501_s10 = smov 16  }
  0x16   : > { %s7600_s11 = sadd.s32 4294967295, %s7497_s17   ;;  %s4574_s19 = sadd.s32 4294967294, %s7497_s17  }
  0x17   : > { %p89_p7 = scmp.ne.s32.totalorder %s7481_s13, %s7477_s12  ;;  %p90_p8 = scmp.eq.s32.totalorder %s7600_s11, 0 }
  0x18   : > { %s199_s29 = scalar_lea.hbm %s8994_s1, %s6705_s26  ;;  %p141_p9 = scmp.eq.s32.totalorder %s7600_s11, 3 }
  0x19   : > { %s200_s30 = sshll.u32 %s199_s29, 4  ;;  %p147_p10 = scmp.eq.s32.totalorder %s4574_s19, 3  ;;  %s201_s30 = int_to_ptr.hbm [resolvable:$true] %s200_s30 }
  0x1a   : > { %7252 = dma.hbm_to_vmem [thread:$0]  (!%p7589_p6), %s201_s30, 65536, %s203_s5, %s7593_s7, %s8987_s8, %s7500_s9, %s7501_s10  }
  0x1b   : > { %p7609_p11 = por %p90_p8, %p89_p7  ;;  %p4575_p12 = scmp.ge.s32.totalorder %s7497_s17, 1 }
  0x1c   : > { %p7617_p13 = por %p141_p9, %p83_p1  ;;  %p7621_p0 = por %p147_p10, %p89_p7 }
  0x1d   : > { %p154_p2 = scmp.lt.s32.totalorder %s7497_s17, 5  ;;  %s8999_s0 = sld [smem:[#allocation16_spill]] }
  0x1e   : > { %s7502_s29 = smov [#allocation3]   ;;  %s4581_s4 = sshll.u32 %s189_s23, 2 }
  0x1f   : > { %p7629_p3 = pnand %p4575_p12, %p154_p2  ;;  %s173_s30 = sshll.u32 %s7502_s29, 4  ;;  %s174_s30 = int_to_ptr.vmem [resolvable:$true] %s173_s30 }
  0x20   : > { %s4582_s5 = sshll.u32 %s7493_s16, 2  ;;  %s216_s25 = scalar_lea.vmem [#allocation8], %s4581_s4 }
  0x21   : > { %p7245_p1 = pneg %p7629_p3  ;;  %s220_s19 = scalar_lea.hbm %s8985_s2, %s4582_s5 }
  0x22   : > { %s224_s26 = sshll.u32 %s216_s25, 4  ;;  %s222_s8 = sshll.u32 %s220_s19, 4  ;;  %s223_s8 = int_to_ptr.hbm [resolvable:$true] %s222_s8  ;;  %s225_s26 = int_to_ptr.vmem [resolvable:$true] %s224_s26 }
  0x23   : > { %s171_s27 = sshll.u32 %s8999_s0, 4  ;;  %p7246_p4 = pnand %p7245_p1, %p90_p8  ;;  %s172_s27 = int_to_ptr.hbm [resolvable:$true] %s171_s27 }
  0x24   : > { %s7503_s0 = smov 64   ;;  %s9001_s1 = smov 1024  }
  0x25   : > { %7248 = dma.hbm_to_vmem [thread:$0]  (!%p7246_p4), %s172_s27, 2048, %s174_s30, [#allocation4], %s9001_s1, %s9001_s1, %s7503_s0  }
  0x26   : > { %7255 = dma.hbm_to_vmem [thread:$0]  (!%p7589_p6), %s223_s8, 64, %s225_s26, %s7593_s7  }
  0x27   : > { %233 = sbr.rel (%p7629_p3) target bundleno = 722 (0x2d2), region = 32 }
  0x2c   : > { %7464 = dma.done.wait (%p90_p8), [#allocation4], 2048  }
  0x2d   : > { %7466 = vsyncadd (%p90_p8), [#allocation4], 4294965248  ;;  %s240_s23 = sand.u32 1, %s7600_s11   ;;  %s7656_s29 = sand.u32 1, %s7481_s13  }
  0x2e   : > { %s4585_s0 = sshll.u32 %s7656_s29, 12  ;;  %s241_s1 = scalar_lea.sflag [#allocation7], %s240_s23 }
  0x2f   : > { %s7659_s6 = scalar_lea.vmem [#allocation6], %s4585_s0 }
  0x30   : > { %7468 = dma.done.wait (%p7609_p11), %s241_s1, 65600  }
  0x31   : > { %7470 = vsyncadd (%p7609_p11), %s241_s1, 4294901696  ;;  %v4766_v0 = vld [vmem:[%s7659_s6 + $0xe0] sm:$0xf]  ;;  %v6752_v1 = vld [vmem:[%s7659_s6 + $0xec] sm:$0xf0]  ;;  %s4586_s7 = sshll.u32 %s7656_s29, 2 }
  0x32   : > { %v4894_v2 = vld [vmem:[%s7659_s6 + $0x1e0] sm:$0xf]  ;;  %v4767_v3 = vor.u32 %v6752_v1, %v4766_v0  ;;  %v6784_v4 = vld [vmem:[%s7659_s6 + $0x1ec] sm:$0xf0]  ;;  %s8666_s8 = scalar_lea.vmem [#allocation8], %s4586_s7  ;;  %s4587_s11 = sshll.u32 %s7656_s29, 5 }
  0x33   : > { %v5022_v5 = vld [vmem:[%s7659_s6 + $0x2e0] sm:$0xf]  ;;  %v6816_v6 = vld [vmem:[%s7659_s6 + $0x2ec] sm:$0xf0]  ;;  %v4895_v7 = vor.u32 %v6784_v4, %v4894_v2  ;;  %s8708_s20 = scalar_lea.vmem [#allocation9], %s4587_s11  ;;  %s7234_s27 = sshll.u32 %s7489_s15, 4 }
  0x34   : > { %v5023_v8 = vor.u32 %v6816_v6, %v5022_v5  ;;  %v5150_v9 = vld [vmem:[%s7659_s6 + $0x3e0] sm:$0xf]  ;;  %v6848_v10 = vld [vmem:[%s7659_s6 + $0x3ec] sm:$0xf0]  ;;  %3478 = vmatpush.bf16.msra.mxu0 %v4767_v3  ;;  %s4442_s4 = scalar_lea.hbm %s8986_s3, %s7234_s27  ;;  %s4443_s5 = sshll.u32 %s8708_s20, 4  ;;  %s4444_s5 = int_to_ptr.vmem [resolvable:$true] %s4443_s5 }
  0x35   : > { %v4750_v11 = vld [vmem:[%s7659_s6 + $0xc0] sm:$0xf]  ;;  %v5151_v12 = vor.u32 %v6848_v10, %v5150_v9  ;;  %v6748_v13 = vld [vmem:[%s7659_s6 + $0xcc] sm:$0xf0]  ;;  %3492 = vmatpush.bf16.msra.mxu1 %v4895_v7  ;;  %s4445_s9 = sshll.u32 %s4442_s4, 4  ;;  %s4428_s15 = scalar_lea.sflag [#allocation5], %s7656_s29  ;;  %s4446_s9 = int_to_ptr.hbm [resolvable:$true] %s4445_s9 }
  0x36   : > { %v4878_v14 = vld [vmem:[%s7659_s6 + $0x1c0] sm:$0xf]  ;;  %v6780_v15 = vld [vmem:[%s7659_s6 + $0x1cc] sm:$0xf0]  ;;  %3506 = vmatpush.bf16.msra.mxu2 %v5023_v8  ;;  %v4751_v16 = vor.u32 %v6748_v13, %v4750_v11  ;;  %s7425_s10 = sshra.s32 %s4446_s9, 4  ;;  %s7431_s23 = scalar_lea.hbm %s8986_s3, 128  ;;  %s7426_s10 = int_to_ptr.hbm [resolvable:$true] %s7425_s10 }
  0x37   : > { %v4879_v17 = vor.u32 %v6780_v15, %v4878_v14  ;;  %v5006_v18 = vld [vmem:[%s7659_s6 + $0x2c0] sm:$0xf]  ;;  %v6812_v19 = vld [vmem:[%s7659_s6 + $0x2cc] sm:$0xf0]  ;;  %3520 = vmatpush.bf16.msra.mxu3 %v5151_v12  ;;  %s7427_s19 = scalar_lea.hbm %s7426_s10, 32  ;;  %p7432_p8 = scmp.lt.s32.totalorder %s7426_s10, %s8986_s3 }
  0x38   : > { %v5134_v20 = vld [vmem:[%s7659_s6 + $0x3c0] sm:$0xf]  ;;  %v5007_v21 = vor.u32 %v6812_v19, %v5006_v18  ;;  %v6844_v22 = vld [vmem:[%s7659_s6 + $0x3cc] sm:$0xf0]  ;;  %3479 = vmatpush.bf16.msra.mxu0 %v4751_v16  ;;  %p7428_p5 = scmp.ne.s32.totalorder %s7426_s10, %s7427_s19  ;;  %p7433_p9 = scmp.lt.s32.totalorder %s7431_s23, %s7427_s19 }
  0x39   : > { %v4734_v23 = vld [vmem:[%s7659_s6 + $0xa0] sm:$0xf]  ;;  %v6744_v24 = vld [vmem:[%s7659_s6 + $0xac] sm:$0xf0]  ;;  %v5135_v25 = vor.u32 %v6844_v22, %v5134_v20  ;;  %3493 = vmatpush.bf16.msra.mxu1 %v4879_v17 }
  0x3a   : > { %v4862_v26 = vld [vmem:[%s7659_s6 + $0x1a0] sm:$0xf]  ;;  %v6776_v27 = vld [vmem:[%s7659_s6 + $0x1ac] sm:$0xf0]  ;;  %v4735_v29 = vor.u32 %v6744_v24, %v4734_v23  ;;  %3507 = vmatpush.bf16.msra.mxu2 %v5007_v21  ;;  %p7429_p6 = pnand %p7428_p5, %p7617_p13  ;;  %p7434_p10 = por %p7433_p9, %p7432_p8 }
  0x3b   : > { %v4990_v28 = vld [vmem:[%s7659_s6 + $0x2a0] sm:$0xf]  ;;  %v6808_v30 = vld [vmem:[%s7659_s6 + $0x2ac] sm:$0xf0]  ;;  %v4863_v33 = vor.u32 %v6776_v27, %v4862_v26  ;;  %3521 = vmatpush.bf16.msra.mxu3 %v5135_v25 }
  0x3c   : > { %v5118_v31 = vld [vmem:[%s7659_s6 + $0x3a0] sm:$0xf]  ;;  %v6840_v32 = vld [vmem:[%s7659_s6 + $0x3ac] sm:$0xf0]  ;;  %v4991_v34 = vor.u32 %v6808_v30, %v4990_v28  ;;  %3480 = vmatpush.bf16.msra.mxu0 %v4735_v29  ;;  %p7430_p7 = pneg %p7429_p6 }
  0x3d   : > { %v4718_v35 = vld [vmem:[%s7659_s6 + $0x80] sm:$0xf]  ;;  %v6740_v36 = vld [vmem:[%s7659_s6 + $0x8c] sm:$0xf0]  ;;  %v5119_v38 = vor.u32 %v6840_v32, %v5118_v31  ;;  %3494 = vmatpush.bf16.msra.mxu1 %v4863_v33 }
  0x3e   : > { %v4846_v37 = vld [vmem:[%s7659_s6 + $0x180] sm:$0xf]  ;;  %v6772_v39 = vld [vmem:[%s7659_s6 + $0x18c] sm:$0xf0]  ;;  %v4719_v44 = vor.u32 %v6740_v36, %v4718_v35  ;;  %3508 = vmatpush.bf16.msra.mxu2 %v4991_v34  ;;  %p7435_p11 = pnand %p7434_p10, %p7430_p7 }
  0x3f   : > { %v4974_v40 = vld [vmem:[%s7659_s6 + $0x280] sm:$0xf]  ;;  %v6804_v41 = vld [vmem:[%s7659_s6 + $0x28c] sm:$0xf0]  ;;  %v4847_v45 = vor.u32 %v6772_v39, %v4846_v37  ;;  %3522 = vmatpush.bf16.msra.mxu3 %v5119_v38 }
  0x40   : > { %v5102_v42 = vld [vmem:[%s7659_s6 + $0x380] sm:$0xf]  ;;  %v6836_v43 = vld [vmem:[%s7659_s6 + $0x38c] sm:$0xf0]  ;;  %v4975_v46 = vor.u32 %v6804_v41, %v4974_v40  ;;  %3481 = vmatpush.bf16.msra.mxu0 %v4719_v44 }
  0x41   : > { %v4702_v47 = vld [vmem:[%s7659_s6 + $0x60] sm:$0xf]  ;;  %v6736_v48 = vld [vmem:[%s7659_s6 + $0x6c] sm:$0xf0]  ;;  %v5103_v50 = vor.u32 %v6836_v43, %v5102_v42  ;;  %3495 = vmatpush.bf16.msra.mxu1 %v4847_v45 }
  0x42   : > { %v4830_v49 = vld [vmem:[%s7659_s6 + $0x160] sm:$0xf]  ;;  %v6768_v51 = vld [vmem:[%s7659_s6 + $0x16c] sm:$0xf0]  ;;  %v4703_v56 = vor.u32 %v6736_v48, %v4702_v47  ;;  %3509 = vmatpush.bf16.msra.mxu2 %v4975_v46 }
  0x43   : > { %v4958_v52 = vld [vmem:[%s7659_s6 + $0x260] sm:$0xf]  ;;  %v6800_v53 = vld [vmem:[%s7659_s6 + $0x26c] sm:$0xf0]  ;;  %v4831_v57 = vor.u32 %v6768_v51, %v4830_v49  ;;  %3523 = vmatpush.bf16.msra.mxu3 %v5103_v50 }
  0x44   : > { %v5086_v54 = vld [vmem:[%s7659_s6 + $0x360] sm:$0xf]  ;;  %v6832_v55 = vld [vmem:[%s7659_s6 + $0x36c] sm:$0xf0]  ;;  %v4959_v58 = vor.u32 %v6800_v53, %v4958_v52  ;;  %3482 = vmatpush.bf16.msra.mxu0 %v4703_v56 }
  0x45   : > { %v4686_v59 = vld [vmem:[%s7659_s6 + $0x40] sm:$0xf]  ;;  %v6732_v60 = vld [vmem:[%s7659_s6 + $0x4c] sm:$0xf0]  ;;  %v5087_v62 = vor.u32 %v6832_v55, %v5086_v54  ;;  %3496 = vmatpush.bf16.msra.mxu1 %v4831_v57  ;;  %v4598_v54 = vld [vmem:[#allocation3 + $0x8] sm:$0xf] }
  0x46   : > { %v4814_v61 = vld [vmem:[%s7659_s6 + $0x140] sm:$0xf]  ;;  %v6764_v63 = vld [vmem:[%s7659_s6 + $0x14c] sm:$0xf0]  ;;  %v4687_v4 = vor.u32 %v6732_v60, %v4686_v59  ;;  %3510 = vmatpush.bf16.msra.mxu2 %v4959_v58  ;;  %v6715_v59 = vld [vmem:[#allocation3 + $0x44] sm:$0xf0] }
  0x47   : > { %v4942_v0 = vld [vmem:[%s7659_s6 + $0x240] sm:$0xf]  ;;  %v6796_v1 = vld [vmem:[%s7659_s6 + $0x24c] sm:$0xf0]  ;;  %v4815_v5 = vor.u32 %v6764_v63, %v4814_v61  ;;  %3524 = vmatpush.bf16.msra.mxu3 %v5087_v62 }
  0x48   : > { %v5070_v2 = vld [vmem:[%s7659_s6 + $0x340] sm:$0xf]  ;;  %v6828_v3 = vld [vmem:[%s7659_s6 + $0x34c] sm:$0xf0]  ;;  %v4943_v6 = vor.u32 %v6796_v1, %v4942_v0  ;;  %3483 = vmatpush.bf16.msra.mxu0 %v4687_v4  ;;  %v7752_v1 = vor.u32 %v6715_v59, %v4598_v54 }
  0x49   : > { %v4670_v7 = vld [vmem:[%s7659_s6 + $0x20] sm:$0xf]  ;;  %v6728_v8 = vld [vmem:[%s7659_s6 + $0x2c] sm:$0xf0]  ;;  %v5071_v10 = vor.u32 %v6828_v3, %v5070_v2  ;;  %3497 = vmatpush.bf16.msra.mxu1 %v4815_v5 }
  0x4a   : > { %v4798_v9 = vld [vmem:[%s7659_s6 + $0x120] sm:$0xf]  ;;  %v6760_v11 = vld [vmem:[%s7659_s6 + $0x12c] sm:$0xf0]  ;;  %v4671_v16 = vor.u32 %v6728_v8, %v4670_v7  ;;  %3511 = vmatpush.bf16.msra.mxu2 %v4943_v6  ;;  %v6706_v6 = vld [vmem:[#allocation3 + $0x4] sm:$0xf] }
  0x4b   : > { %v4926_v12 = vld [vmem:[%s7659_s6 + $0x220] sm:$0xf]  ;;  %v6792_v13 = vld [vmem:[%s7659_s6 + $0x22c] sm:$0xf0]  ;;  %v4799_v19 = vor.u32 %v6760_v11, %v4798_v9  ;;  %3525 = vmatpush.bf16.msra.mxu3 %v5071_v10  ;;  %v4592_v7 = vld [vmem:[#allocation3 + $0x40] sm:$0xf0] }
  0x4c   : > { %v5054_v14 = vld [vmem:[%s7659_s6 + $0x320] sm:$0xf]  ;;  %v6824_v15 = vld [vmem:[%s7659_s6 + $0x32c] sm:$0xf0]  ;;  %v4927_v20 = vor.u32 %v6792_v13, %v4926_v12  ;;  %3484 = vmatpush.bf16.msra.mxu0 %v4671_v16  ;;  %v6707_v8 = vld [vmem:[#allocation3 + $0xc] sm:$0xf]  ;;  %v7759_v10 = vor.u32 %v6706_v6, %v4592_v7 }
  0x4d   : > { %v4654_v17 = vld [vmem:[%s7659_s6] sm:$0xf]  ;;  %v6724_v18 = vld [vmem:[%s7659_s6 + $0xc] sm:$0xf0]  ;;  %v5055_v24 = vor.u32 %v6824_v15, %v5054_v14  ;;  %3498 = vmatpush.bf16.msra.mxu1 %v4799_v19  ;;  %v4600_v11 = vld [vmem:[#allocation3 + $0x48] sm:$0xf0] }
  0x4e   : > { %v4782_v21 = vld [vmem:[%s7659_s6 + $0x100] sm:$0xf]  ;;  %v6756_v22 = vld [vmem:[%s7659_s6 + $0x10c] sm:$0xf0]  ;;  %v4655_v31 = vor.u32 %v6724_v18, %v4654_v17  ;;  %3512 = vmatpush.bf16.msra.mxu2 %v4927_v20  ;;  %v7764_v17 = vor.u32 %v6707_v8, %v4600_v11 }
  0x4f   : > { %v4910_v23 = vld [vmem:[%s7659_s6 + $0x200] sm:$0xf]  ;;  %v6788_v25 = vld [vmem:[%s7659_s6 + $0x20c] sm:$0xf0]  ;;  %v4783_v35 = vor.u32 %v6756_v22, %v4782_v21  ;;  %3526 = vmatpush.bf16.msra.mxu3 %v5055_v24 }
  0x50   : > { %v5038_v26 = vld [vmem:[%s7659_s6 + $0x300] sm:$0xf]  ;;  %v6820_v27 = vld [vmem:[%s7659_s6 + $0x30c] sm:$0xf0]  ;;  %v4911_v36 = vor.u32 %v6788_v25, %v4910_v23  ;;  %3485 = vmatpush.bf16.msra.mxu0 %v4655_v31 }
  0x51   : > { %v5278_v28 = vld [vmem:[%s7659_s6 + $0x4e0] sm:$0xf]  ;;  %v6880_v29 = vld [vmem:[%s7659_s6 + $0x4ec] sm:$0xf0]  ;;  %v5039_v39 = vor.u32 %v6820_v27, %v5038_v26  ;;  %3499 = vmatpush.bf16.msra.mxu1 %v4783_v35 }
  0x52   : > { %v5406_v30 = vld [vmem:[%s7659_s6 + $0x5e0] sm:$0xf]  ;;  %v6912_v32 = vld [vmem:[%s7659_s6 + $0x5ec] sm:$0xf0]  ;;  %v5279_v40 = vor.u32 %v6880_v29, %v5278_v28  ;;  %3513 = vmatpush.bf16.msra.mxu2 %v4911_v36 }
  0x53   : > { %v5534_v33 = vld [vmem:[%s7659_s6 + $0x6e0] sm:$0xf]  ;;  %v6944_v34 = vld [vmem:[%s7659_s6 + $0x6ec] sm:$0xf0]  ;;  %v5407_v43 = vor.u32 %v6912_v32, %v5406_v30  ;;  %3527 = vmatpush.bf16.msra.mxu3 %v5039_v39 }
  0x54   : > { %v5662_v37 = vld [vmem:[%s7659_s6 + $0x7e0] sm:$0xf]  ;;  %v6976_v38 = vld [vmem:[%s7659_s6 + $0x7ec] sm:$0xf0]  ;;  %v5535_v44 = vor.u32 %v6944_v34, %v5534_v33  ;;  %3534 = vmatpush.bf16.msrb.mxu0 %v5279_v40  ;;  %3500 = vmatmul.bf16.vlgmr.msra.gmra.mxu1 %v7759_v10 }
  0x55   : > { %v5262_v41 = vld [vmem:[%s7659_s6 + $0x4c0] sm:$0xf]  ;;  %v6876_v42 = vld [vmem:[%s7659_s6 + $0x4cc] sm:$0xf0]  ;;  %v5663_v48 = vor.u32 %v6976_v38, %v5662_v37  ;;  %3548 = vmatpush.bf16.msrb.mxu1 %v5407_v43  ;;  %3514 = vmatmul.bf16.vlgmr.msra.gmra.mxu2 %v7752_v1 }
  0x56   : > { %v5390_v45 = vld [vmem:[%s7659_s6 + $0x5c0] sm:$0xf]  ;;  %v6908_v46 = vld [vmem:[%s7659_s6 + $0x5cc] sm:$0xf0]  ;;  %v5263_v55 = vor.u32 %v6876_v42, %v5262_v41  ;;  %3562 = vmatpush.bf16.msrb.mxu2 %v5535_v44  ;;  %3528 = vmatmul.bf16.vlgmr.msra.gmra.mxu3 %v7764_v17 }
  0x57   : > { %v5518_v47 = vld [vmem:[%s7659_s6 + $0x6c0] sm:$0xf]  ;;  %v6940_v49 = vld [vmem:[%s7659_s6 + $0x6cc] sm:$0xf0]  ;;  %v5391_v60 = vor.u32 %v6908_v46, %v5390_v45  ;;  %3576 = vmatpush.bf16.msrb.mxu3 %v5663_v48 }
  0x58   : > { %v5646_v50 = vld [vmem:[%s7659_s6 + $0x7c0] sm:$0xf]  ;;  %v6972_v51 = vld [vmem:[%s7659_s6 + $0x7cc] sm:$0xf0]  ;;  %v5519_v61 = vor.u32 %v6940_v49, %v5518_v47  ;;  %3535 = vmatpush.bf16.msrb.mxu0 %v5263_v55 }
  0x59   : > { %v4590_v52 = vld [vmem:[#allocation3] sm:$0xf]  ;;  %v6872_v57 = vld [vmem:[%s7659_s6 + $0x4ac] sm:$0xf0]  ;;  %v5647_v2 = vor.u32 %v6972_v51, %v5646_v50  ;;  %3549 = vmatpush.bf16.msrb.mxu1 %v5391_v60 }
  0x5a   : > { %v6714_v53 = vld [vmem:[#allocation3 + $0x3c] sm:$0xf0]  ;;  %v6904_v63 = vld [vmem:[%s7659_s6 + $0x5ac] sm:$0xf0]  ;;  %3563 = vmatpush.bf16.msrb.mxu2 %v5519_v61 }
  0x5b   : > { %v5246_v56 = vld [vmem:[%s7659_s6 + $0x4a0] sm:$0xf]  ;;  %v7747_v58 = vor.u32 %v6714_v53, %v4590_v52  ;;  %v6936_v3 = vld [vmem:[%s7659_s6 + $0x6ac] sm:$0xf0]  ;;  %3577 = vmatpush.bf16.msrb.mxu3 %v5647_v2 }
  0x5c   : > { %v5374_v62 = vld [vmem:[%s7659_s6 + $0x5a0] sm:$0xf]  ;;  %v6968_v5 = vld [vmem:[%s7659_s6 + $0x7ac] sm:$0xf0]  ;;  %v5247_v9 = vor.u32 %v6872_v57, %v5246_v56 }
  0x5d   : > { %v5502_v0 = vld [vmem:[%s7659_s6 + $0x6a0] sm:$0xf]  ;;  %3486 = vmatmul.bf16.vlgmr.msra.gmra.mxu0 %v7747_v58  ;;  %v5375_v12 = vor.u32 %v6904_v63, %v5374_v62  ;;  %v6868_v15 = vld [vmem:[%s7659_s6 + $0x48c] sm:$0xf0] }
  0x5e   : > { %v5630_v4 = vld [vmem:[%s7659_s6 + $0x7a0] sm:$0xf]  ;;  %v5503_v13 = vor.u32 %v6936_v3, %v5502_v0  ;;  %v6900_v19 = vld [vmem:[%s7659_s6 + $0x58c] sm:$0xf0]  ;;  %3536 = vmatpush.bf16.msrb.mxu0 %v5247_v9 }
  0x5f   : > { %v5230_v14 = vld [vmem:[%s7659_s6 + $0x480] sm:$0xf]  ;;  %v5631_v18 = vor.u32 %v6968_v5, %v5630_v4  ;;  %v6932_v21 = vld [vmem:[%s7659_s6 + $0x68c] sm:$0xf0]  ;;  %3550 = vmatpush.bf16.msrb.mxu1 %v5375_v12 }
  0x60   : > { %v5358_v16 = vld [vmem:[%s7659_s6 + $0x580] sm:$0xf]  ;;  %v6964_v23 = vld [vmem:[%s7659_s6 + $0x78c] sm:$0xf0]  ;;  %v5231_v24 = vor.u32 %v6868_v15, %v5230_v14  ;;  %3564 = vmatpush.bf16.msrb.mxu2 %v5503_v13 }
  0x61   : > { %v5486_v20 = vld [vmem:[%s7659_s6 + $0x680] sm:$0xf]  ;;  %v5359_v25 = vor.u32 %v6900_v19, %v5358_v16  ;;  %v6864_v28 = vld [vmem:[%s7659_s6 + $0x46c] sm:$0xf0]  ;;  %3578 = vmatpush.bf16.msrb.mxu3 %v5631_v18 }
  0x62   : > { %v5614_v22 = vld [vmem:[%s7659_s6 + $0x780] sm:$0xf]  ;;  %v5487_v26 = vor.u32 %v6932_v21, %v5486_v20  ;;  %v6896_v31 = vld [vmem:[%s7659_s6 + $0x56c] sm:$0xf0]  ;;  %3537 = vmatpush.bf16.msrb.mxu0 %v5231_v24 }
  0x63   : > { %v5214_v27 = vld [vmem:[%s7659_s6 + $0x460] sm:$0xf]  ;;  %v5615_v30 = vor.u32 %v6964_v23, %v5614_v22  ;;  %v6928_v33 = vld [vmem:[%s7659_s6 + $0x66c] sm:$0xf0]  ;;  %3551 = vmatpush.bf16.msrb.mxu1 %v5359_v25  ;;  %v4614_v25 = vld [vmem:[#allocation3 + $0x18] sm:$0xf] }
  0x64   : > { %v5342_v29 = vld [vmem:[%s7659_s6 + $0x560] sm:$0xf]  ;;  %v6960_v35 = vld [vmem:[%s7659_s6 + $0x76c] sm:$0xf0]  ;;  %v5215_v36 = vor.u32 %v6864_v28, %v5214_v27  ;;  %3565 = vmatpush.bf16.msrb.mxu2 %v5487_v26  ;;  %v6717_v26 = vld [vmem:[#allocation3 + $0x54] sm:$0xf0] }
  0x65   : > { %v5470_v32 = vld [vmem:[%s7659_s6 + $0x660] sm:$0xf]  ;;  %v5343_v37 = vor.u32 %v6896_v31, %v5342_v29  ;;  %v6860_v40 = vld [vmem:[%s7659_s6 + $0x44c] sm:$0xf0]  ;;  %3579 = vmatpush.bf16.msrb.mxu3 %v5615_v30  ;;  %v6708_v27 = vld [vmem:[#allocation3 + $0x14] sm:$0xf] }
  0x66   : > { %v5598_v34 = vld [vmem:[%s7659_s6 + $0x760] sm:$0xf]  ;;  %v5471_v38 = vor.u32 %v6928_v33, %v5470_v32  ;;  %v6892_v43 = vld [vmem:[%s7659_s6 + $0x54c] sm:$0xf0]  ;;  %3538 = vmatpush.bf16.msrb.mxu0 %v5215_v36  ;;  %v4608_v30 = vld [vmem:[#allocation3 + $0x50] sm:$0xf0] }
  0x67   : > { %v5198_v39 = vld [vmem:[%s7659_s6 + $0x440] sm:$0xf]  ;;  %v5599_v42 = vor.u32 %v6960_v35, %v5598_v34  ;;  %v6924_v45 = vld [vmem:[%s7659_s6 + $0x64c] sm:$0xf0]  ;;  %3552 = vmatpush.bf16.msrb.mxu1 %v5343_v37  ;;  %v6709_v31 = vld [vmem:[#allocation3 + $0x1c] sm:$0xf] }
  0x68   : > { %v5326_v41 = vld [vmem:[%s7659_s6 + $0x540] sm:$0xf]  ;;  %v6956_v47 = vld [vmem:[%s7659_s6 + $0x74c] sm:$0xf0]  ;;  %v5199_v48 = vor.u32 %v6860_v40, %v5198_v39  ;;  %3566 = vmatpush.bf16.msrb.mxu2 %v5471_v38  ;;  %v4616_v32 = vld [vmem:[#allocation3 + $0x58] sm:$0xf0] }
  0x69   : > { %v5454_v44 = vld [vmem:[%s7659_s6 + $0x640] sm:$0xf]  ;;  %v5327_v50 = vor.u32 %v6892_v43, %v5326_v41  ;;  %v6856_v52 = vld [vmem:[%s7659_s6 + $0x42c] sm:$0xf0]  ;;  %3580 = vmatpush.bf16.msrb.mxu3 %v5599_v42  ;;  %v7821_v43 = vor.u32 %v6717_v26, %v4614_v25 }
  0x6a   : > { %v5582_v46 = vld [vmem:[%s7659_s6 + $0x740] sm:$0xf]  ;;  %v5455_v51 = vor.u32 %v6924_v45, %v5454_v44  ;;  %v6888_v54 = vld [vmem:[%s7659_s6 + $0x52c] sm:$0xf0]  ;;  %3539 = vmatpush.bf16.msrb.mxu0 %v5199_v48  ;;  %v7823_v44 = vor.u32 %v6708_v27, %v4608_v30 }
  0x6b   : > { %v5182_v49 = vld [vmem:[%s7659_s6 + $0x420] sm:$0xf]  ;;  %v5583_v55 = vor.u32 %v6956_v47, %v5582_v46  ;;  %v6920_v57 = vld [vmem:[%s7659_s6 + $0x62c] sm:$0xf0]  ;;  %3553 = vmatpush.bf16.msrb.mxu1 %v5327_v50  ;;  %9002 = vst [vmem:[#allocation13_spill] sm:$0xff] %v7821_v43  ;;  %v7827_v47 = vor.u32 %v6709_v31, %v4616_v32 }
  0x6c   : > { %v5310_v53 = vld [vmem:[%s7659_s6 + $0x520] sm:$0xf]  ;;  %v6952_v60 = vld [vmem:[%s7659_s6 + $0x72c] sm:$0xf0]  ;;  %v5183_v63 = vor.u32 %v6856_v52, %v5182_v49  ;;  %3567 = vmatpush.bf16.msrb.mxu2 %v5455_v51  ;;  %9003 = vst [vmem:[#allocation14_spill] sm:$0xff] %v7823_v44 }
  0x6d   : > { %v5438_v56 = vld [vmem:[%s7659_s6 + $0x620] sm:$0xf]  ;;  %v6852_v62 = vld [vmem:[%s7659_s6 + $0x40c] sm:$0xf0]  ;;  %v5311_v5 = vor.u32 %v6888_v54, %v5310_v53  ;;  %3581 = vmatpush.bf16.msrb.mxu3 %v5583_v55  ;;  %9004 = vst [vmem:[#allocation15_spill] sm:$0xff] %v7827_v47 }
  0x6e   : > { %v5566_v59 = vld [vmem:[%s7659_s6 + $0x720] sm:$0xf]  ;;  %v6884_v2 = vld [vmem:[%s7659_s6 + $0x50c] sm:$0xf0]  ;;  %v5439_v6 = vor.u32 %v6920_v57, %v5438_v56  ;;  %3540 = vmatpush.bf16.msrb.mxu0 %v5183_v63 }
  0x6f   : > { %v5166_v61 = vld [vmem:[%s7659_s6 + $0x400] sm:$0xf]  ;;  %v6916_v4 = vld [vmem:[%s7659_s6 + $0x60c] sm:$0xf0]  ;;  %v5567_v11 = vor.u32 %v6952_v60, %v5566_v59  ;;  %3554 = vmatpush.bf16.msrb.mxu1 %v5311_v5 }
  0x70   : > { %v5294_v0 = vld [vmem:[%s7659_s6 + $0x500] sm:$0xf]  ;;  %v6948_v8 = vld [vmem:[%s7659_s6 + $0x70c] sm:$0xf0]  ;;  %v5167_v19 = vor.u32 %v6852_v62, %v5166_v61  ;;  %3568 = vmatpush.bf16.msrb.mxu2 %v5439_v6 }
  0x71   : > { %v5422_v3 = vld [vmem:[%s7659_s6 + $0x600] sm:$0xf]  ;;  %v7008_v12 = vld [vmem:[%s7659_s6 + $0x8ec] sm:$0xf0]  ;;  %v5295_v23 = vor.u32 %v6884_v2, %v5294_v0  ;;  %3582 = vmatpush.bf16.msrb.mxu3 %v5567_v11 }
  0x72   : > { %v5550_v7 = vld [vmem:[%s7659_s6 + $0x700] sm:$0xf]  ;;  %v7040_v14 = vld [vmem:[%s7659_s6 + $0x9ec] sm:$0xf0]  ;;  %v5423_v24 = vor.u32 %v6916_v4, %v5422_v3  ;;  %3541 = vmatpush.bf16.msrb.mxu0 %v5167_v19 }
  0x73   : > { %v5790_v9 = vld [vmem:[%s7659_s6 + $0x8e0] sm:$0xf]  ;;  %v7072_v16 = vld [vmem:[%s7659_s6 + $0xaec] sm:$0xf0]  ;;  %v5551_v28 = vor.u32 %v6948_v8, %v5550_v7  ;;  %3555 = vmatpush.bf16.msrb.mxu1 %v5295_v23 }
  0x74   : > { %v5918_v13 = vld [vmem:[%s7659_s6 + $0x9e0] sm:$0xf]  ;;  %v7104_v20 = vld [vmem:[%s7659_s6 + $0xbec] sm:$0xf0]  ;;  %v5791_v29 = vor.u32 %v7008_v12, %v5790_v9  ;;  %3569 = vmatpush.bf16.msrb.mxu2 %v5423_v24 }
  0x75   : > { %v6046_v15 = vld [vmem:[%s7659_s6 + $0xae0] sm:$0xf]  ;;  %v4606_v21 = vld [vmem:[#allocation3 + $0x10] sm:$0xf]  ;;  %v5919_v33 = vor.u32 %v7040_v14, %v5918_v13  ;;  %3583 = vmatpush.bf16.msrb.mxu3 %v5551_v28 }
  0x76   : > { %v6174_v18 = vld [vmem:[%s7659_s6 + $0xbe0] sm:$0xf]  ;;  %v6716_v22 = vld [vmem:[#allocation3 + $0x4c] sm:$0xf0]  ;;  %v6047_v34 = vor.u32 %v7072_v16, %v6046_v15  ;;  %3590 = vmatpush.bf16.msra.mxu0 %v5791_v29  ;;  %3556 = vmatmul.bf16.vlgmr.msrb.gmra.mxu1 %v7823_v44 }
  0x77   : > { %v5774_v35 = vld [vmem:[%s7659_s6 + $0x8c0] sm:$0xf]  ;;  %v7004_v36 = vld [vmem:[%s7659_s6 + $0x8cc] sm:$0xf0]  ;;  %v6175_v38 = vor.u32 %v7104_v20, %v6174_v18  ;;  %v7816_v39 = vor.u32 %v6716_v22, %v4606_v21  ;;  %3604 = vmatpush.bf16.msra.mxu1 %v5919_v33  ;;  %3570 = vmatmul.bf16.vlgmr.msrb.gmra.mxu2 %v7821_v43 }
  0x78   : > { %v5902_v37 = vld [vmem:[%s7659_s6 + $0x9c0] sm:$0xf]  ;;  %v7036_v40 = vld [vmem:[%s7659_s6 + $0x9cc] sm:$0xf0]  ;;  %v5775_v48 = vor.u32 %v7004_v36, %v5774_v35  ;;  %3618 = vmatpush.bf16.msra.mxu2 %v6047_v34  ;;  %3584 = vmatmul.bf16.vlgmr.msrb.gmra.mxu3 %v7827_v47 }
  0x79   : > { %v6030_v41 = vld [vmem:[%s7659_s6 + $0xac0] sm:$0xf]  ;;  %v7068_v42 = vld [vmem:[%s7659_s6 + $0xacc] sm:$0xf0]  ;;  %v5903_v49 = vor.u32 %v7036_v40, %v5902_v37  ;;  %3632 = vmatpush.bf16.msra.mxu3 %v6175_v38  ;;  %3542 = vmatmul.bf16.vlgmr.msrb.gmra.mxu0 %v7816_v39 }
  0x7a   : > { %v6158_v45 = vld [vmem:[%s7659_s6 + $0xbc0] sm:$0xf]  ;;  %v7100_v46 = vld [vmem:[%s7659_s6 + $0xbcc] sm:$0xf0]  ;;  %v6031_v50 = vor.u32 %v7068_v42, %v6030_v41  ;;  %3591 = vmatpush.bf16.msra.mxu0 %v5775_v48 }
  0x7b   : > { %v5758_v51 = vld [vmem:[%s7659_s6 + $0x8a0] sm:$0xf]  ;;  %v7000_v52 = vld [vmem:[%s7659_s6 + $0x8ac] sm:$0xf0]  ;;  %v6159_v54 = vor.u32 %v7100_v46, %v6158_v45  ;;  %3605 = vmatpush.bf16.msra.mxu1 %v5903_v49 }
  0x7c   : > { %v5886_v53 = vld [vmem:[%s7659_s6 + $0x9a0] sm:$0xf]  ;;  %v7032_v55 = vld [vmem:[%s7659_s6 + $0x9ac] sm:$0xf0]  ;;  %v5759_v61 = vor.u32 %v7000_v52, %v5758_v51  ;;  %3619 = vmatpush.bf16.msra.mxu2 %v6031_v50 }
  0x7d   : > { %v6014_v56 = vld [vmem:[%s7659_s6 + $0xaa0] sm:$0xf]  ;;  %v7064_v57 = vld [vmem:[%s7659_s6 + $0xaac] sm:$0xf0]  ;;  %v5887_v62 = vor.u32 %v7032_v55, %v5886_v53  ;;  %3633 = vmatpush.bf16.msra.mxu3 %v6159_v54 }
  0x7e   : > { %v6142_v59 = vld [vmem:[%s7659_s6 + $0xba0] sm:$0xf]  ;;  %v7096_v60 = vld [vmem:[%s7659_s6 + $0xbac] sm:$0xf0]  ;;  %v6015_v63 = vor.u32 %v7064_v57, %v6014_v56  ;;  %3592 = vmatpush.bf16.msra.mxu0 %v5759_v61 }
  0x7f   : > { %v5742_v0 = vld [vmem:[%s7659_s6 + $0x880] sm:$0xf]  ;;  %v6996_v2 = vld [vmem:[%s7659_s6 + $0x88c] sm:$0xf0]  ;;  %v6143_v4 = vor.u32 %v7096_v60, %v6142_v59  ;;  %3606 = vmatpush.bf16.msra.mxu1 %v5887_v62 }
  0x80   : > { %v5870_v3 = vld [vmem:[%s7659_s6 + $0x980] sm:$0xf]  ;;  %v7028_v5 = vld [vmem:[%s7659_s6 + $0x98c] sm:$0xf0]  ;;  %v5743_v11 = vor.u32 %v6996_v2, %v5742_v0  ;;  %3620 = vmatpush.bf16.msra.mxu2 %v6015_v63 }
  0x81   : > { %v5998_v6 = vld [vmem:[%s7659_s6 + $0xa80] sm:$0xf]  ;;  %v7060_v7 = vld [vmem:[%s7659_s6 + $0xa8c] sm:$0xf0]  ;;  %v5871_v12 = vor.u32 %v7028_v5, %v5870_v3  ;;  %3634 = vmatpush.bf16.msra.mxu3 %v6143_v4 }
  0x82   : > { %v6126_v8 = vld [vmem:[%s7659_s6 + $0xb80] sm:$0xf]  ;;  %v7092_v9 = vld [vmem:[%s7659_s6 + $0xb8c] sm:$0xf0]  ;;  %v5999_v13 = vor.u32 %v7060_v7, %v5998_v6  ;;  %3593 = vmatpush.bf16.msra.mxu0 %v5743_v11 }
  0x83   : > { %v5726_v14 = vld [vmem:[%s7659_s6 + $0x860] sm:$0xf]  ;;  %v6992_v15 = vld [vmem:[%s7659_s6 + $0x86c] sm:$0xf0]  ;;  %v6127_v18 = vor.u32 %v7092_v9, %v6126_v8  ;;  %3607 = vmatpush.bf16.msra.mxu1 %v5871_v12 }
  0x84   : > { %v5854_v16 = vld [vmem:[%s7659_s6 + $0x960] sm:$0xf]  ;;  %v7024_v19 = vld [vmem:[%s7659_s6 + $0x96c] sm:$0xf0]  ;;  %v5727_v24 = vor.u32 %v6992_v15, %v5726_v14  ;;  %3621 = vmatpush.bf16.msra.mxu2 %v5999_v13 }
  0x85   : > { %v5982_v20 = vld [vmem:[%s7659_s6 + $0xa60] sm:$0xf]  ;;  %v7056_v21 = vld [vmem:[%s7659_s6 + $0xa6c] sm:$0xf0]  ;;  %v5855_v25 = vor.u32 %v7024_v19, %v5854_v16  ;;  %3635 = vmatpush.bf16.msra.mxu3 %v6127_v18  ;;  %v4630_v16 = vld [vmem:[#allocation3 + $0x28] sm:$0xf] }
  0x86   : > { %v6110_v22 = vld [vmem:[%s7659_s6 + $0xb60] sm:$0xf]  ;;  %v7088_v23 = vld [vmem:[%s7659_s6 + $0xb6c] sm:$0xf0]  ;;  %v5983_v26 = vor.u32 %v7056_v21, %v5982_v20  ;;  %3594 = vmatpush.bf16.msra.mxu0 %v5727_v24  ;;  %v6719_v18 = vld [vmem:[#allocation3 + $0x64] sm:$0xf0] }
  0x87   : > { %v5710_v27 = vld [vmem:[%s7659_s6 + $0x840] sm:$0xf]  ;;  %v6988_v28 = vld [vmem:[%s7659_s6 + $0x84c] sm:$0xf0]  ;;  %v6111_v30 = vor.u32 %v7088_v23, %v6110_v22  ;;  %3608 = vmatpush.bf16.msra.mxu1 %v5855_v25  ;;  %v6710_v19 = vld [vmem:[#allocation3 + $0x24] sm:$0xf] }
  0x88   : > { %v5838_v29 = vld [vmem:[%s7659_s6 + $0x940] sm:$0xf]  ;;  %v7020_v31 = vld [vmem:[%s7659_s6 + $0x94c] sm:$0xf0]  ;;  %v5711_v36 = vor.u32 %v6988_v28, %v5710_v27  ;;  %3622 = vmatpush.bf16.msra.mxu2 %v5983_v26  ;;  %v4624_v22 = vld [vmem:[#allocation3 + $0x60] sm:$0xf0] }
  0x89   : > { %v5966_v32 = vld [vmem:[%s7659_s6 + $0xa40] sm:$0xf]  ;;  %v7052_v33 = vld [vmem:[%s7659_s6 + $0xa4c] sm:$0xf0]  ;;  %v5839_v38 = vor.u32 %v7020_v31, %v5838_v29  ;;  %3636 = vmatpush.bf16.msra.mxu3 %v6111_v30  ;;  %v6711_v23 = vld [vmem:[#allocation3 + $0x2c] sm:$0xf] }
  0x8a   : > { %v6094_v34 = vld [vmem:[%s7659_s6 + $0xb40] sm:$0xf]  ;;  %v7084_v35 = vld [vmem:[%s7659_s6 + $0xb4c] sm:$0xf0]  ;;  %v5967_v40 = vor.u32 %v7052_v33, %v5966_v32  ;;  %3595 = vmatpush.bf16.msra.mxu0 %v5711_v36  ;;  %v4632_v24 = vld [vmem:[#allocation3 + $0x68] sm:$0xf0]  ;;  %v7899_v36 = vor.u32 %v6710_v19, %v4624_v22 }
  0x8b   : > { %v5694_v37 = vld [vmem:[%s7659_s6 + $0x820] sm:$0xf]  ;;  %v6984_v41 = vld [vmem:[%s7659_s6 + $0x82c] sm:$0xf0]  ;;  %v6095_v46 = vor.u32 %v7084_v35, %v6094_v34  ;;  %3609 = vmatpush.bf16.msra.mxu1 %v5839_v38  ;;  %v7897_v35 = vor.u32 %v6719_v18, %v4630_v16 }
  0x8c   : > { %v5822_v42 = vld [vmem:[%s7659_s6 + $0x920] sm:$0xf]  ;;  %v7016_v45 = vld [vmem:[%s7659_s6 + $0x92c] sm:$0xf0]  ;;  %v5695_v54 = vor.u32 %v6984_v41, %v5694_v37  ;;  %3623 = vmatpush.bf16.msra.mxu2 %v5967_v40  ;;  %v7903_v40 = vor.u32 %v6711_v23, %v4632_v24 }
  0x8d   : > { %v5950_v48 = vld [vmem:[%s7659_s6 + $0xa20] sm:$0xf]  ;;  %v7048_v49 = vld [vmem:[%s7659_s6 + $0xa2c] sm:$0xf0]  ;;  %v5823_v60 = vor.u32 %v7016_v45, %v5822_v42  ;;  %3637 = vmatpush.bf16.msra.mxu3 %v6095_v46 }
  0x8e   : > { %v6078_v50 = vld [vmem:[%s7659_s6 + $0xb20] sm:$0xf]  ;;  %v7080_v51 = vld [vmem:[%s7659_s6 + $0xb2c] sm:$0xf0]  ;;  %v5951_v61 = vor.u32 %v7048_v49, %v5950_v48  ;;  %3596 = vmatpush.bf16.msra.mxu0 %v5695_v54 }
  0x8f   : > { %v5678_v52 = vld [vmem:[%s7659_s6 + $0x800] sm:$0xf]  ;;  %v6980_v53 = vld [vmem:[%s7659_s6 + $0x80c] sm:$0xf0]  ;;  %v6079_v2 = vor.u32 %v7080_v51, %v6078_v50  ;;  %3610 = vmatpush.bf16.msra.mxu1 %v5823_v60 }
  0x90   : > { %v5806_v55 = vld [vmem:[%s7659_s6 + $0x900] sm:$0xf]  ;;  %v7012_v56 = vld [vmem:[%s7659_s6 + $0x90c] sm:$0xf0]  ;;  %v5679_v9 = vor.u32 %v6980_v53, %v5678_v52  ;;  %3624 = vmatpush.bf16.msra.mxu2 %v5951_v61 }
  0x91   : > { %v5934_v57 = vld [vmem:[%s7659_s6 + $0xa00] sm:$0xf]  ;;  %v7044_v59 = vld [vmem:[%s7659_s6 + $0xa0c] sm:$0xf0]  ;;  %v5807_v14 = vor.u32 %v7012_v56, %v5806_v55  ;;  %3638 = vmatpush.bf16.msra.mxu3 %v6079_v2 }
  0x92   : > { %v6062_v62 = vld [vmem:[%s7659_s6 + $0xb00] sm:$0xf]  ;;  %v7076_v63 = vld [vmem:[%s7659_s6 + $0xb0c] sm:$0xf0]  ;;  %v5935_v15 = vor.u32 %v7044_v59, %v5934_v57  ;;  %3597 = vmatpush.bf16.msra.mxu0 %v5679_v9 }
  0x93   : > { %v6302_v0 = vld [vmem:[%s7659_s6 + $0xce0] sm:$0xf]  ;;  %v7136_v3 = vld [vmem:[%s7659_s6 + $0xcec] sm:$0xf0]  ;;  %v6063_v20 = vor.u32 %v7076_v63, %v6062_v62  ;;  %3611 = vmatpush.bf16.msra.mxu1 %v5807_v14 }
  0x94   : > { %v6430_v4 = vld [vmem:[%s7659_s6 + $0xde0] sm:$0xf]  ;;  %v7168_v5 = vld [vmem:[%s7659_s6 + $0xdec] sm:$0xf0]  ;;  %v6303_v21 = vor.u32 %v7136_v3, %v6302_v0  ;;  %3625 = vmatpush.bf16.msra.mxu2 %v5935_v15 }
  0x95   : > { %v6558_v6 = vld [vmem:[%s7659_s6 + $0xee0] sm:$0xf]  ;;  %v7200_v7 = vld [vmem:[%s7659_s6 + $0xeec] sm:$0xf0]  ;;  %v6431_v25 = vor.u32 %v7168_v5, %v6430_v4  ;;  %3639 = vmatpush.bf16.msra.mxu3 %v6063_v20 }
  0x96   : > { %v6686_v8 = vld [vmem:[%s7659_s6 + $0xfe0] sm:$0xf]  ;;  %v7232_v11 = vld [vmem:[%s7659_s6 + $0xfec] sm:$0xf0]  ;;  %v6559_v26 = vor.u32 %v7200_v7, %v6558_v6  ;;  %3646 = vmatpush.bf16.msrb.mxu0 %v6303_v21  ;;  %3612 = vmatmul.bf16.vlgmr.msra.gmra.mxu1 %v7899_v36 }
  0x97   : > { %v4622_v12 = vld [vmem:[#allocation3 + $0x20] sm:$0xf]  ;;  %v7132_v28 = vld [vmem:[%s7659_s6 + $0xccc] sm:$0xf0]  ;;  %v6687_v30 = vor.u32 %v7232_v11, %v6686_v8  ;;  %3660 = vmatpush.bf16.msrb.mxu1 %v6431_v25  ;;  %3626 = vmatmul.bf16.vlgmr.msra.gmra.mxu2 %v7897_v35 }
  0x98   : > { %v6718_v13 = vld [vmem:[#allocation3 + $0x5c] sm:$0xf0]  ;;  %v7164_v32 = vld [vmem:[%s7659_s6 + $0xdcc] sm:$0xf0]  ;;  %3674 = vmatpush.bf16.msrb.mxu2 %v6559_v26  ;;  %3640 = vmatmul.bf16.vlgmr.msra.gmra.mxu3 %v7903_v40 }
  0x99   : > { %v6286_v27 = vld [vmem:[%s7659_s6 + $0xcc0] sm:$0xf]  ;;  %v7892_v31 = vor.u32 %v6718_v13, %v4622_v12  ;;  %v7196_v34 = vld [vmem:[%s7659_s6 + $0xecc] sm:$0xf0]  ;;  %3688 = vmatpush.bf16.msrb.mxu3 %v6687_v30 }
  0x9a   : > { %v6414_v29 = vld [vmem:[%s7659_s6 + $0xdc0] sm:$0xf]  ;;  %v7228_v38 = vld [vmem:[%s7659_s6 + $0xfcc] sm:$0xf0]  ;;  %v6287_v41 = vor.u32 %v7132_v28, %v6286_v27 }
  0x9b   : > { %v6542_v33 = vld [vmem:[%s7659_s6 + $0xec0] sm:$0xf]  ;;  %v6415_v42 = vor.u32 %v7164_v32, %v6414_v29  ;;  %v7128_v48 = vld [vmem:[%s7659_s6 + $0xcac] sm:$0xf0]  ;;  %3598 = vmatmul.bf16.vlgmr.msra.gmra.mxu0 %v7892_v31 }
  0x9c   : > { %v6670_v37 = vld [vmem:[%s7659_s6 + $0xfc0] sm:$0xf]  ;;  %v6543_v45 = vor.u32 %v7196_v34, %v6542_v33  ;;  %v7160_v51 = vld [vmem:[%s7659_s6 + $0xdac] sm:$0xf0]  ;;  %3647 = vmatpush.bf16.msrb.mxu0 %v6287_v41 }
  0x9d   : > { %v6270_v46 = vld [vmem:[%s7659_s6 + $0xca0] sm:$0xf]  ;;  %v6671_v50 = vor.u32 %v7228_v38, %v6670_v37  ;;  %v7192_v53 = vld [vmem:[%s7659_s6 + $0xeac] sm:$0xf0]  ;;  %3661 = vmatpush.bf16.msrb.mxu1 %v6415_v42 }
  0x9e   : > { %v6398_v49 = vld [vmem:[%s7659_s6 + $0xda0] sm:$0xf]  ;;  %v7224_v55 = vld [vmem:[%s7659_s6 + $0xfac] sm:$0xf0]  ;;  %v6271_v56 = vor.u32 %v7128_v48, %v6270_v46  ;;  %3675 = vmatpush.bf16.msrb.mxu2 %v6543_v45 }
  0x9f   : > { %v6526_v52 = vld [vmem:[%s7659_s6 + $0xea0] sm:$0xf]  ;;  %v6399_v57 = vor.u32 %v7160_v51, %v6398_v49  ;;  %v7124_v61 = vld [vmem:[%s7659_s6 + $0xc8c] sm:$0xf0]  ;;  %3689 = vmatpush.bf16.msrb.mxu3 %v6671_v50 }
  0xa0   : > { %v6654_v54 = vld [vmem:[%s7659_s6 + $0xfa0] sm:$0xf]  ;;  %v6527_v59 = vor.u32 %v7192_v53, %v6526_v52  ;;  %v7156_v0 = vld [vmem:[%s7659_s6 + $0xd8c] sm:$0xf0]  ;;  %3648 = vmatpush.bf16.msrb.mxu0 %v6271_v56 }
  0xa1   : > { %v6254_v60 = vld [vmem:[%s7659_s6 + $0xc80] sm:$0xf]  ;;  %v6655_v63 = vor.u32 %v7224_v55, %v6654_v54  ;;  %v7188_v3 = vld [vmem:[%s7659_s6 + $0xe8c] sm:$0xf0]  ;;  %3662 = vmatpush.bf16.msrb.mxu1 %v6399_v57 }
  0xa2   : > { %v6382_v62 = vld [vmem:[%s7659_s6 + $0xd80] sm:$0xf]  ;;  %v7220_v5 = vld [vmem:[%s7659_s6 + $0xf8c] sm:$0xf0]  ;;  %v6255_v6 = vor.u32 %v7124_v61, %v6254_v60  ;;  %3676 = vmatpush.bf16.msrb.mxu2 %v6527_v59 }
  0xa3   : > { %v6510_v2 = vld [vmem:[%s7659_s6 + $0xe80] sm:$0xf]  ;;  %v6383_v7 = vor.u32 %v7156_v0, %v6382_v62  ;;  %v7120_v11 = vld [vmem:[%s7659_s6 + $0xc6c] sm:$0xf0]  ;;  %3690 = vmatpush.bf16.msrb.mxu3 %v6655_v63  ;;  %v6750_v0 = vld [vmem:[%s7659_s6 + $0xe4] sm:$0xf] }
  0xa4   : > { %v6638_v4 = vld [vmem:[%s7659_s6 + $0xf80] sm:$0xf]  ;;  %v6511_v8 = vor.u32 %v7188_v3, %v6510_v2  ;;  %v7152_v14 = vld [vmem:[%s7659_s6 + $0xd6c] sm:$0xf0]  ;;  %3649 = vmatpush.bf16.msrb.mxu0 %v6255_v6  ;;  %v4768_v3 = vld [vmem:[%s7659_s6 + $0xf0] sm:$0xf0] }
  0xa5   : > { %v6238_v9 = vld [vmem:[%s7659_s6 + $0xc60] sm:$0xf]  ;;  %v6639_v13 = vor.u32 %v7220_v5, %v6638_v4  ;;  %v7184_v16 = vld [vmem:[%s7659_s6 + $0xe6c] sm:$0xf0]  ;;  %3663 = vmatpush.bf16.msrb.mxu1 %v6383_v7  ;;  %v6782_v4 = vld [vmem:[%s7659_s6 + $0x1e4] sm:$0xf] }
  0xa6   : > { %v6366_v12 = vld [vmem:[%s7659_s6 + $0xd60] sm:$0xf]  ;;  %v7216_v19 = vld [vmem:[%s7659_s6 + $0xf6c] sm:$0xf0]  ;;  %v6239_v20 = vor.u32 %v7120_v11, %v6238_v9  ;;  %3677 = vmatpush.bf16.msrb.mxu2 %v6511_v8  ;;  %v4896_v5 = vld [vmem:[%s7659_s6 + $0x1f0] sm:$0xf0] }
  0xa7   : > { %v6494_v15 = vld [vmem:[%s7659_s6 + $0xe60] sm:$0xf]  ;;  %v6367_v21 = vor.u32 %v7152_v14, %v6366_v12  ;;  %v7116_v24 = vld [vmem:[%s7659_s6 + $0xc4c] sm:$0xf0]  ;;  %3691 = vmatpush.bf16.msrb.mxu3 %v6639_v13  ;;  %v6814_v6 = vld [vmem:[%s7659_s6 + $0x2e4] sm:$0xf] }
  0xa8   : > { %v6622_v18 = vld [vmem:[%s7659_s6 + $0xf60] sm:$0xf]  ;;  %v6495_v22 = vor.u32 %v7184_v16, %v6494_v15  ;;  %v7148_v27 = vld [vmem:[%s7659_s6 + $0xd4c] sm:$0xf0]  ;;  %3650 = vmatpush.bf16.msrb.mxu0 %v6239_v20  ;;  %v5024_v7 = vld [vmem:[%s7659_s6 + $0x2f0] sm:$0xf0] }
  0xa9   : > { %v6222_v23 = vld [vmem:[%s7659_s6 + $0xc40] sm:$0xf]  ;;  %v6623_v26 = vor.u32 %v7216_v19, %v6622_v18  ;;  %v7180_v29 = vld [vmem:[%s7659_s6 + $0xe4c] sm:$0xf0]  ;;  %3664 = vmatpush.bf16.msrb.mxu1 %v6367_v21  ;;  %v6846_v8 = vld [vmem:[%s7659_s6 + $0x3e4] sm:$0xf]  ;;  %v4771_v21 = vor.u32 %v6750_v0, %v4768_v3 }
  0xaa   : > { %v6350_v25 = vld [vmem:[%s7659_s6 + $0xd40] sm:$0xf]  ;;  %v7212_v32 = vld [vmem:[%s7659_s6 + $0xf4c] sm:$0xf0]  ;;  %v6223_v33 = vor.u32 %v7116_v24, %v6222_v23  ;;  %3678 = vmatpush.bf16.msrb.mxu2 %v6495_v22  ;;  %v5152_v11 = vld [vmem:[%s7659_s6 + $0x3f0] sm:$0xf0] }
  0xab   : > { %v6478_v28 = vld [vmem:[%s7659_s6 + $0xe40] sm:$0xf]  ;;  %v6351_v37 = vor.u32 %v7148_v27, %v6350_v25  ;;  %v7112_v41 = vld [vmem:[%s7659_s6 + $0xc2c] sm:$0xf0]  ;;  %3692 = vmatpush.bf16.msrb.mxu3 %v6623_v26  ;;  %v4646_v16 = vld [vmem:[#allocation3 + $0x38] sm:$0xf]  ;;  %v4899_v25 = vor.u32 %v6782_v4, %v4896_v5  ;;  %v5027_v26 = vor.u32 %v6814_v6, %v5024_v7 }
  0xac   : > { %v6606_v30 = vld [vmem:[%s7659_s6 + $0xf40] sm:$0xf]  ;;  %v6479_v38 = vor.u32 %v7180_v29, %v6478_v28  ;;  %v7144_v45 = vld [vmem:[%s7659_s6 + $0xd2c] sm:$0xf0]  ;;  %3651 = vmatpush.bf16.msrb.mxu0 %v6223_v33  ;;  %v6721_v18 = vld [vmem:[#allocation3 + $0x74] sm:$0xf0] }
  0xad   : > { %v6206_v34 = vld [vmem:[%s7659_s6 + $0xc20] sm:$0xf]  ;;  %v6607_v46 = vor.u32 %v7212_v32, %v6606_v30  ;;  %v7176_v49 = vld [vmem:[%s7659_s6 + $0xe2c] sm:$0xf0]  ;;  %3665 = vmatpush.bf16.msrb.mxu1 %v6351_v37  ;;  %v6712_v19 = vld [vmem:[#allocation3 + $0x34] sm:$0xf]  ;;  %v5155_v30 = vor.u32 %v6846_v8, %v5152_v11 }
  0xae   : > { %v6334_v42 = vld [vmem:[%s7659_s6 + $0xd20] sm:$0xf]  ;;  %v7208_v51 = vld [vmem:[%s7659_s6 + $0xf2c] sm:$0xf0]  ;;  %v6207_v54 = vor.u32 %v7112_v41, %v6206_v34  ;;  %3679 = vmatpush.bf16.msrb.mxu2 %v6479_v38  ;;  %v4640_v22 = vld [vmem:[#allocation3 + $0x70] sm:$0xf0]  ;;  %v7973_v38 = vor.u32 %v6721_v18, %v4646_v16 }
  0xaf   : > { %v6462_v48 = vld [vmem:[%s7659_s6 + $0xe20] sm:$0xf]  ;;  %v7108_v53 = vld [vmem:[%s7659_s6 + $0xc0c] sm:$0xf0]  ;;  %v6335_v60 = vor.u32 %v7144_v45, %v6334_v42  ;;  %3693 = vmatpush.bf16.msrb.mxu3 %v6607_v46  ;;  %v6713_v23 = vld [vmem:[#allocation3 + $0x3c] sm:$0xf]  ;;  %v7975_v41 = vor.u32 %v6712_v19, %v4640_v22 }
  0xb0   : > { %v6590_v50 = vld [vmem:[%s7659_s6 + $0xf20] sm:$0xf]  ;;  %v7140_v56 = vld [vmem:[%s7659_s6 + $0xd0c] sm:$0xf0]  ;;  %v6463_v61 = vor.u32 %v7176_v49, %v6462_v48  ;;  %3652 = vmatpush.bf16.msrb.mxu0 %v6207_v54  ;;  %v4648_v24 = vld [vmem:[#allocation3 + $0x78] sm:$0xf0] }
  0xb1   : > { %v6190_v52 = vld [vmem:[%s7659_s6 + $0xc00] sm:$0xf]  ;;  %v7172_v59 = vld [vmem:[%s7659_s6 + $0xe0c] sm:$0xf0]  ;;  %v6591_v2 = vor.u32 %v7208_v51, %v6590_v50  ;;  %3666 = vmatpush.bf16.msrb.mxu1 %v6335_v60  ;;  %v6746_v27 = vld [vmem:[%s7659_s6 + $0xc4] sm:$0xf]  ;;  %v7979_v46 = vor.u32 %v6713_v23, %v4648_v24 }
  0xb2   : > { %v6318_v55 = vld [vmem:[%s7659_s6 + $0xd00] sm:$0xf]  ;;  %v7204_v63 = vld [vmem:[%s7659_s6 + $0xf0c] sm:$0xf0]  ;;  %v6191_v9 = vor.u32 %v7108_v53, %v6190_v52  ;;  %3680 = vmatpush.bf16.msrb.mxu2 %v6463_v61  ;;  %v4752_v28 = vld [vmem:[%s7659_s6 + $0xd0] sm:$0xf0] }
  0xb3   : > { %v6446_v57 = vld [vmem:[%s7659_s6 + $0xe00] sm:$0xf]  ;;  %v4638_v12 = vld [vmem:[#allocation3 + $0x30] sm:$0xf]  ;;  %v6319_v14 = vor.u32 %v7140_v56, %v6318_v55  ;;  %3694 = vmatpush.bf16.msrb.mxu3 %v6591_v2  ;;  %v6778_v29 = vld [vmem:[%s7659_s6 + $0x1c4] sm:$0xf]  ;;  %v4755_v48 = vor.u32 %v6746_v27, %v4752_v28 }
  0xb4   : > { %v6574_v62 = vld [vmem:[%s7659_s6 + $0xf00] sm:$0xf]  ;;  %v6720_v13 = vld [vmem:[#allocation3 + $0x6c] sm:$0xf0]  ;;  %v6447_v15 = vor.u32 %v7172_v59, %v6446_v57  ;;  %3653 = vmatpush.bf16.msrb.mxu0 %v6191_v9  ;;  %v4880_v33 = vld [vmem:[%s7659_s6 + $0x1d0] sm:$0xf0] }
  0xb5   : > { %v6575_v20 = vor.u32 %v7204_v63, %v6574_v62  ;;  %v7968_v32 = vor.u32 %v6720_v13, %v4638_v12  ;;  %v6810_v34 = vld [vmem:[%s7659_s6 + $0x2c4] sm:$0xf]  ;;  %v5008_v37 = vld [vmem:[%s7659_s6 + $0x2d0] sm:$0xf0]  ;;  %3667 = vmatpush.bf16.msrb.mxu1 %v6319_v14  ;;  %v4883_v49 = vor.u32 %v6778_v29, %v4880_v33 }
  0xb6   : > { %3681 = vmatpush.bf16.msrb.mxu2 %v6447_v15  ;;  %v6842_v42 = vld [vmem:[%s7659_s6 + $0x3c4] sm:$0xf]  ;;  %v5136_v45 = vld [vmem:[%s7659_s6 + $0x3d0] sm:$0xf0]  ;;  %v5011_v50 = vor.u32 %v6810_v34, %v5008_v37 }
  0xb7   : > { %3695 = vmatpush.bf16.msrb.mxu3 %v6575_v20  ;;  %v6742_v51 = vld [vmem:[%s7659_s6 + $0xa4] sm:$0xf]  ;;  %v4736_v52 = vld [vmem:[%s7659_s6 + $0xb0] sm:$0xf0]  ;;  %3654 = vmatmul.bf16.vlgmr.msrb.gmra.mxu0 %v7968_v32  ;;  %v5139_v54 = vor.u32 %v6842_v42, %v5136_v45 }
  0xb8   : > { %3702 = vmatpush.bf16.msra.mxu0 %v4771_v21  ;;  %v6774_v53 = vld [vmem:[%s7659_s6 + $0x1a4] sm:$0xf]  ;;  %v4864_v55 = vld [vmem:[%s7659_s6 + $0x1b0] sm:$0xf0]  ;;  %3668 = vmatmul.bf16.vlgmr.msrb.gmra.mxu1 %v7975_v41  ;;  %v4739_v61 = vor.u32 %v6742_v51, %v4736_v52 }
  0xb9   : > { %3716 = vmatpush.bf16.msra.mxu1 %v4899_v25  ;;  %v6806_v56 = vld [vmem:[%s7659_s6 + $0x2a4] sm:$0xf]  ;;  %v4992_v57 = vld [vmem:[%s7659_s6 + $0x2b0] sm:$0xf0]  ;;  %3682 = vmatmul.bf16.vlgmr.msrb.gmra.mxu2 %v7973_v38  ;;  %v4867_v62 = vor.u32 %v6774_v53, %v4864_v55 }
  0xba   : > { %3730 = vmatpush.bf16.msra.mxu2 %v5027_v26  ;;  %v6838_v59 = vld [vmem:[%s7659_s6 + $0x3a4] sm:$0xf]  ;;  %v5120_v60 = vld [vmem:[%s7659_s6 + $0x3b0] sm:$0xf0]  ;;  %3696 = vmatmul.bf16.vlgmr.msrb.gmra.mxu3 %v7979_v46  ;;  %v4995_v63 = vor.u32 %v6806_v56, %v4992_v57 }
  0xbb   : > { %3744 = vmatpush.bf16.msra.mxu3 %v5155_v30  ;;  %v6738_v0 = vld [vmem:[%s7659_s6 + $0x84] sm:$0xf]  ;;  %v4720_v2 = vld [vmem:[%s7659_s6 + $0x90] sm:$0xf0]  ;;  %v5123_v4 = vor.u32 %v6838_v59, %v5120_v60 }
  0xbc   : > { %3703 = vmatpush.bf16.msra.mxu0 %v4755_v48  ;;  %v6770_v3 = vld [vmem:[%s7659_s6 + $0x184] sm:$0xf]  ;;  %v4848_v5 = vld [vmem:[%s7659_s6 + $0x190] sm:$0xf0]  ;;  %v4723_v11 = vor.u32 %v6738_v0, %v4720_v2 }
  0xbd   : > { %3717 = vmatpush.bf16.msra.mxu1 %v4883_v49  ;;  %v6802_v6 = vld [vmem:[%s7659_s6 + $0x284] sm:$0xf]  ;;  %v4976_v7 = vld [vmem:[%s7659_s6 + $0x290] sm:$0xf0]  ;;  %v4851_v12 = vor.u32 %v6770_v3, %v4848_v5 }
  0xbe   : > { %3731 = vmatpush.bf16.msra.mxu2 %v5011_v50  ;;  %v6834_v8 = vld [vmem:[%s7659_s6 + $0x384] sm:$0xf]  ;;  %v5104_v9 = vld [vmem:[%s7659_s6 + $0x390] sm:$0xf0]  ;;  %v4979_v13 = vor.u32 %v6802_v6, %v4976_v7 }
  0xbf   : > { %3745 = vmatpush.bf16.msra.mxu3 %v5139_v54  ;;  %v6734_v14 = vld [vmem:[%s7659_s6 + $0x64] sm:$0xf]  ;;  %v4704_v15 = vld [vmem:[%s7659_s6 + $0x70] sm:$0xf0]  ;;  %v5107_v18 = vor.u32 %v6834_v8, %v5104_v9 }
  0xc0   : > { %3704 = vmatpush.bf16.msra.mxu0 %v4739_v61  ;;  %v6766_v16 = vld [vmem:[%s7659_s6 + $0x164] sm:$0xf]  ;;  %v4832_v19 = vld [vmem:[%s7659_s6 + $0x170] sm:$0xf0]  ;;  %v4707_v24 = vor.u32 %v6734_v14, %v4704_v15 }
  0xc1   : > { %3718 = vmatpush.bf16.msra.mxu1 %v4867_v62  ;;  %v6798_v20 = vld [vmem:[%s7659_s6 + $0x264] sm:$0xf]  ;;  %v4960_v21 = vld [vmem:[%s7659_s6 + $0x270] sm:$0xf0]  ;;  %v4835_v25 = vor.u32 %v6766_v16, %v4832_v19 }
  0xc2   : > { %3732 = vmatpush.bf16.msra.mxu2 %v4995_v63  ;;  %v6830_v22 = vld [vmem:[%s7659_s6 + $0x364] sm:$0xf]  ;;  %v5088_v23 = vld [vmem:[%s7659_s6 + $0x370] sm:$0xf0]  ;;  %v4963_v26 = vor.u32 %v6798_v20, %v4960_v21 }
  0xc3   : > { %3746 = vmatpush.bf16.msra.mxu3 %v5123_v4  ;;  %v6730_v27 = vld [vmem:[%s7659_s6 + $0x44] sm:$0xf]  ;;  %v4688_v28 = vld [vmem:[%s7659_s6 + $0x50] sm:$0xf0]  ;;  %v5091_v30 = vor.u32 %v6830_v22, %v5088_v23 }
  0xc4   : > { %3705 = vmatpush.bf16.msra.mxu0 %v4723_v11  ;;  %v6762_v29 = vld [vmem:[%s7659_s6 + $0x144] sm:$0xf]  ;;  %v4816_v33 = vld [vmem:[%s7659_s6 + $0x150] sm:$0xf0]  ;;  %v4691_v48 = vor.u32 %v6730_v27, %v4688_v28 }
  0xc5   : > { %3719 = vmatpush.bf16.msra.mxu1 %v4851_v12  ;;  %v6794_v34 = vld [vmem:[%s7659_s6 + $0x244] sm:$0xf]  ;;  %v4944_v37 = vld [vmem:[%s7659_s6 + $0x250] sm:$0xf0]  ;;  %v4819_v49 = vor.u32 %v6762_v29, %v4816_v33 }
  0xc6   : > { %3733 = vmatpush.bf16.msra.mxu2 %v4979_v13  ;;  %v6826_v42 = vld [vmem:[%s7659_s6 + $0x344] sm:$0xf]  ;;  %v5072_v45 = vld [vmem:[%s7659_s6 + $0x350] sm:$0xf0]  ;;  %v4947_v50 = vor.u32 %v6794_v34, %v4944_v37 }
  0xc7   : > { %3747 = vmatpush.bf16.msra.mxu3 %v5107_v18  ;;  %v6726_v51 = vld [vmem:[%s7659_s6 + $0x24] sm:$0xf]  ;;  %v4672_v52 = vld [vmem:[%s7659_s6 + $0x30] sm:$0xf0]  ;;  %v5075_v54 = vor.u32 %v6826_v42, %v5072_v45 }
  0xc8   : > { %3706 = vmatpush.bf16.msra.mxu0 %v4707_v24  ;;  %v6758_v53 = vld [vmem:[%s7659_s6 + $0x124] sm:$0xf]  ;;  %v4800_v55 = vld [vmem:[%s7659_s6 + $0x130] sm:$0xf0]  ;;  %v4675_v61 = vor.u32 %v6726_v51, %v4672_v52 }
  0xc9   : > { %3720 = vmatpush.bf16.msra.mxu1 %v4835_v25  ;;  %v6790_v56 = vld [vmem:[%s7659_s6 + $0x224] sm:$0xf]  ;;  %v4928_v57 = vld [vmem:[%s7659_s6 + $0x230] sm:$0xf0]  ;;  %v4803_v0 = vor.u32 %v6758_v53, %v4800_v55 }
  0xca   : > { %3734 = vmatpush.bf16.msra.mxu2 %v4963_v26  ;;  %v6822_v59 = vld [vmem:[%s7659_s6 + $0x324] sm:$0xf]  ;;  %v5056_v60 = vld [vmem:[%s7659_s6 + $0x330] sm:$0xf0]  ;;  %v4931_v2 = vor.u32 %v6790_v56, %v4928_v57 }
  0xcb   : > { %3748 = vmatpush.bf16.msra.mxu3 %v5091_v30  ;;  %v6722_v62 = vld [vmem:[%s7659_s6 + $0x4] sm:$0xf]  ;;  %v4656_v63 = vld [vmem:[%s7659_s6 + $0x10] sm:$0xf0]  ;;  %v5059_v6 = vor.u32 %v6822_v59, %v5056_v60 }
  0xcc   : > { %3707 = vmatpush.bf16.msra.mxu0 %v4691_v48  ;;  %v6754_v3 = vld [vmem:[%s7659_s6 + $0x104] sm:$0xf]  ;;  %v4784_v4 = vld [vmem:[%s7659_s6 + $0x110] sm:$0xf0]  ;;  %v4659_v14 = vor.u32 %v6722_v62, %v4656_v63 }
  0xcd   : > { %3721 = vmatpush.bf16.msra.mxu1 %v4819_v49  ;;  %v6786_v5 = vld [vmem:[%s7659_s6 + $0x204] sm:$0xf]  ;;  %v4912_v7 = vld [vmem:[%s7659_s6 + $0x210] sm:$0xf0]  ;;  %v4787_v19 = vor.u32 %v6754_v3, %v4784_v4 }
  0xce   : > { %3735 = vmatpush.bf16.msra.mxu2 %v4947_v50  ;;  %v6818_v8 = vld [vmem:[%s7659_s6 + $0x304] sm:$0xf]  ;;  %v5040_v9 = vld [vmem:[%s7659_s6 + $0x310] sm:$0xf0]  ;;  %v4915_v20 = vor.u32 %v6786_v5, %v4912_v7 }
  0xcf   : > { %3749 = vmatpush.bf16.msra.mxu3 %v5075_v54  ;;  %v6878_v11 = vld [vmem:[%s7659_s6 + $0x4e4] sm:$0xf]  ;;  %v5280_v12 = vld [vmem:[%s7659_s6 + $0x4f0] sm:$0xf0]  ;;  %v5043_v23 = vor.u32 %v6818_v8, %v5040_v9 }
  0xd0   : > { %v6910_v13 = vld [vmem:[%s7659_s6 + $0x5e4] sm:$0xf]  ;;  %3708 = vmatpush.bf16.msra.mxu0 %v4675_v61  ;;  %v5408_v15 = vld [vmem:[%s7659_s6 + $0x5f0] sm:$0xf0]  ;;  %v5283_v24 = vor.u32 %v6878_v11, %v5280_v12 }
  0xd1   : > { %v6942_v16 = vld [vmem:[%s7659_s6 + $0x6e4] sm:$0xf]  ;;  %v5536_v18 = vld [vmem:[%s7659_s6 + $0x6f0] sm:$0xf0]  ;;  %3722 = vmatpush.bf16.msra.mxu1 %v4803_v0  ;;  %v5411_v25 = vor.u32 %v6910_v13, %v5408_v15 }
  0xd2   : > { %3736 = vmatpush.bf16.msra.mxu2 %v4931_v2  ;;  %v6974_v21 = vld [vmem:[%s7659_s6 + $0x7e4] sm:$0xf]  ;;  %v5664_v22 = vld [vmem:[%s7659_s6 + $0x7f0] sm:$0xf0]  ;;  %v5539_v26 = vor.u32 %v6942_v16, %v5536_v18 }
  0xd3   : > { %3750 = vmatpush.bf16.msra.mxu3 %v5059_v6  ;;  %v6874_v27 = vld [vmem:[%s7659_s6 + $0x4c4] sm:$0xf]  ;;  %v5264_v28 = vld [vmem:[%s7659_s6 + $0x4d0] sm:$0xf0]  ;;  %v5667_v30 = vor.u32 %v6974_v21, %v5664_v22 }
  0xd4   : > { %v6906_v29 = vld [vmem:[%s7659_s6 + $0x5c4] sm:$0xf]  ;;  %3709 = vmatpush.bf16.msra.mxu0 %v4659_v14  ;;  %v5392_v33 = vld [vmem:[%s7659_s6 + $0x5d0] sm:$0xf0]  ;;  %v5267_v48 = vor.u32 %v6874_v27, %v5264_v28 }
  0xd5   : > { %v6938_v34 = vld [vmem:[%s7659_s6 + $0x6c4] sm:$0xf]  ;;  %v5520_v37 = vld [vmem:[%s7659_s6 + $0x6d0] sm:$0xf0]  ;;  %3723 = vmatpush.bf16.msra.mxu1 %v4787_v19  ;;  %v5395_v49 = vor.u32 %v6906_v29, %v5392_v33 }
  0xd6   : > { %3737 = vmatpush.bf16.msra.mxu2 %v4915_v20  ;;  %v6970_v42 = vld [vmem:[%s7659_s6 + $0x7c4] sm:$0xf]  ;;  %v5648_v45 = vld [vmem:[%s7659_s6 + $0x7d0] sm:$0xf0]  ;;  %v5523_v50 = vor.u32 %v6938_v34, %v5520_v37 }
  0xd7   : > { %3751 = vmatpush.bf16.msra.mxu3 %v5043_v23  ;;  %v6870_v51 = vld [vmem:[%s7659_s6 + $0x4a4] sm:$0xf]  ;;  %v5248_v52 = vld [vmem:[%s7659_s6 + $0x4b0] sm:$0xf0]  ;;  %v5651_v54 = vor.u32 %v6970_v42, %v5648_v45  ;;  %3710 = vmatmul.bf16.vlgmr.msra.gmra.mxu0 %v7747_v58 }
  0xd8   : > { %3758 = vmatpush.bf16.msrb.mxu0 %v5283_v24  ;;  %v6902_v53 = vld [vmem:[%s7659_s6 + $0x5a4] sm:$0xf]  ;;  %v5376_v55 = vld [vmem:[%s7659_s6 + $0x5b0] sm:$0xf0]  ;;  %3724 = vmatmul.bf16.vlgmr.msra.gmra.mxu1 %v7759_v10  ;;  %v5251_v61 = vor.u32 %v6870_v51, %v5248_v52 }
  0xd9   : > { %3772 = vmatpush.bf16.msrb.mxu1 %v5411_v25  ;;  %v6934_v56 = vld [vmem:[%s7659_s6 + $0x6a4] sm:$0xf]  ;;  %v5504_v57 = vld [vmem:[%s7659_s6 + $0x6b0] sm:$0xf0]  ;;  %3738 = vmatmul.bf16.vlgmr.msra.gmra.mxu2 %v7752_v1  ;;  %v5379_v62 = vor.u32 %v6902_v53, %v5376_v55  ;;  %v3501_v25 = vpop.f32.mrf.mxu1 }
  0xda   : > { %3786 = vmatpush.bf16.msrb.mxu2 %v5539_v26  ;;  %v6966_v59 = vld [vmem:[%s7659_s6 + $0x7a4] sm:$0xf]  ;;  %v5632_v60 = vld [vmem:[%s7659_s6 + $0x7b0] sm:$0xf0]  ;;  %3752 = vmatmul.bf16.vlgmr.msra.gmra.mxu3 %v7764_v17  ;;  %v5507_v63 = vor.u32 %v6934_v56, %v5504_v57  ;;  %v3487_v24 = vpop.f32.mrf.mxu0 }
  0xdb   : > { %3800 = vmatpush.bf16.msrb.mxu3 %v5667_v30  ;;  %v6866_v0 = vld [vmem:[%s7659_s6 + $0x484] sm:$0xf]  ;;  %v5232_v2 = vld [vmem:[%s7659_s6 + $0x490] sm:$0xf0]  ;;  %v5635_v4 = vor.u32 %v6966_v59, %v5632_v60  ;;  %v3502_v27 = vadd.f32 %v3501_v25, %v3487_v24 }
  0xdc   : > { %3759 = vmatpush.bf16.msrb.mxu0 %v5267_v48  ;;  %v6898_v3 = vld [vmem:[%s7659_s6 + $0x584] sm:$0xf]  ;;  %v5360_v5 = vld [vmem:[%s7659_s6 + $0x590] sm:$0xf0]  ;;  %v5235_v11 = vor.u32 %v6866_v0, %v5232_v2  ;;  %v3529_v0 = vpop.f32.mrf.mxu3 }
  0xdd   : > { %3773 = vmatpush.bf16.msrb.mxu1 %v5395_v49  ;;  %v6930_v6 = vld [vmem:[%s7659_s6 + $0x684] sm:$0xf]  ;;  %v5488_v7 = vld [vmem:[%s7659_s6 + $0x690] sm:$0xf0]  ;;  %v5363_v12 = vor.u32 %v6898_v3, %v5360_v5  ;;  %v3515_v49 = vpop.f32.mrf.mxu2 }
  0xde   : > { %3787 = vmatpush.bf16.msrb.mxu2 %v5523_v50  ;;  %v6962_v8 = vld [vmem:[%s7659_s6 + $0x784] sm:$0xf]  ;;  %v5616_v9 = vld [vmem:[%s7659_s6 + $0x790] sm:$0xf0]  ;;  %v5491_v13 = vor.u32 %v6930_v6, %v5488_v7  ;;  %v3516_v52 = vadd.f32 %v3515_v49, %v3502_v27 }
  0xdf   : > { %3801 = vmatpush.bf16.msrb.mxu3 %v5651_v54  ;;  %v6862_v14 = vld [vmem:[%s7659_s6 + $0x464] sm:$0xf]  ;;  %v5216_v15 = vld [vmem:[%s7659_s6 + $0x470] sm:$0xf0]  ;;  %v5619_v18 = vor.u32 %v6962_v8, %v5616_v9 }
  0xe0   : > { %3760 = vmatpush.bf16.msrb.mxu0 %v5251_v61  ;;  %v6894_v16 = vld [vmem:[%s7659_s6 + $0x564] sm:$0xf]  ;;  %v5344_v19 = vld [vmem:[%s7659_s6 + $0x570] sm:$0xf0]  ;;  %v5219_v26 = vor.u32 %v6862_v14, %v5216_v15 }
  0xe1   : > { %3774 = vmatpush.bf16.msrb.mxu1 %v5379_v62  ;;  %v6926_v20 = vld [vmem:[%s7659_s6 + $0x664] sm:$0xf]  ;;  %v5472_v21 = vld [vmem:[%s7659_s6 + $0x670] sm:$0xf0]  ;;  %v5347_v28 = vor.u32 %v6894_v16, %v5344_v19 }
  0xe2   : > { %3788 = vmatpush.bf16.msrb.mxu2 %v5507_v63  ;;  %v6958_v22 = vld [vmem:[%s7659_s6 + $0x764] sm:$0xf]  ;;  %v5600_v23 = vld [vmem:[%s7659_s6 + $0x770] sm:$0xf0]  ;;  %v5475_v29 = vor.u32 %v6926_v20, %v5472_v21 }
  0xe3   : > { %3802 = vmatpush.bf16.msrb.mxu3 %v5635_v4  ;;  %v6858_v30 = vld [vmem:[%s7659_s6 + $0x444] sm:$0xf]  ;;  %v5200_v33 = vld [vmem:[%s7659_s6 + $0x450] sm:$0xf0]  ;;  %v5603_v37 = vor.u32 %v6958_v22, %v5600_v23  ;;  %v8093_v4 = vadd.f32 %v3529_v0, %v3516_v52 }
  0xe4   : > { %3761 = vmatpush.bf16.msrb.mxu0 %v5235_v11  ;;  %v6890_v34 = vld [vmem:[%s7659_s6 + $0x544] sm:$0xf]  ;;  %v5328_v42 = vld [vmem:[%s7659_s6 + $0x550] sm:$0xf0]  ;;  %v5203_v53 = vor.u32 %v6858_v30, %v5200_v33 }
  0xe5   : > { %3775 = vmatpush.bf16.msrb.mxu1 %v5363_v12  ;;  %v6922_v45 = vld [vmem:[%s7659_s6 + $0x644] sm:$0xf]  ;;  %v5456_v48 = vld [vmem:[%s7659_s6 + $0x650] sm:$0xf0]  ;;  %v5331_v54 = vor.u32 %v6890_v34, %v5328_v42  ;;  %v8111_v42 = vpop.f32.mrf.mxu0 }
  0xe6   : > { %3789 = vmatpush.bf16.msrb.mxu2 %v5491_v13  ;;  %v6954_v50 = vld [vmem:[%s7659_s6 + $0x744] sm:$0xf]  ;;  %v5584_v51 = vld [vmem:[%s7659_s6 + $0x750] sm:$0xf0]  ;;  %v5459_v55 = vor.u32 %v6922_v45, %v5456_v48 }
  0xe7   : > { %3803 = vmatpush.bf16.msrb.mxu3 %v5619_v18  ;;  %v6854_v56 = vld [vmem:[%s7659_s6 + $0x424] sm:$0xf]  ;;  %v5184_v57 = vld [vmem:[%s7659_s6 + $0x430] sm:$0xf0]  ;;  %v5587_v60 = vor.u32 %v6954_v50, %v5584_v51 }
  0xe8   : > { %3762 = vmatpush.bf16.msrb.mxu0 %v5219_v26  ;;  %v6886_v59 = vld [vmem:[%s7659_s6 + $0x524] sm:$0xf]  ;;  %v5312_v61 = vld [vmem:[%s7659_s6 + $0x530] sm:$0xf0]  ;;  %v5187_v5 = vor.u32 %v6854_v56, %v5184_v57  ;;  %v8121_v56 = vpop.f32.mrf.mxu1 }
  0xe9   : > { %3776 = vmatpush.bf16.msrb.mxu1 %v5347_v28  ;;  %v6918_v62 = vld [vmem:[%s7659_s6 + $0x624] sm:$0xf]  ;;  %v5440_v63 = vld [vmem:[%s7659_s6 + $0x630] sm:$0xf0]  ;;  %v5315_v8 = vor.u32 %v6886_v59, %v5312_v61 }
  0xea   : > { %3790 = vmatpush.bf16.msrb.mxu2 %v5475_v29  ;;  %v6950_v2 = vld [vmem:[%s7659_s6 + $0x724] sm:$0xf]  ;;  %v5568_v3 = vld [vmem:[%s7659_s6 + $0x730] sm:$0xf0]  ;;  %v5443_v9 = vor.u32 %v6918_v62, %v5440_v63 }
  0xeb   : > { %3804 = vmatpush.bf16.msrb.mxu3 %v5603_v37  ;;  %v6850_v6 = vld [vmem:[%s7659_s6 + $0x404] sm:$0xf]  ;;  %v5168_v7 = vld [vmem:[%s7659_s6 + $0x410] sm:$0xf0]  ;;  %v5571_v14 = vor.u32 %v6950_v2, %v5568_v3 }
  0xec   : > { %3763 = vmatpush.bf16.msrb.mxu0 %v5203_v53  ;;  %v6882_v11 = vld [vmem:[%s7659_s6 + $0x504] sm:$0xf]  ;;  %v5296_v12 = vld [vmem:[%s7659_s6 + $0x510] sm:$0xf0]  ;;  %v5171_v22 = vor.u32 %v6850_v6, %v5168_v7 }
  0xed   : > { %3777 = vmatpush.bf16.msrb.mxu1 %v5331_v54  ;;  %v6914_v13 = vld [vmem:[%s7659_s6 + $0x604] sm:$0xf]  ;;  %v5424_v15 = vld [vmem:[%s7659_s6 + $0x610] sm:$0xf0]  ;;  %v5299_v26 = vor.u32 %v6882_v11, %v5296_v12 }
  0xee   : > { %3791 = vmatpush.bf16.msrb.mxu2 %v5459_v55  ;;  %v6946_v16 = vld [vmem:[%s7659_s6 + $0x704] sm:$0xf]  ;;  %v5552_v18 = vld [vmem:[%s7659_s6 + $0x710] sm:$0xf0]  ;;  %v5427_v27 = vor.u32 %v6914_v13, %v5424_v15 }
  0xef   : > { %3805 = vmatpush.bf16.msrb.mxu3 %v5587_v60  ;;  %v7006_v19 = vld [vmem:[%s7659_s6 + $0x8e4] sm:$0xf]  ;;  %v5792_v20 = vld [vmem:[%s7659_s6 + $0x8f0] sm:$0xf0]  ;;  %v5555_v30 = vor.u32 %v6946_v16, %v5552_v18  ;;  %v8140_v18 = vpop.f32.mrf.mxu3 }
  0xf0   : > { %v7038_v21 = vld [vmem:[%s7659_s6 + $0x9e4] sm:$0xf]  ;;  %3764 = vmatpush.bf16.msrb.mxu0 %v5187_v5  ;;  %v5920_v23 = vld [vmem:[%s7659_s6 + $0x9f0] sm:$0xf0]  ;;  %v5795_v33 = vor.u32 %v7006_v19, %v5792_v20 }
  0xf1   : > { %v7070_v24 = vld [vmem:[%s7659_s6 + $0xae4] sm:$0xf]  ;;  %v6048_v25 = vld [vmem:[%s7659_s6 + $0xaf0] sm:$0xf0]  ;;  %3778 = vmatpush.bf16.msrb.mxu1 %v5315_v8  ;;  %v5923_v34 = vor.u32 %v7038_v21, %v5920_v23 }
  0xf2   : > { %3792 = vmatpush.bf16.msrb.mxu2 %v5443_v9  ;;  %v7102_v28 = vld [vmem:[%s7659_s6 + $0xbe4] sm:$0xf]  ;;  %v6176_v29 = vld [vmem:[%s7659_s6 + $0xbf0] sm:$0xf0]  ;;  %v6051_v37 = vor.u32 %v7070_v24, %v6048_v25  ;;  %v8135_v9 = vpop.f32.mrf.mxu2 }
  0xf3   : > { %3806 = vmatpush.bf16.msrb.mxu3 %v5571_v14  ;;  %v7002_v45 = vld [vmem:[%s7659_s6 + $0x8c4] sm:$0xf]  ;;  %v5776_v48 = vld [vmem:[%s7659_s6 + $0x8d0] sm:$0xf0]  ;;  %v6179_v50 = vor.u32 %v7102_v28, %v6176_v29  ;;  %v3557_v29 = vpop.f32.mrf.mxu1 }
  0xf4   : > { %v7034_v49 = vld [vmem:[%s7659_s6 + $0x9c4] sm:$0xf]  ;;  %3765 = vmatpush.bf16.msrb.mxu0 %v5171_v22  ;;  %v5904_v51 = vld [vmem:[%s7659_s6 + $0x9d0] sm:$0xf0]  ;;  %v5779_v57 = vor.u32 %v7002_v45, %v5776_v48 }
  0xf5   : > { %v7066_v52 = vld [vmem:[%s7659_s6 + $0xac4] sm:$0xf]  ;;  %v6032_v53 = vld [vmem:[%s7659_s6 + $0xad0] sm:$0xf0]  ;;  %3779 = vmatpush.bf16.msrb.mxu1 %v5299_v26  ;;  %v5907_v59 = vor.u32 %v7034_v49, %v5904_v51 }
  0xf6   : > { %3793 = vmatpush.bf16.msrb.mxu2 %v5427_v27  ;;  %v7098_v54 = vld [vmem:[%s7659_s6 + $0xbc4] sm:$0xf]  ;;  %v6160_v55 = vld [vmem:[%s7659_s6 + $0xbd0] sm:$0xf0]  ;;  %v6035_v60 = vor.u32 %v7066_v52, %v6032_v53  ;;  %v3543_v22 = vpop.f32.mrf.mxu0 }
  0xf7   : > { %3807 = vmatpush.bf16.msrb.mxu3 %v5555_v30  ;;  %v6998_v61 = vld [vmem:[%s7659_s6 + $0x8a4] sm:$0xf]  ;;  %v5760_v62 = vld [vmem:[%s7659_s6 + $0x8b0] sm:$0xf0]  ;;  %3766 = vmatmul.bf16.vlgmr.msrb.gmra.mxu0 %v7816_v39  ;;  %v6163_v0 = vor.u32 %v7098_v54, %v6160_v55  ;;  %v3544_v25 = vadd.f32 %v3543_v22, %v8093_v4 }
  0xf8   : > { %3814 = vmatpush.bf16.msra.mxu0 %v5795_v33  ;;  %v7030_v63 = vld [vmem:[%s7659_s6 + $0x9a4] sm:$0xf]  ;;  %v5888_v2 = vld [vmem:[%s7659_s6 + $0x9b0] sm:$0xf0]  ;;  %3780 = vmatmul.bf16.vlgmr.msrb.gmra.mxu1 %v7823_v44  ;;  %v5763_v8 = vor.u32 %v6998_v61, %v5760_v62 }
  0xf9   : > { %3828 = vmatpush.bf16.msra.mxu1 %v5923_v34  ;;  %v7062_v3 = vld [vmem:[%s7659_s6 + $0xaa4] sm:$0xf]  ;;  %v6016_v5 = vld [vmem:[%s7659_s6 + $0xab0] sm:$0xf0]  ;;  %3794 = vmatmul.bf16.vlgmr.msrb.gmra.mxu2 %v7821_v43  ;;  %v5891_v11 = vor.u32 %v7030_v63, %v5888_v2  ;;  %v3558_v45 = vadd.f32 %v3557_v29, %v3544_v25 }
  0xfa   : > { %3842 = vmatpush.bf16.msra.mxu2 %v6051_v37  ;;  %v7094_v6 = vld [vmem:[%s7659_s6 + $0xba4] sm:$0xf]  ;;  %v6144_v7 = vld [vmem:[%s7659_s6 + $0xbb0] sm:$0xf0]  ;;  %3808 = vmatmul.bf16.vlgmr.msrb.gmra.mxu3 %v7827_v47  ;;  %v6019_v12 = vor.u32 %v7062_v3, %v6016_v5  ;;  %v3571_v61 = vpop.f32.mrf.mxu2 }
  0xfb   : > { %3856 = vmatpush.bf16.msra.mxu3 %v6179_v50  ;;  %v6994_v13 = vld [vmem:[%s7659_s6 + $0x884] sm:$0xf]  ;;  %v5744_v14 = vld [vmem:[%s7659_s6 + $0x890] sm:$0xf0]  ;;  %v6147_v16 = vor.u32 %v7094_v6, %v6144_v7  ;;  %v3572_v2 = vadd.f32 %v3571_v61, %v3558_v45  ;;  %v3585_v6 = vpop.f32.mrf.mxu3 }
  0xfc   : > { %3815 = vmatpush.bf16.msra.mxu0 %v5779_v57  ;;  %v7026_v15 = vld [vmem:[%s7659_s6 + $0x984] sm:$0xf]  ;;  %v5872_v19 = vld [vmem:[%s7659_s6 + $0x990] sm:$0xf0]  ;;  %v5747_v26 = vor.u32 %v6994_v13, %v5744_v14 }
  0xfd   : > { %3829 = vmatpush.bf16.msra.mxu1 %v5907_v59  ;;  %v7058_v20 = vld [vmem:[%s7659_s6 + $0xa84] sm:$0xf]  ;;  %v6000_v21 = vld [vmem:[%s7659_s6 + $0xa90] sm:$0xf0]  ;;  %v5875_v27 = vor.u32 %v7026_v15, %v5872_v19 }
  0xfe   : > { %3843 = vmatpush.bf16.msra.mxu2 %v6035_v60  ;;  %v7090_v23 = vld [vmem:[%s7659_s6 + $0xb84] sm:$0xf]  ;;  %v6128_v24 = vld [vmem:[%s7659_s6 + $0xb90] sm:$0xf0]  ;;  %v6003_v28 = vor.u32 %v7058_v20, %v6000_v21 }
  0xff   : > { %3857 = vmatpush.bf16.msra.mxu3 %v6163_v0  ;;  %v6990_v30 = vld [vmem:[%s7659_s6 + $0x864] sm:$0xf]  ;;  %v5728_v33 = vld [vmem:[%s7659_s6 + $0x870] sm:$0xf0]  ;;  %v6131_v37 = vor.u32 %v7090_v23, %v6128_v24 }
 0x100   : > { %3816 = vmatpush.bf16.msra.mxu0 %v5763_v8  ;;  %v7022_v34 = vld [vmem:[%s7659_s6 + $0x964] sm:$0xf]  ;;  %v5856_v48 = vld [vmem:[%s7659_s6 + $0x970] sm:$0xf0]  ;;  %v5731_v52 = vor.u32 %v6990_v30, %v5728_v33  ;;  %v8164_v8 = vadd.f32 %v3585_v6, %v3572_v2 }
 0x101   : > { %3830 = vmatpush.bf16.msra.mxu1 %v5891_v11  ;;  %v7054_v49 = vld [vmem:[%s7659_s6 + $0xa64] sm:$0xf]  ;;  %v5984_v4 = vld [vmem:[%s7659_s6 + $0xa70] sm:$0xf0]  ;;  %v5859_v53 = vor.u32 %v7022_v34, %v5856_v48 }
 0x102   : > { %3844 = vmatpush.bf16.msra.mxu2 %v6019_v12  ;;  %v7086_v50 = vld [vmem:[%s7659_s6 + $0xb64] sm:$0xf]  ;;  %v6112_v51 = vld [vmem:[%s7659_s6 + $0xb70] sm:$0xf0]  ;;  %v5987_v54 = vor.u32 %v7054_v49, %v5984_v4 }
 0x103   : > { %3858 = vmatpush.bf16.msra.mxu3 %v6147_v16  ;;  %v6986_v55 = vld [vmem:[%s7659_s6 + $0x844] sm:$0xf]  ;;  %v5712_v57 = vld [vmem:[%s7659_s6 + $0x850] sm:$0xf0]  ;;  %v6115_v60 = vor.u32 %v7086_v50, %v6112_v51 }
 0x104   : > { %3817 = vmatpush.bf16.msra.mxu0 %v5747_v26  ;;  %v7018_v59 = vld [vmem:[%s7659_s6 + $0x944] sm:$0xf]  ;;  %v5840_v62 = vld [vmem:[%s7659_s6 + $0x950] sm:$0xf0]  ;;  %v5715_v7 = vor.u32 %v6986_v55, %v5712_v57 }
 0x105   : > { %3831 = vmatpush.bf16.msra.mxu1 %v5875_v27  ;;  %v7050_v63 = vld [vmem:[%s7659_s6 + $0xa44] sm:$0xf]  ;;  %v5968_v0 = vld [vmem:[%s7659_s6 + $0xa50] sm:$0xf0]  ;;  %v5843_v11 = vor.u32 %v7018_v59, %v5840_v62 }
 0x106   : > { %3845 = vmatpush.bf16.msra.mxu2 %v6003_v28  ;;  %v7082_v3 = vld [vmem:[%s7659_s6 + $0xb44] sm:$0xf]  ;;  %v6096_v5 = vld [vmem:[%s7659_s6 + $0xb50] sm:$0xf0]  ;;  %v5971_v12 = vor.u32 %v7050_v63, %v5968_v0 }
 0x107   : > { %3859 = vmatpush.bf16.msra.mxu3 %v6131_v37  ;;  %v6982_v13 = vld [vmem:[%s7659_s6 + $0x824] sm:$0xf]  ;;  %v5696_v14 = vld [vmem:[%s7659_s6 + $0x830] sm:$0xf0]  ;;  %v6099_v16 = vor.u32 %v7082_v3, %v6096_v5 }
 0x108   : > { %3818 = vmatpush.bf16.msra.mxu0 %v5731_v52  ;;  %v7014_v15 = vld [vmem:[%s7659_s6 + $0x924] sm:$0xf]  ;;  %v5824_v19 = vld [vmem:[%s7659_s6 + $0x930] sm:$0xf0]  ;;  %v5699_v24 = vor.u32 %v6982_v13, %v5696_v14  ;;  %v8196_v13 = vpop.f32.mrf.mxu0 }
 0x109   : > { %3832 = vmatpush.bf16.msra.mxu1 %v5859_v53  ;;  %v7046_v20 = vld [vmem:[%s7659_s6 + $0xa24] sm:$0xf]  ;;  %v5952_v21 = vld [vmem:[%s7659_s6 + $0xa30] sm:$0xf0]  ;;  %v5827_v27 = vor.u32 %v7014_v15, %v5824_v19 }
 0x10a   : > { %3846 = vmatpush.bf16.msra.mxu2 %v5987_v54  ;;  %v7078_v22 = vld [vmem:[%s7659_s6 + $0xb24] sm:$0xf]  ;;  %v6080_v23 = vld [vmem:[%s7659_s6 + $0xb30] sm:$0xf0]  ;;  %v5955_v28 = vor.u32 %v7046_v20, %v5952_v21 }
 0x10b   : > { %3860 = vmatpush.bf16.msra.mxu3 %v6115_v60  ;;  %v6978_v25 = vld [vmem:[%s7659_s6 + $0x804] sm:$0xf]  ;;  %v5680_v26 = vld [vmem:[%s7659_s6 + $0x810] sm:$0xf0]  ;;  %v6083_v34 = vor.u32 %v7078_v22, %v6080_v23 }
 0x10c   : > { %3819 = vmatpush.bf16.msra.mxu0 %v5715_v7  ;;  %v7010_v29 = vld [vmem:[%s7659_s6 + $0x904] sm:$0xf]  ;;  %v5808_v30 = vld [vmem:[%s7659_s6 + $0x910] sm:$0xf0]  ;;  %v5683_v51 = vor.u32 %v6978_v25, %v5680_v26 }
 0x10d   : > { %3833 = vmatpush.bf16.msra.mxu1 %v5843_v11  ;;  %v7042_v33 = vld [vmem:[%s7659_s6 + $0xa04] sm:$0xf]  ;;  %v5936_v37 = vld [vmem:[%s7659_s6 + $0xa10] sm:$0xf0]  ;;  %v5811_v55 = vor.u32 %v7010_v29, %v5808_v30 }
 0x10e   : > { %3847 = vmatpush.bf16.msra.mxu2 %v5971_v12  ;;  %v7074_v45 = vld [vmem:[%s7659_s6 + $0xb04] sm:$0xf]  ;;  %v6064_v48 = vld [vmem:[%s7659_s6 + $0xb10] sm:$0xf0]  ;;  %v5939_v57 = vor.u32 %v7042_v33, %v5936_v37 }
 0x10f   : > { %3861 = vmatpush.bf16.msra.mxu3 %v6099_v16  ;;  %v7134_v49 = vld [vmem:[%s7659_s6 + $0xce4] sm:$0xf]  ;;  %v6304_v4 = vld [vmem:[%s7659_s6 + $0xcf0] sm:$0xf0]  ;;  %v6067_v61 = vor.u32 %v7074_v45, %v6064_v48  ;;  %v8200_v16 = vpop.f32.mrf.mxu1 }
 0x110   : > { %v7166_v50 = vld [vmem:[%s7659_s6 + $0xde4] sm:$0xf]  ;;  %3820 = vmatpush.bf16.msra.mxu0 %v5699_v24  ;;  %v6432_v52 = vld [vmem:[%s7659_s6 + $0xdf0] sm:$0xf0]  ;;  %v6307_v62 = vor.u32 %v7134_v49, %v6304_v4  ;;  %v8217_v4 = vpop.f32.mrf.mxu2 }
 0x111   : > { %v7198_v53 = vld [vmem:[%s7659_s6 + $0xee4] sm:$0xf]  ;;  %v6560_v54 = vld [vmem:[%s7659_s6 + $0xef0] sm:$0xf0]  ;;  %3834 = vmatpush.bf16.msra.mxu1 %v5827_v27  ;;  %v6435_v63 = vor.u32 %v7166_v50, %v6432_v52 }
 0x112   : > { %3848 = vmatpush.bf16.msra.mxu2 %v5955_v28  ;;  %v7230_v59 = vld [vmem:[%s7659_s6 + $0xfe4] sm:$0xf]  ;;  %v6688_v60 = vld [vmem:[%s7659_s6 + $0xff0] sm:$0xf0]  ;;  %v6563_v0 = vor.u32 %v7198_v53, %v6560_v54  ;;  %v8222_v54 = vpop.f32.mrf.mxu3 }
 0x113   : > { %3862 = vmatpush.bf16.msra.mxu3 %v6083_v34  ;;  %v7130_v2 = vld [vmem:[%s7659_s6 + $0xcc4] sm:$0xf]  ;;  %v6288_v3 = vld [vmem:[%s7659_s6 + $0xcd0] sm:$0xf0]  ;;  %v6691_v6 = vor.u32 %v7230_v59, %v6688_v60 }
 0x114   : > { %v7162_v5 = vld [vmem:[%s7659_s6 + $0xdc4] sm:$0xf]  ;;  %3821 = vmatpush.bf16.msra.mxu0 %v5683_v51  ;;  %v6416_v7 = vld [vmem:[%s7659_s6 + $0xdd0] sm:$0xf0]  ;;  %v6291_v19 = vor.u32 %v7130_v2, %v6288_v3 }
 0x115   : > { %v7194_v11 = vld [vmem:[%s7659_s6 + $0xec4] sm:$0xf]  ;;  %v6544_v12 = vld [vmem:[%s7659_s6 + $0xed0] sm:$0xf0]  ;;  %3835 = vmatpush.bf16.msra.mxu1 %v5811_v55  ;;  %v6419_v20 = vor.u32 %v7162_v5, %v6416_v7 }
 0x116   : > { %3849 = vmatpush.bf16.msra.mxu2 %v5939_v57  ;;  %v7226_v14 = vld [vmem:[%s7659_s6 + $0xfc4] sm:$0xf]  ;;  %v6672_v15 = vld [vmem:[%s7659_s6 + $0xfd0] sm:$0xf0]  ;;  %v6547_v21 = vor.u32 %v7194_v11, %v6544_v12 }
 0x117   : > { %3863 = vmatpush.bf16.msra.mxu3 %v6067_v61  ;;  %v7126_v22 = vld [vmem:[%s7659_s6 + $0xca4] sm:$0xf]  ;;  %v6272_v23 = vld [vmem:[%s7659_s6 + $0xcb0] sm:$0xf0]  ;;  %3822 = vmatmul.bf16.vlgmr.msra.gmra.mxu0 %v7892_v31  ;;  %v6675_v25 = vor.u32 %v7226_v14, %v6672_v15 }
 0x118   : > { %3870 = vmatpush.bf16.msrb.mxu0 %v6307_v62  ;;  %v7158_v24 = vld [vmem:[%s7659_s6 + $0xda4] sm:$0xf]  ;;  %v6400_v26 = vld [vmem:[%s7659_s6 + $0xdb0] sm:$0xf0]  ;;  %3836 = vmatmul.bf16.vlgmr.msra.gmra.mxu1 %v7899_v36  ;;  %v6275_v33 = vor.u32 %v7126_v22, %v6272_v23  ;;  %v3599_v55 = vpop.f32.mrf.mxu0  ;;  %v3613_v62 = vpop.f32.mrf.mxu1 }
 0x119   : > { %3884 = vmatpush.bf16.msrb.mxu1 %v6435_v63  ;;  %v7190_v27 = vld [vmem:[%s7659_s6 + $0xea4] sm:$0xf]  ;;  %v6528_v28 = vld [vmem:[%s7659_s6 + $0xeb0] sm:$0xf0]  ;;  %3850 = vmatmul.bf16.vlgmr.msra.gmra.mxu2 %v7897_v35  ;;  %v6403_v34 = vor.u32 %v7158_v24, %v6400_v26  ;;  %v3600_v60 = vadd.f32 %v3599_v55, %v8164_v8 }
 0x11a   : > { %3898 = vmatpush.bf16.msrb.mxu2 %v6563_v0  ;;  %v7222_v29 = vld [vmem:[%s7659_s6 + $0xfa4] sm:$0xf]  ;;  %v6656_v30 = vld [vmem:[%s7659_s6 + $0xfb0] sm:$0xf0]  ;;  %3864 = vmatmul.bf16.vlgmr.msra.gmra.mxu3 %v7903_v40  ;;  %v6531_v37 = vor.u32 %v7190_v27, %v6528_v28  ;;  %v3627_v26 = vpop.f32.mrf.mxu2 }
 0x11b   : > { %3912 = vmatpush.bf16.msrb.mxu3 %v6691_v6  ;;  %v7122_v45 = vld [vmem:[%s7659_s6 + $0xc84] sm:$0xf]  ;;  %v6256_v48 = vld [vmem:[%s7659_s6 + $0xc90] sm:$0xf0]  ;;  %v6659_v50 = vor.u32 %v7222_v29, %v6656_v30  ;;  %v3614_v7 = vadd.f32 %v3613_v62, %v3600_v60 }
 0x11c   : > { %3871 = vmatpush.bf16.msrb.mxu0 %v6291_v19  ;;  %v7154_v49 = vld [vmem:[%s7659_s6 + $0xd84] sm:$0xf]  ;;  %v6384_v51 = vld [vmem:[%s7659_s6 + $0xd90] sm:$0xf0]  ;;  %v6259_v61 = vor.u32 %v7122_v45, %v6256_v48 }
 0x11d   : > { %3885 = vmatpush.bf16.msrb.mxu1 %v6419_v20  ;;  %v7186_v52 = vld [vmem:[%s7659_s6 + $0xe84] sm:$0xf]  ;;  %v6512_v53 = vld [vmem:[%s7659_s6 + $0xe90] sm:$0xf0]  ;;  %v6387_v63 = vor.u32 %v7154_v49, %v6384_v51  ;;  %v3628_v30 = vadd.f32 %v3627_v26, %v3614_v7 }
 0x11e   : > { %3899 = vmatpush.bf16.msrb.mxu2 %v6547_v21  ;;  %v7218_v57 = vld [vmem:[%s7659_s6 + $0xf84] sm:$0xf]  ;;  %v6640_v59 = vld [vmem:[%s7659_s6 + $0xf90] sm:$0xf0]  ;;  %v6515_v0 = vor.u32 %v7186_v52, %v6512_v53 }
 0x11f   : > { %3913 = vmatpush.bf16.msrb.mxu3 %v6675_v25  ;;  %v7118_v2 = vld [vmem:[%s7659_s6 + $0xc64] sm:$0xf]  ;;  %v6240_v3 = vld [vmem:[%s7659_s6 + $0xc70] sm:$0xf0]  ;;  %v6643_v6 = vor.u32 %v7218_v57, %v6640_v59 }
 0x120   : > { %3872 = vmatpush.bf16.msrb.mxu0 %v6275_v33  ;;  %v7150_v5 = vld [vmem:[%s7659_s6 + $0xd64] sm:$0xf]  ;;  %v6368_v11 = vld [vmem:[%s7659_s6 + $0xd70] sm:$0xf0]  ;;  %v6243_v19 = vor.u32 %v7118_v2, %v6240_v3  ;;  %v3641_v33 = vpop.f32.mrf.mxu3 }
 0x121   : > { %3886 = vmatpush.bf16.msrb.mxu1 %v6403_v34  ;;  %v7182_v12 = vld [vmem:[%s7659_s6 + $0xe64] sm:$0xf]  ;;  %v6496_v8 = vld [vmem:[%s7659_s6 + $0xe70] sm:$0xf0]  ;;  %v6371_v20 = vor.u32 %v7150_v5, %v6368_v11  ;;  %v8243_v48 = vadd.f32 %v3641_v33, %v3628_v30 }
 0x122   : > { %3900 = vmatpush.bf16.msrb.mxu2 %v6531_v37  ;;  %v7214_v14 = vld [vmem:[%s7659_s6 + $0xf64] sm:$0xf]  ;;  %v6624_v15 = vld [vmem:[%s7659_s6 + $0xf70] sm:$0xf0]  ;;  %v6499_v21 = vor.u32 %v7182_v12, %v6496_v8 }
 0x123   : > { %3914 = vmatpush.bf16.msrb.mxu3 %v6659_v50  ;;  %v7114_v22 = vld [vmem:[%s7659_s6 + $0xc44] sm:$0xf]  ;;  %v6224_v23 = vld [vmem:[%s7659_s6 + $0xc50] sm:$0xf0]  ;;  %v6627_v25 = vor.u32 %v7214_v14, %v6624_v15 }
 0x124   : > { %3873 = vmatpush.bf16.msrb.mxu0 %v6259_v61  ;;  %v7146_v24 = vld [vmem:[%s7659_s6 + $0xd44] sm:$0xf]  ;;  %v6352_v27 = vld [vmem:[%s7659_s6 + $0xd50] sm:$0xf0]  ;;  %v6227_v45 = vor.u32 %v7114_v22, %v6224_v23  ;;  %v6785_v23 = vld [vmem:[%s7659_s6 + $0x1f4] sm:$0xf0] }
 0x125   : > { %3887 = vmatpush.bf16.msrb.mxu1 %v6387_v63  ;;  %v7178_v28 = vld [vmem:[%s7659_s6 + $0xe44] sm:$0xf]  ;;  %v6480_v29 = vld [vmem:[%s7659_s6 + $0xe50] sm:$0xf0]  ;;  %v6355_v49 = vor.u32 %v7146_v24, %v6352_v27  ;;  %v5030_v24 = vld [vmem:[%s7659_s6 + $0x2e8] sm:$0xf] }
 0x126   : > { %3901 = vmatpush.bf16.msrb.mxu2 %v6515_v0  ;;  %v7210_v34 = vld [vmem:[%s7659_s6 + $0xf44] sm:$0xf]  ;;  %v6608_v37 = vld [vmem:[%s7659_s6 + $0xf50] sm:$0xf0]  ;;  %v6483_v50 = vor.u32 %v7178_v28, %v6480_v29  ;;  %v5158_v28 = vld [vmem:[%s7659_s6 + $0x3e8] sm:$0xf] }
 0x127   : > { %3915 = vmatpush.bf16.msrb.mxu3 %v6643_v6  ;;  %v7110_v51 = vld [vmem:[%s7659_s6 + $0xc24] sm:$0xf]  ;;  %v6208_v52 = vld [vmem:[%s7659_s6 + $0xc30] sm:$0xf0]  ;;  %v6611_v55 = vor.u32 %v7210_v34, %v6608_v37  ;;  %v6849_v29 = vld [vmem:[%s7659_s6 + $0x3f4] sm:$0xf0] }
 0x128   : > { %3874 = vmatpush.bf16.msrb.mxu0 %v6243_v19  ;;  %v7142_v53 = vld [vmem:[%s7659_s6 + $0xd24] sm:$0xf]  ;;  %v6336_v57 = vld [vmem:[%s7659_s6 + $0xd30] sm:$0xf0]  ;;  %v6211_v63 = vor.u32 %v7110_v51, %v6208_v52  ;;  %v4774_v19 = vld [vmem:[%s7659_s6 + $0xe8] sm:$0xf]  ;;  %v5159_v51 = vor.u32 %v6849_v29, %v5158_v28  ;;  %v8301_v29 = vpop.f32.mrf.mxu3 }
 0x129   : > { %3888 = vmatpush.bf16.msrb.mxu1 %v6371_v20  ;;  %v7174_v59 = vld [vmem:[%s7659_s6 + $0xe24] sm:$0xf]  ;;  %v6464_v60 = vld [vmem:[%s7659_s6 + $0xe30] sm:$0xf0]  ;;  %v6339_v3 = vor.u32 %v7142_v53, %v6336_v57  ;;  %v6753_v20 = vld [vmem:[%s7659_s6 + $0xf4] sm:$0xf0]  ;;  %v8275_v57 = vpop.f32.mrf.mxu0 }
 0x12a   : > { %3902 = vmatpush.bf16.msrb.mxu2 %v6499_v21  ;;  %v7206_v61 = vld [vmem:[%s7659_s6 + $0xf24] sm:$0xf]  ;;  %v6592_v62 = vld [vmem:[%s7659_s6 + $0xf30] sm:$0xf0]  ;;  %v6467_v5 = vor.u32 %v7174_v59, %v6464_v60  ;;  %v4902_v21 = vld [vmem:[%s7659_s6 + $0x1e8] sm:$0xf]  ;;  %v4775_v33 = vor.u32 %v6753_v20, %v4774_v19 }
 0x12b   : > { %3916 = vmatpush.bf16.msrb.mxu3 %v6627_v25  ;;  %v7106_v0 = vld [vmem:[%s7659_s6 + $0xc04] sm:$0xf]  ;;  %v6192_v2 = vld [vmem:[%s7659_s6 + $0xc10] sm:$0xf0]  ;;  %v6595_v12 = vor.u32 %v7206_v61, %v6592_v62  ;;  %v6817_v25 = vld [vmem:[%s7659_s6 + $0x2f4] sm:$0xf0]  ;;  %v4903_v34 = vor.u32 %v6785_v23, %v4902_v21  ;;  %v8279_v61 = vpop.f32.mrf.mxu1 }
 0x12c   : > { %3875 = vmatpush.bf16.msrb.mxu0 %v6227_v45  ;;  %v7138_v6 = vld [vmem:[%s7659_s6 + $0xd04] sm:$0xf]  ;;  %v6320_v7 = vld [vmem:[%s7659_s6 + $0xd10] sm:$0xf0]  ;;  %v6195_v22 = vor.u32 %v7106_v0, %v6192_v2  ;;  %v5031_v37 = vor.u32 %v6817_v25, %v5030_v24  ;;  %v4758_v45 = vld [vmem:[%s7659_s6 + $0xc8] sm:$0xf]  ;;  %v8296_v24 = vpop.f32.mrf.mxu2 }
 0x12d   : > { %3889 = vmatpush.bf16.msrb.mxu1 %v6355_v49  ;;  %v7170_v11 = vld [vmem:[%s7659_s6 + $0xe04] sm:$0xf]  ;;  %v6448_v8 = vld [vmem:[%s7659_s6 + $0xe10] sm:$0xf0]  ;;  %v6323_v26 = vor.u32 %v7138_v6, %v6320_v7  ;;  %v6749_v49 = vld [vmem:[%s7659_s6 + $0xd4] sm:$0xf0] }
 0x12e   : > { %3903 = vmatpush.bf16.msrb.mxu2 %v6483_v50  ;;  %v7202_v14 = vld [vmem:[%s7659_s6 + $0xf04] sm:$0xf]  ;;  %v6576_v15 = vld [vmem:[%s7659_s6 + $0xf10] sm:$0xf0]  ;;  %v6451_v27 = vor.u32 %v7170_v11, %v6448_v8  ;;  %v4886_v50 = vld [vmem:[%s7659_s6 + $0x1c8] sm:$0xf]  ;;  %v4759_v62 = vor.u32 %v6749_v49, %v4758_v45 }
 0x12f   : > { %3917 = vmatpush.bf16.msrb.mxu3 %v6611_v55  ;;  %v6579_v30 = vor.u32 %v7202_v14, %v6576_v15  ;;  %v6781_v52 = vld [vmem:[%s7659_s6 + $0x1d4] sm:$0xf0]  ;;  %v5014_v53 = vld [vmem:[%s7659_s6 + $0x2c8] sm:$0xf] }
 0x130   : > { %3876 = vmatpush.bf16.msrb.mxu0 %v6211_v63  ;;  %v6813_v55 = vld [vmem:[%s7659_s6 + $0x2d4] sm:$0xf0]  ;;  %v5142_v59 = vld [vmem:[%s7659_s6 + $0x3c8] sm:$0xf]  ;;  %v4887_v63 = vor.u32 %v6781_v52, %v4886_v50 }
 0x131   : > { %3890 = vmatpush.bf16.msrb.mxu1 %v6339_v3  ;;  %v6845_v60 = vld [vmem:[%s7659_s6 + $0x3d4] sm:$0xf0]  ;;  %v5015_v0 = vor.u32 %v6813_v55, %v5014_v53  ;;  %v4742_v2 = vld [vmem:[%s7659_s6 + $0xa8] sm:$0xf] }
 0x132   : > { %3904 = vmatpush.bf16.msrb.mxu2 %v6467_v5  ;;  %v6745_v3 = vld [vmem:[%s7659_s6 + $0xb4] sm:$0xf0]  ;;  %v4870_v5 = vld [vmem:[%s7659_s6 + $0x1a8] sm:$0xf]  ;;  %v5143_v6 = vor.u32 %v6845_v60, %v5142_v59 }
 0x133   : > { %3918 = vmatpush.bf16.msrb.mxu3 %v6595_v12  ;;  %v6777_v7 = vld [vmem:[%s7659_s6 + $0x1b4] sm:$0xf0]  ;;  %v4998_v11 = vld [vmem:[%s7659_s6 + $0x2a8] sm:$0xf]  ;;  %v4743_v15 = vor.u32 %v6745_v3, %v4742_v2 }
 0x134   : > { %3877 = vmatpush.bf16.msrb.mxu0 %v6195_v22  ;;  %v6809_v12 = vld [vmem:[%s7659_s6 + $0x2b4] sm:$0xf0]  ;;  %v5126_v8 = vld [vmem:[%s7659_s6 + $0x3a8] sm:$0xf]  ;;  %v4871_v19 = vor.u32 %v6777_v7, %v4870_v5 }
 0x135   : > { %3891 = vmatpush.bf16.msrb.mxu1 %v6323_v26  ;;  %v6841_v14 = vld [vmem:[%s7659_s6 + $0x3b4] sm:$0xf0]  ;;  %v4999_v20 = vor.u32 %v6809_v12, %v4998_v11  ;;  %v4726_v21 = vld [vmem:[%s7659_s6 + $0x88] sm:$0xf]  ;;  %v3669_v49 = vpop.f32.mrf.mxu1 }
 0x136   : > { %3905 = vmatpush.bf16.msrb.mxu2 %v6451_v27  ;;  %v6741_v22 = vld [vmem:[%s7659_s6 + $0x94] sm:$0xf0]  ;;  %v4854_v23 = vld [vmem:[%s7659_s6 + $0x188] sm:$0xf]  ;;  %v5127_v25 = vor.u32 %v6841_v14, %v5126_v8 }
 0x137   : > { %3919 = vmatpush.bf16.msrb.mxu3 %v6579_v30  ;;  %3878 = vmatmul.bf16.vlgmr.msrb.gmra.mxu0 %v7968_v32  ;;  %v6773_v26 = vld [vmem:[%s7659_s6 + $0x194] sm:$0xf0]  ;;  %v4982_v27 = vld [vmem:[%s7659_s6 + $0x288] sm:$0xf]  ;;  %v3655_v30 = vpop.f32.mrf.mxu0  ;;  %v4727_v45 = vor.u32 %v6741_v22, %v4726_v21 }
 0x138   : > { %3926 = vmatpush.bf16.msra.mxu0 %v4775_v33  ;;  %3892 = vmatmul.bf16.vlgmr.msrb.gmra.mxu1 %v7975_v41  ;;  %v6805_v28 = vld [vmem:[%s7659_s6 + $0x294] sm:$0xf0]  ;;  %v5110_v33 = vld [vmem:[%s7659_s6 + $0x388] sm:$0xf]  ;;  %v4855_v50 = vor.u32 %v6773_v26, %v4854_v23 }
 0x139   : > { %3940 = vmatpush.bf16.msra.mxu1 %v4903_v34  ;;  %3906 = vmatmul.bf16.vlgmr.msrb.gmra.mxu2 %v7973_v38  ;;  %v6837_v34 = vld [vmem:[%s7659_s6 + $0x394] sm:$0xf0]  ;;  %v4710_v52 = vld [vmem:[%s7659_s6 + $0x68] sm:$0xf] }
 0x13a   : > { %3954 = vmatpush.bf16.msra.mxu2 %v5031_v37  ;;  %3920 = vmatmul.bf16.vlgmr.msrb.gmra.mxu3 %v7979_v46  ;;  %v3656_v37 = vadd.f32 %v3655_v30, %v8243_v48  ;;  %v6737_v53 = vld [vmem:[%s7659_s6 + $0x74] sm:$0xf0]  ;;  %v4838_v55 = vld [vmem:[%s7659_s6 + $0x168] sm:$0xf]  ;;  %v5111_v59 = vor.u32 %v6837_v34, %v5110_v33 }
 0x13b   : > { %3968 = vmatpush.bf16.msra.mxu3 %v5159_v51  ;;  %v4983_v51 = vor.u32 %v6805_v28, %v4982_v27  ;;  %v6801_v48 = vld [vmem:[%s7659_s6 + $0x274] sm:$0xf0]  ;;  %v4711_v3 = vor.u32 %v6737_v53, %v4710_v52  ;;  %v4694_v7 = vld [vmem:[%s7659_s6 + $0x48] sm:$0xf] }
 0x13c   : > { %3927 = vmatpush.bf16.msra.mxu0 %v4759_v62  ;;  %v3670_v60 = vadd.f32 %v3669_v49, %v3656_v37  ;;  %v6769_v62 = vld [vmem:[%s7659_s6 + $0x174] sm:$0xf0]  ;;  %v4822_v12 = vld [vmem:[%s7659_s6 + $0x148] sm:$0xf]  ;;  %v3683_v14 = vpop.f32.mrf.mxu2 }
 0x13d   : > { %3941 = vmatpush.bf16.msra.mxu1 %v4887_v63  ;;  %v4966_v63 = vld [vmem:[%s7659_s6 + $0x268] sm:$0xf]  ;;  %v6833_v2 = vld [vmem:[%s7659_s6 + $0x374] sm:$0xf0]  ;;  %v4839_v5 = vor.u32 %v6769_v62, %v4838_v55  ;;  %v3697_v22 = vpop.f32.mrf.mxu3 }
 0x13e   : > { %3955 = vmatpush.bf16.msra.mxu2 %v5015_v0  ;;  %v5094_v0 = vld [vmem:[%s7659_s6 + $0x368] sm:$0xf]  ;;  %v6733_v11 = vld [vmem:[%s7659_s6 + $0x54] sm:$0xf0]  ;;  %v3684_v21 = vadd.f32 %v3683_v14, %v3670_v60 }
 0x13f   : > { %3969 = vmatpush.bf16.msra.mxu3 %v5143_v6  ;;  %v4967_v6 = vor.u32 %v6801_v48, %v4966_v63  ;;  %v5095_v8 = vor.u32 %v6833_v2, %v5094_v0  ;;  %v5078_v23 = vld [vmem:[%s7659_s6 + $0x348] sm:$0xf]  ;;  %v4695_v26 = vor.u32 %v6733_v11, %v4694_v7  ;;  %v6729_v34 = vld [vmem:[%s7659_s6 + $0x34] sm:$0xf0] }
 0x140   : > { %3928 = vmatpush.bf16.msra.mxu0 %v4743_v15  ;;  %v6765_v15 = vld [vmem:[%s7659_s6 + $0x154] sm:$0xf0]  ;;  %v8322_v27 = vadd.f32 %v3697_v22, %v3684_v21  ;;  %v4678_v33 = vld [vmem:[%s7659_s6 + $0x28] sm:$0xf] }
 0x141   : > { %3942 = vmatpush.bf16.msra.mxu1 %v4871_v19  ;;  %v4950_v19 = vld [vmem:[%s7659_s6 + $0x248] sm:$0xf]  ;;  %v4823_v28 = vor.u32 %v6765_v15, %v4822_v12  ;;  %v6761_v49 = vld [vmem:[%s7659_s6 + $0x134] sm:$0xf0]  ;;  %v4679_v55 = vor.u32 %v6729_v34, %v4678_v33 }
 0x142   : > { %3956 = vmatpush.bf16.msra.mxu2 %v4999_v20  ;;  %v6797_v20 = vld [vmem:[%s7659_s6 + $0x254] sm:$0xf0]  ;;  %v4806_v37 = vld [vmem:[%s7659_s6 + $0x128] sm:$0xf] }
 0x143   : > { %3970 = vmatpush.bf16.msra.mxu3 %v5127_v25  ;;  %v6829_v25 = vld [vmem:[%s7659_s6 + $0x354] sm:$0xf0]  ;;  %v4951_v30 = vor.u32 %v6797_v20, %v4950_v19  ;;  %v5062_v52 = vld [vmem:[%s7659_s6 + $0x328] sm:$0xf]  ;;  %v4807_v62 = vor.u32 %v6761_v49, %v4806_v37 }
 0x144   : > { %3929 = vmatpush.bf16.msra.mxu0 %v4727_v45  ;;  %v5079_v45 = vor.u32 %v6829_v25, %v5078_v23  ;;  %v6825_v53 = vld [vmem:[%s7659_s6 + $0x334] sm:$0xf0]  ;;  %v4790_v48 = vld [vmem:[%s7659_s6 + $0x108] sm:$0xf] }
 0x145   : > { %3943 = vmatpush.bf16.msra.mxu1 %v4855_v50  ;;  %v4934_v50 = vld [vmem:[%s7659_s6 + $0x228] sm:$0xf]  ;;  %v6725_v60 = vld [vmem:[%s7659_s6 + $0x14] sm:$0xf0] }
 0x146   : > { %3957 = vmatpush.bf16.msra.mxu2 %v4983_v51  ;;  %v6793_v51 = vld [vmem:[%s7659_s6 + $0x234] sm:$0xf0]  ;;  %v4918_v2 = vld [vmem:[%s7659_s6 + $0x208] sm:$0xf] }
 0x147   : > { %3971 = vmatpush.bf16.msra.mxu3 %v5111_v59  ;;  %v4662_v59 = vld [vmem:[%s7659_s6 + $0x8] sm:$0xf]  ;;  %v4935_v63 = vor.u32 %v6793_v51, %v4934_v50  ;;  %v6757_v0 = vld [vmem:[%s7659_s6 + $0x114] sm:$0xf0] }
 0x148   : > { %3930 = vmatpush.bf16.msra.mxu0 %v4711_v3  ;;  %v5063_v3 = vor.u32 %v6825_v53, %v5062_v52  ;;  %v6821_v7 = vld [vmem:[%s7659_s6 + $0x314] sm:$0xf0]  ;;  %v5286_v11 = vld [vmem:[%s7659_s6 + $0x4e8] sm:$0xf]  ;;  %v4663_v14 = vor.u32 %v6725_v60, %v4662_v59  ;;  %v4791_v21 = vor.u32 %v6757_v0, %v4790_v48 }
 0x149   : > { %3944 = vmatpush.bf16.msra.mxu1 %v4839_v5  ;;  %v6789_v5 = vld [vmem:[%s7659_s6 + $0x214] sm:$0xf0]  ;;  %v5542_v19 = vld [vmem:[%s7659_s6 + $0x6e8] sm:$0xf] }
 0x14a   : > { %3958 = vmatpush.bf16.msra.mxu2 %v4967_v6  ;;  %v5046_v6 = vld [vmem:[%s7659_s6 + $0x308] sm:$0xf]  ;;  %v6881_v12 = vld [vmem:[%s7659_s6 + $0x4f4] sm:$0xf0]  ;;  %v4919_v22 = vor.u32 %v6789_v5, %v4918_v2 }
 0x14b   : > { %3972 = vmatpush.bf16.msra.mxu3 %v5095_v8  ;;  %v5414_v8 = vld [vmem:[%s7659_s6 + $0x5e8] sm:$0xf]  ;;  %v6913_v15 = vld [vmem:[%s7659_s6 + $0x5f4] sm:$0xf0] }
 0x14c   : > { %3931 = vmatpush.bf16.msra.mxu0 %v4695_v26  ;;  %v6945_v20 = vld [vmem:[%s7659_s6 + $0x6f4] sm:$0xf0]  ;;  %v5670_v23 = vld [vmem:[%s7659_s6 + $0x7e8] sm:$0xf]  ;;  %v5047_v26 = vor.u32 %v6821_v7, %v5046_v6 }
 0x14d   : > { %3945 = vmatpush.bf16.msra.mxu1 %v4823_v28  ;;  %v6977_v25 = vld [vmem:[%s7659_s6 + $0x7f4] sm:$0xf0]  ;;  %v5287_v28 = vor.u32 %v6881_v12, %v5286_v11  ;;  %v5543_v33 = vor.u32 %v6945_v20, %v5542_v19  ;;  %v5270_v34 = vld [vmem:[%s7659_s6 + $0x4c8] sm:$0xf] }
 0x14e   : > { %3959 = vmatpush.bf16.msra.mxu2 %v4951_v30  ;;  %v5415_v30 = vor.u32 %v6913_v15, %v5414_v8  ;;  %v6877_v37 = vld [vmem:[%s7659_s6 + $0x4d4] sm:$0xf0]  ;;  %v5671_v49 = vor.u32 %v6977_v25, %v5670_v23  ;;  %v5526_v51 = vld [vmem:[%s7659_s6 + $0x6c8] sm:$0xf] }
 0x14f   : > { %3973 = vmatpush.bf16.msra.mxu3 %v5079_v45  ;;  %v5398_v45 = vld [vmem:[%s7659_s6 + $0x5c8] sm:$0xf]  ;;  %v6909_v50 = vld [vmem:[%s7659_s6 + $0x5d4] sm:$0xf0]  ;;  %v5271_v59 = vor.u32 %v6877_v37, %v5270_v34 }
 0x150   : > { %3932 = vmatpush.bf16.msra.mxu0 %v4679_v55  ;;  %v6941_v52 = vld [vmem:[%s7659_s6 + $0x6d4] sm:$0xf0]  ;;  %v5654_v53 = vld [vmem:[%s7659_s6 + $0x7c8] sm:$0xf]  ;;  %v5399_v60 = vor.u32 %v6909_v50, %v5398_v45 }
 0x151   : > { %3946 = vmatpush.bf16.msra.mxu1 %v4807_v62  ;;  %v6973_v55 = vld [vmem:[%s7659_s6 + $0x7d4] sm:$0xf0]  ;;  %v5527_v62 = vor.u32 %v6941_v52, %v5526_v51  ;;  %v5382_v0 = vld [vmem:[%s7659_s6 + $0x5a8] sm:$0xf] }
 0x152   : > { %3960 = vmatpush.bf16.msra.mxu2 %v4935_v63  ;;  %v5254_v63 = vld [vmem:[%s7659_s6 + $0x4a8] sm:$0xf]  ;;  %v6873_v48 = vld [vmem:[%s7659_s6 + $0x4b4] sm:$0xf0]  ;;  %v5655_v2 = vor.u32 %v6973_v55, %v5654_v53 }
 0x153   : > { %3974 = vmatpush.bf16.msra.mxu3 %v5063_v3  ;;  %v6905_v3 = vld [vmem:[%s7659_s6 + $0x5b4] sm:$0xf0]  ;;  %v5510_v5 = vld [vmem:[%s7659_s6 + $0x6a8] sm:$0xf]  ;;  %v5255_v12 = vor.u32 %v6873_v48, %v5254_v63 }
 0x154   : > { %3933 = vmatpush.bf16.msra.mxu0 %v4663_v14  ;;  %v6937_v6 = vld [vmem:[%s7659_s6 + $0x6b4] sm:$0xf0]  ;;  %v5638_v7 = vld [vmem:[%s7659_s6 + $0x7a8] sm:$0xf]  ;;  %v5383_v8 = vor.u32 %v6905_v3, %v5382_v0 }
 0x155   : > { %3947 = vmatpush.bf16.msra.mxu1 %v4791_v21  ;;  %v6969_v11 = vld [vmem:[%s7659_s6 + $0x7b4] sm:$0xf0]  ;;  %v5511_v14 = vor.u32 %v6937_v6, %v5510_v5  ;;  %v5238_v15 = vld [vmem:[%s7659_s6 + $0x488] sm:$0xf] }
 0x156   : > { %3961 = vmatpush.bf16.msra.mxu2 %v4919_v22  ;;  %v6869_v19 = vld [vmem:[%s7659_s6 + $0x494] sm:$0xf0]  ;;  %v5366_v20 = vld [vmem:[%s7659_s6 + $0x588] sm:$0xf]  ;;  %v5639_v21 = vor.u32 %v6969_v11, %v5638_v7 }
 0x157   : > { %3975 = vmatpush.bf16.msra.mxu3 %v5047_v26  ;;  %3934 = vmatmul.bf16.vlgmr.msra.gmra.mxu0 %v7747_v58  ;;  %v6901_v22 = vld [vmem:[%s7659_s6 + $0x594] sm:$0xf0]  ;;  %v5494_v23 = vld [vmem:[%s7659_s6 + $0x688] sm:$0xf] }
 0x158   : > { %3982 = vmatpush.bf16.msrb.mxu0 %v5287_v28  ;;  %3948 = vmatmul.bf16.vlgmr.msra.gmra.mxu1 %v7759_v10  ;;  %v6933_v25 = vld [vmem:[%s7659_s6 + $0x694] sm:$0xf0]  ;;  %v5622_v26 = vld [vmem:[%s7659_s6 + $0x788] sm:$0xf] }
 0x159   : > { %3996 = vmatpush.bf16.msrb.mxu1 %v5415_v30  ;;  %3962 = vmatmul.bf16.vlgmr.msra.gmra.mxu2 %v7752_v1  ;;  %v6965_v28 = vld [vmem:[%s7659_s6 + $0x794] sm:$0xf0]  ;;  %v5239_v30 = vor.u32 %v6869_v19, %v5238_v15  ;;  %v5495_v34 = vor.u32 %v6933_v25, %v5494_v23  ;;  %v5222_v37 = vld [vmem:[%s7659_s6 + $0x468] sm:$0xf] }
 0x15a   : > { %4010 = vmatpush.bf16.msrb.mxu2 %v5543_v33  ;;  %3976 = vmatmul.bf16.vlgmr.msra.gmra.mxu3 %v7764_v17  ;;  %v5367_v33 = vor.u32 %v6901_v22, %v5366_v20  ;;  %v6865_v45 = vld [vmem:[%s7659_s6 + $0x474] sm:$0xf0]  ;;  %v5623_v50 = vor.u32 %v6965_v28, %v5622_v26  ;;  %v5478_v52 = vld [vmem:[%s7659_s6 + $0x668] sm:$0xf] }
 0x15b   : > { %4024 = vmatpush.bf16.msrb.mxu3 %v5671_v49  ;;  %v5350_v49 = vld [vmem:[%s7659_s6 + $0x568] sm:$0xf]  ;;  %v6897_v51 = vld [vmem:[%s7659_s6 + $0x574] sm:$0xf0] }
 0x15c   : > { %3983 = vmatpush.bf16.msrb.mxu0 %v5271_v59  ;;  %v6929_v53 = vld [vmem:[%s7659_s6 + $0x674] sm:$0xf0]  ;;  %v5606_v55 = vld [vmem:[%s7659_s6 + $0x768] sm:$0xf] }
 0x15d   : > { %3997 = vmatpush.bf16.msrb.mxu1 %v5399_v60  ;;  %v6961_v59 = vld [vmem:[%s7659_s6 + $0x774] sm:$0xf0]  ;;  %v5223_v60 = vor.u32 %v6865_v45, %v5222_v37  ;;  %v5479_v63 = vor.u32 %v6929_v53, %v5478_v52  ;;  %v5206_v48 = vld [vmem:[%s7659_s6 + $0x448] sm:$0xf] }
 0x15e   : > { %4011 = vmatpush.bf16.msrb.mxu2 %v5527_v62  ;;  %v5351_v62 = vor.u32 %v6897_v51, %v5350_v49  ;;  %v6861_v0 = vld [vmem:[%s7659_s6 + $0x454] sm:$0xf0]  ;;  %v5607_v3 = vor.u32 %v6961_v59, %v5606_v55  ;;  %v5462_v6 = vld [vmem:[%s7659_s6 + $0x648] sm:$0xf] }
 0x15f   : > { %4025 = vmatpush.bf16.msrb.mxu3 %v5655_v2  ;;  %v5334_v2 = vld [vmem:[%s7659_s6 + $0x548] sm:$0xf]  ;;  %v6893_v5 = vld [vmem:[%s7659_s6 + $0x554] sm:$0xf0] }
 0x160   : > { %3984 = vmatpush.bf16.msrb.mxu0 %v5255_v12  ;;  %v6925_v7 = vld [vmem:[%s7659_s6 + $0x654] sm:$0xf0]  ;;  %v5590_v11 = vld [vmem:[%s7659_s6 + $0x748] sm:$0xf] }
 0x161   : > { %3998 = vmatpush.bf16.msrb.mxu1 %v5383_v8  ;;  %v6957_v12 = vld [vmem:[%s7659_s6 + $0x754] sm:$0xf0]  ;;  %v5207_v8 = vor.u32 %v6861_v0, %v5206_v48  ;;  %v5463_v15 = vor.u32 %v6925_v7, %v5462_v6  ;;  %v5190_v19 = vld [vmem:[%s7659_s6 + $0x428] sm:$0xf] }
 0x162   : > { %4012 = vmatpush.bf16.msrb.mxu2 %v5511_v14  ;;  %v5335_v14 = vor.u32 %v6893_v5, %v5334_v2  ;;  %v6857_v20 = vld [vmem:[%s7659_s6 + $0x434] sm:$0xf0]  ;;  %v5591_v22 = vor.u32 %v6957_v12, %v5590_v11  ;;  %v5446_v25 = vld [vmem:[%s7659_s6 + $0x628] sm:$0xf] }
 0x163   : > { %4026 = vmatpush.bf16.msrb.mxu3 %v5639_v21  ;;  %v5318_v21 = vld [vmem:[%s7659_s6 + $0x528] sm:$0xf]  ;;  %v6889_v23 = vld [vmem:[%s7659_s6 + $0x534] sm:$0xf0] }
 0x164   : > { %3985 = vmatpush.bf16.msrb.mxu0 %v5239_v30  ;;  %v6921_v26 = vld [vmem:[%s7659_s6 + $0x634] sm:$0xf0]  ;;  %v5574_v28 = vld [vmem:[%s7659_s6 + $0x728] sm:$0xf]  ;;  %v5319_v45 = vor.u32 %v6889_v23, %v5318_v21 }
 0x165   : > { %3999 = vmatpush.bf16.msrb.mxu1 %v5367_v33  ;;  %v6953_v30 = vld [vmem:[%s7659_s6 + $0x734] sm:$0xf0]  ;;  %v5191_v33 = vor.u32 %v6857_v20, %v5190_v19  ;;  %v5447_v49 = vor.u32 %v6921_v26, %v5446_v25  ;;  %v5430_v52 = vld [vmem:[%s7659_s6 + $0x608] sm:$0xf] }
 0x166   : > { %4013 = vmatpush.bf16.msrb.mxu2 %v5495_v34  ;;  %v5174_v34 = vld [vmem:[%s7659_s6 + $0x408] sm:$0xf]  ;;  %v6853_v37 = vld [vmem:[%s7659_s6 + $0x414] sm:$0xf0]  ;;  %v5575_v53 = vor.u32 %v6953_v30, %v5574_v28 }
 0x167   : > { %4027 = vmatpush.bf16.msrb.mxu3 %v5623_v50  ;;  %v5302_v50 = vld [vmem:[%s7659_s6 + $0x508] sm:$0xf]  ;;  %v6885_v51 = vld [vmem:[%s7659_s6 + $0x514] sm:$0xf0]  ;;  %v5175_v0 = vor.u32 %v6853_v37, %v5174_v34 }
 0x168   : > { %3986 = vmatpush.bf16.msrb.mxu0 %v5223_v60  ;;  %v6917_v55 = vld [vmem:[%s7659_s6 + $0x614] sm:$0xf0]  ;;  %v5558_v59 = vld [vmem:[%s7659_s6 + $0x708] sm:$0xf]  ;;  %v5303_v6 = vor.u32 %v6885_v51, %v5302_v50 }
 0x169   : > { %4000 = vmatpush.bf16.msrb.mxu1 %v5351_v62  ;;  %v6949_v60 = vld [vmem:[%s7659_s6 + $0x714] sm:$0xf0]  ;;  %v5798_v62 = vld [vmem:[%s7659_s6 + $0x8e8] sm:$0xf]  ;;  %v5431_v7 = vor.u32 %v6917_v55, %v5430_v52 }
 0x16a   : > { %4014 = vmatpush.bf16.msrb.mxu2 %v5479_v63  ;;  %v7009_v63 = vld [vmem:[%s7659_s6 + $0x8f4] sm:$0xf0]  ;;  %v5926_v48 = vld [vmem:[%s7659_s6 + $0x9e8] sm:$0xf] }
 0x16b   : > { %4028 = vmatpush.bf16.msrb.mxu3 %v5607_v3  ;;  %v7041_v2 = vld [vmem:[%s7659_s6 + $0x9f4] sm:$0xf0]  ;;  %v6054_v3 = vld [vmem:[%s7659_s6 + $0xae8] sm:$0xf] }
 0x16c   : > { %3987 = vmatpush.bf16.msrb.mxu0 %v5207_v8  ;;  %v7073_v5 = vld [vmem:[%s7659_s6 + $0xaf4] sm:$0xf0]  ;;  %v6182_v11 = vld [vmem:[%s7659_s6 + $0xbe8] sm:$0xf]  ;;  %v5559_v8 = vor.u32 %v6949_v60, %v5558_v59  ;;  %v8431_v60 = vpop.f32.mrf.mxu0 }
 0x16d   : > { %4001 = vmatpush.bf16.msrb.mxu1 %v5335_v14  ;;  %v7105_v12 = vld [vmem:[%s7659_s6 + $0xbf4] sm:$0xf0]  ;;  %v5799_v14 = vor.u32 %v7009_v63, %v5798_v62  ;;  %v6055_v19 = vor.u32 %v7073_v5, %v6054_v3  ;;  %v5782_v20 = vld [vmem:[%s7659_s6 + $0x8c8] sm:$0xf] }
 0x16e   : > { %4015 = vmatpush.bf16.msrb.mxu2 %v5463_v15  ;;  %v5927_v15 = vor.u32 %v7041_v2, %v5926_v48  ;;  %v7005_v21 = vld [vmem:[%s7659_s6 + $0x8d4] sm:$0xf0]  ;;  %v6183_v23 = vor.u32 %v7105_v12, %v6182_v11  ;;  %v6038_v26 = vld [vmem:[%s7659_s6 + $0xac8] sm:$0xf]  ;;  %v8437_v48 = vpop.f32.mrf.mxu1 }
 0x16f   : > { %4029 = vmatpush.bf16.msrb.mxu3 %v5591_v22  ;;  %v5910_v22 = vld [vmem:[%s7659_s6 + $0x9c8] sm:$0xf]  ;;  %v7037_v25 = vld [vmem:[%s7659_s6 + $0x9d4] sm:$0xf0]  ;;  %v5783_v34 = vor.u32 %v7005_v21, %v5782_v20 }
 0x170   : > { %3988 = vmatpush.bf16.msrb.mxu0 %v5191_v33  ;;  %v7069_v28 = vld [vmem:[%s7659_s6 + $0xad4] sm:$0xf0]  ;;  %v6166_v30 = vld [vmem:[%s7659_s6 + $0xbc8] sm:$0xf]  ;;  %v5911_v37 = vor.u32 %v7037_v25, %v5910_v22 }
 0x171   : > { %4002 = vmatpush.bf16.msrb.mxu1 %v5319_v45  ;;  %v7101_v33 = vld [vmem:[%s7659_s6 + $0xbd4] sm:$0xf0]  ;;  %v6039_v45 = vor.u32 %v7069_v28, %v6038_v26  ;;  %v5894_v51 = vld [vmem:[%s7659_s6 + $0x9a8] sm:$0xf]  ;;  %v8451_v28 = vpop.f32.mrf.mxu2 }
 0x172   : > { %4016 = vmatpush.bf16.msrb.mxu2 %v5447_v49  ;;  %v5766_v49 = vld [vmem:[%s7659_s6 + $0x8a8] sm:$0xf]  ;;  %v7001_v50 = vld [vmem:[%s7659_s6 + $0x8b4] sm:$0xf0]  ;;  %v6167_v52 = vor.u32 %v7101_v33, %v6166_v30 }
 0x173   : > { %4030 = vmatpush.bf16.msrb.mxu3 %v5575_v53  ;;  %v7033_v53 = vld [vmem:[%s7659_s6 + $0x9b4] sm:$0xf0]  ;;  %v6022_v55 = vld [vmem:[%s7659_s6 + $0xaa8] sm:$0xf] }
 0x174   : > { %3989 = vmatpush.bf16.msrb.mxu0 %v5175_v0  ;;  %v7065_v59 = vld [vmem:[%s7659_s6 + $0xab4] sm:$0xf0]  ;;  %v6150_v62 = vld [vmem:[%s7659_s6 + $0xba8] sm:$0xf]  ;;  %v5767_v0 = vor.u32 %v7001_v50, %v5766_v49  ;;  %v5895_v2 = vor.u32 %v7033_v53, %v5894_v51  ;;  %v8458_v49 = vpop.f32.mrf.mxu0 }
 0x175   : > { %4003 = vmatpush.bf16.msrb.mxu1 %v5303_v6  ;;  %v7097_v63 = vld [vmem:[%s7659_s6 + $0xbb4] sm:$0xf0]  ;;  %v6023_v3 = vor.u32 %v7065_v59, %v6022_v55  ;;  %v5750_v5 = vld [vmem:[%s7659_s6 + $0x888] sm:$0xf] }
 0x176   : > { %4017 = vmatpush.bf16.msrb.mxu2 %v5431_v7  ;;  %v6997_v6 = vld [vmem:[%s7659_s6 + $0x894] sm:$0xf0]  ;;  %v5878_v7 = vld [vmem:[%s7659_s6 + $0x988] sm:$0xf]  ;;  %v6151_v11 = vor.u32 %v7097_v63, %v6150_v62 }
 0x177   : > { %4031 = vmatpush.bf16.msrb.mxu3 %v5559_v8  ;;  %3990 = vmatmul.bf16.vlgmr.msrb.gmra.mxu0 %v7816_v39  ;;  %v7029_v12 = vld [vmem:[%s7659_s6 + $0x994] sm:$0xf0]  ;;  %v6006_v8 = vld [vmem:[%s7659_s6 + $0xa88] sm:$0xf]  ;;  %v5751_v20 = vor.u32 %v6997_v6, %v5750_v5 }
 0x178   : > { %4038 = vmatpush.bf16.msra.mxu0 %v5799_v14  ;;  %4004 = vmatmul.bf16.vlgmr.msrb.gmra.mxu1 %v7823_v44  ;;  %v7061_v14 = vld [vmem:[%s7659_s6 + $0xa94] sm:$0xf0]  ;;  %v5879_v21 = vor.u32 %v7029_v12, %v5878_v7  ;;  %v5862_v26 = vld [vmem:[%s7659_s6 + $0x968] sm:$0xf] }
 0x179   : > { %4052 = vmatpush.bf16.msra.mxu1 %v5927_v15  ;;  %4018 = vmatmul.bf16.vlgmr.msrb.gmra.mxu2 %v7821_v43  ;;  %v6134_v15 = vld [vmem:[%s7659_s6 + $0xb88] sm:$0xf]  ;;  %v6007_v22 = vor.u32 %v7061_v14, %v6006_v8  ;;  %v6993_v25 = vld [vmem:[%s7659_s6 + $0x874] sm:$0xf0] }
 0x17a   : > { %4066 = vmatpush.bf16.msra.mxu2 %v6055_v19  ;;  %4032 = vmatmul.bf16.vlgmr.msrb.gmra.mxu3 %v7827_v47  ;;  %v7093_v19 = vld [vmem:[%s7659_s6 + $0xb94] sm:$0xf0]  ;;  %v6118_v50 = vld [vmem:[%s7659_s6 + $0xb68] sm:$0xf] }
 0x17b   : > { %4080 = vmatpush.bf16.msra.mxu3 %v6183_v23  ;;  %v5734_v23 = vld [vmem:[%s7659_s6 + $0x868] sm:$0xf]  ;;  %v6135_v30 = vor.u32 %v7093_v19, %v6134_v15  ;;  %v7025_v33 = vld [vmem:[%s7659_s6 + $0x974] sm:$0xf0] }
 0x17c   : > { %4039 = vmatpush.bf16.msra.mxu0 %v5783_v34  ;;  %v5990_v34 = vld [vmem:[%s7659_s6 + $0xa68] sm:$0xf]  ;;  %v7089_v51 = vld [vmem:[%s7659_s6 + $0xb74] sm:$0xf0]  ;;  %v5735_v53 = vor.u32 %v6993_v25, %v5734_v23  ;;  %v5863_v55 = vor.u32 %v7025_v33, %v5862_v26 }
 0x17d   : > { %4053 = vmatpush.bf16.msra.mxu1 %v5911_v37  ;;  %v7057_v37 = vld [vmem:[%s7659_s6 + $0xa74] sm:$0xf0]  ;;  %v5718_v62 = vld [vmem:[%s7659_s6 + $0x848] sm:$0xf] }
 0x17e   : > { %4067 = vmatpush.bf16.msra.mxu2 %v6039_v45  ;;  %v8456_v45 = vpop.f32.mrf.mxu3  ;;  %v5991_v59 = vor.u32 %v7057_v37, %v5990_v34  ;;  %v6989_v63 = vld [vmem:[%s7659_s6 + $0x854] sm:$0xf0]  ;;  %v5974_v5 = vld [vmem:[%s7659_s6 + $0xa48] sm:$0xf] }
 0x17f   : > { %4081 = vmatpush.bf16.msra.mxu3 %v6167_v52  ;;  %v8462_v52 = vpop.f32.mrf.mxu1  ;;  %v7053_v6 = vld [vmem:[%s7659_s6 + $0xa54] sm:$0xf0]  ;;  %v6102_v7 = vld [vmem:[%s7659_s6 + $0xb48] sm:$0xf]  ;;  %v5719_v12 = vor.u32 %v6989_v63, %v5718_v62 }
 0x180   : > { %4040 = vmatpush.bf16.msra.mxu0 %v5767_v0  ;;  %v5846_v0 = vld [vmem:[%s7659_s6 + $0x948] sm:$0xf]  ;;  %v5975_v14 = vor.u32 %v7053_v6, %v5974_v5  ;;  %v6985_v19 = vld [vmem:[%s7659_s6 + $0x834] sm:$0xf0] }
 0x181   : > { %4054 = vmatpush.bf16.msra.mxu1 %v5895_v2  ;;  %v6119_v2 = vor.u32 %v7089_v51, %v6118_v50  ;;  %v5702_v15 = vld [vmem:[%s7659_s6 + $0x828] sm:$0xf]  ;;  %v7017_v23 = vld [vmem:[%s7659_s6 + $0x934] sm:$0xf0] }
 0x182   : > { %4068 = vmatpush.bf16.msra.mxu2 %v6023_v3  ;;  %v7021_v3 = vld [vmem:[%s7659_s6 + $0x954] sm:$0xf0]  ;;  %v5958_v25 = vld [vmem:[%s7659_s6 + $0xa28] sm:$0xf]  ;;  %v5703_v37 = vor.u32 %v6985_v19, %v5702_v15 }
 0x183   : > { %4082 = vmatpush.bf16.msra.mxu3 %v6151_v11  ;;  %v7085_v11 = vld [vmem:[%s7659_s6 + $0xb54] sm:$0xf0]  ;;  %v5847_v8 = vor.u32 %v7021_v3, %v5846_v0  ;;  %v6086_v33 = vld [vmem:[%s7659_s6 + $0xb28] sm:$0xf] }
 0x184   : > { %4041 = vmatpush.bf16.msra.mxu0 %v5751_v20  ;;  %v5830_v20 = vld [vmem:[%s7659_s6 + $0x928] sm:$0xf]  ;;  %v7049_v26 = vld [vmem:[%s7659_s6 + $0xa34] sm:$0xf0] }
 0x185   : > { %4055 = vmatpush.bf16.msra.mxu1 %v5879_v21  ;;  %v8475_v21 = vpop.f32.mrf.mxu2  ;;  %v7081_v34 = vld [vmem:[%s7659_s6 + $0xb34] sm:$0xf0]  ;;  %v5686_v50 = vld [vmem:[%s7659_s6 + $0x808] sm:$0xf] }
 0x186   : > { %4069 = vmatpush.bf16.msra.mxu2 %v6007_v22  ;;  %v6103_v22 = vor.u32 %v7085_v11, %v6102_v7  ;;  %v6981_v51 = vld [vmem:[%s7659_s6 + $0x814] sm:$0xf0]  ;;  %v5814_v62 = vld [vmem:[%s7659_s6 + $0x908] sm:$0xf]  ;;  %v6087_v3 = vor.u32 %v7081_v34, %v6086_v33 }
 0x187   : > { %4083 = vmatpush.bf16.msra.mxu3 %v6135_v30  ;;  %v8480_v30 = vpop.f32.mrf.mxu3  ;;  %v7013_v63 = vld [vmem:[%s7659_s6 + $0x914] sm:$0xf0]  ;;  %v5942_v0 = vld [vmem:[%s7659_s6 + $0xa08] sm:$0xf] }
 0x188   : > { %4042 = vmatpush.bf16.msra.mxu0 %v5735_v53  ;;  %v8486_v53 = vpop.f32.mrf.mxu0  ;;  %v7045_v5 = vld [vmem:[%s7659_s6 + $0xa14] sm:$0xf0]  ;;  %v6070_v6 = vld [vmem:[%s7659_s6 + $0xb08] sm:$0xf] }
 0x189   : > { %4056 = vmatpush.bf16.msra.mxu1 %v5863_v55  ;;  %v5831_v55 = vor.u32 %v7017_v23, %v5830_v20  ;;  %v7077_v7 = vld [vmem:[%s7659_s6 + $0xb14] sm:$0xf0]  ;;  %v6310_v11 = vld [vmem:[%s7659_s6 + $0xce8] sm:$0xf]  ;;  %v5943_v23 = vor.u32 %v7045_v5, %v5942_v0 }
 0x18a   : > { %4070 = vmatpush.bf16.msra.mxu2 %v5991_v59  ;;  %v5959_v59 = vor.u32 %v7049_v26, %v5958_v25  ;;  %v7169_v15 = vld [vmem:[%s7659_s6 + $0xdf4] sm:$0xf0]  ;;  %v6566_v19 = vld [vmem:[%s7659_s6 + $0xee8] sm:$0xf]  ;;  %v6071_v33 = vor.u32 %v7077_v7, %v6070_v6  ;;  %v3726_v7 = vadd.f32 %v8462_v52, %v8458_v49 }
 0x18b   : > { %4084 = vmatpush.bf16.msra.mxu3 %v6119_v2  ;;  %v8491_v2 = vpop.f32.mrf.mxu1  ;;  %v7201_v20 = vld [vmem:[%s7659_s6 + $0xef4] sm:$0xf0]  ;;  %v6694_v25 = vld [vmem:[%s7659_s6 + $0xfe8] sm:$0xf] }
 0x18c   : > { %4043 = vmatpush.bf16.msra.mxu0 %v5719_v12  ;;  %v7137_v12 = vld [vmem:[%s7659_s6 + $0xcf4] sm:$0xf0]  ;;  %v6422_v44 = vld [vmem:[%s7659_s6 + $0xdc8] sm:$0xf] }
 0x18d   : > { %4057 = vmatpush.bf16.msra.mxu1 %v5847_v8  ;;  %v6438_v8 = vld [vmem:[%s7659_s6 + $0xde8] sm:$0xf]  ;;  %v7233_v26 = vld [vmem:[%s7659_s6 + $0xff4] sm:$0xf0]  ;;  %v6311_v34 = vor.u32 %v7137_v12, %v6310_v11  ;;  %v8507_v43 = vpop.f32.mrf.mxu2 }
 0x18e   : > { %4071 = vmatpush.bf16.msra.mxu2 %v5975_v14  ;;  %v5687_v14 = vor.u32 %v6981_v51, %v5686_v50  ;;  %v6567_v50 = vor.u32 %v7201_v20, %v6566_v19  ;;  %v6294_v51 = vld [vmem:[%s7659_s6 + $0xcc8] sm:$0xf]  ;;  %v7133_v47 = vld [vmem:[%s7659_s6 + $0xcd4] sm:$0xf0] }
 0x18f   : > { %4085 = vmatpush.bf16.msra.mxu3 %v6103_v22  ;;  %v5815_v22 = vor.u32 %v7013_v63, %v5814_v62  ;;  %v6550_v62 = vld [vmem:[%s7659_s6 + $0xec8] sm:$0xf]  ;;  %v7197_v63 = vld [vmem:[%s7659_s6 + $0xed4] sm:$0xf0]  ;;  %v8512_v0 = vpop.f32.mrf.mxu3  ;;  %v6295_v6 = vor.u32 %v7133_v47, %v6294_v51 }
 0x190   : > { %4044 = vmatpush.bf16.msra.mxu0 %v5703_v37  ;;  %v6439_v37 = vor.u32 %v7169_v15, %v6438_v8  ;;  %v7229_v5 = vld [vmem:[%s7659_s6 + $0xfd4] sm:$0xf0]  ;;  %v8518_v11 = vpop.f32.mrf.mxu0  ;;  %v6551_v8 = vor.u32 %v7197_v63, %v6550_v62  ;;  %v6406_v19 = vld [vmem:[%s7659_s6 + $0xda8] sm:$0xf] }
 0x191   : > { %4058 = vmatpush.bf16.msra.mxu1 %v5831_v55  ;;  %v6695_v55 = vor.u32 %v7233_v26, %v6694_v25  ;;  %v7129_v15 = vld [vmem:[%s7659_s6 + $0xcb4] sm:$0xf0]  ;;  %v6534_v49 = vld [vmem:[%s7659_s6 + $0xea8] sm:$0xf]  ;;  %v3740_v26 = vadd.f32 %v8475_v21, %v3726_v7  ;;  %v3504_v21 = vadd.f32 %v8121_v56, %v8111_v42 }
 0x192   : > { %4072 = vmatpush.bf16.msra.mxu2 %v5959_v59  ;;  %v7165_v59 = vld [vmem:[%s7659_s6 + $0xdd4] sm:$0xf0]  ;;  %v6390_v51 = vld [vmem:[%s7659_s6 + $0xd88] sm:$0xf] }
 0x193   : > { %4086 = vmatpush.bf16.msra.mxu3 %v6087_v3  ;;  %v6678_v3 = vld [vmem:[%s7659_s6 + $0xfc8] sm:$0xf]  ;;  %v6423_v12 = vor.u32 %v7165_v59, %v6422_v44  ;;  %v8523_v20 = vpop.f32.mrf.mxu1  ;;  %v7193_v52 = vld [vmem:[%s7659_s6 + $0xeb4] sm:$0xf0] }
 0x194   : > { %4045 = vmatpush.bf16.msra.mxu0 %v5687_v14  ;;  %v6278_v14 = vld [vmem:[%s7659_s6 + $0xca8] sm:$0xf]  ;;  %v6679_v47 = vor.u32 %v7229_v5, %v6678_v3  ;;  %v7157_v59 = vld [vmem:[%s7659_s6 + $0xd94] sm:$0xf0] }
 0x195   : > { %4059 = vmatpush.bf16.msra.mxu1 %v5815_v22  ;;  %v7161_v22 = vld [vmem:[%s7659_s6 + $0xdb4] sm:$0xf0]  ;;  %v6662_v44 = vld [vmem:[%s7659_s6 + $0xfa8] sm:$0xf]  ;;  %v6279_v25 = vor.u32 %v7129_v15, %v6278_v14  ;;  %v6391_v14 = vor.u32 %v7157_v59, %v6390_v51 }
 0x196   : > { %4073 = vmatpush.bf16.msra.mxu2 %v5943_v23  ;;  %v7225_v23 = vld [vmem:[%s7659_s6 + $0xfb4] sm:$0xf0]  ;;  %v6518_v62 = vld [vmem:[%s7659_s6 + $0xe88] sm:$0xf] }
 0x197   : > { %4087 = vmatpush.bf16.msra.mxu3 %v6071_v33  ;;  %4046 = vmatmul.bf16.vlgmr.msra.gmra.mxu0 %v7892_v31  ;;  %v6407_v33 = vor.u32 %v7161_v22, %v6406_v19  ;;  %v7189_v63 = vld [vmem:[%s7659_s6 + $0xe94] sm:$0xf0]  ;;  %v6646_v3 = vld [vmem:[%s7659_s6 + $0xf88] sm:$0xf] }
 0x198   : > { %4094 = vmatpush.bf16.msrb.mxu0 %v6311_v34  ;;  %4060 = vmatmul.bf16.vlgmr.msra.gmra.mxu1 %v7899_v36  ;;  %v6535_v34 = vor.u32 %v7193_v52, %v6534_v49  ;;  %v7221_v5 = vld [vmem:[%s7659_s6 + $0xf94] sm:$0xf0]  ;;  %v6519_v15 = vor.u32 %v7189_v63, %v6518_v62  ;;  %v6246_v19 = vld [vmem:[%s7659_s6 + $0xc68] sm:$0xf] }
 0x199   : > { %4108 = vmatpush.bf16.msrb.mxu1 %v6439_v37  ;;  %4074 = vmatmul.bf16.vlgmr.msra.gmra.mxu2 %v7897_v35  ;;  %v6262_v37 = vld [vmem:[%s7659_s6 + $0xc88] sm:$0xf]  ;;  %v6647_v42 = vor.u32 %v7221_v5, %v6646_v3  ;;  %v7153_v56 = vld [vmem:[%s7659_s6 + $0xd74] sm:$0xf0] }
 0x19a   : > { %4122 = vmatpush.bf16.msrb.mxu2 %v6567_v50  ;;  %4088 = vmatmul.bf16.vlgmr.msra.gmra.mxu3 %v7903_v40  ;;  %v7125_v50 = vld [vmem:[%s7659_s6 + $0xc94] sm:$0xf0]  ;;  %v6374_v22 = vld [vmem:[%s7659_s6 + $0xd68] sm:$0xf] }
 0x19b   : > { %4136 = vmatpush.bf16.msrb.mxu3 %v6695_v55  ;;  %v6663_v55 = vor.u32 %v7225_v23, %v6662_v44  ;;  %v6263_v7 = vor.u32 %v7125_v50, %v6262_v37  ;;  %v6502_v49 = vld [vmem:[%s7659_s6 + $0xe68] sm:$0xf]  ;;  %v7185_v52 = vld [vmem:[%s7659_s6 + $0xe74] sm:$0xf0]  ;;  %v8556_v44 = vpop.f32.mrf.mxu0  ;;  %v6375_v50 = vor.u32 %v7153_v56, %v6374_v22 }
 0x19c   : > { %4095 = vmatpush.bf16.msrb.mxu0 %v6295_v6  ;;  %v8545_v6 = vpop.f32.mrf.mxu2  ;;  %v7217_v23 = vld [vmem:[%s7659_s6 + $0xf74] sm:$0xf0]  ;;  %v6503_v51 = vor.u32 %v7185_v52, %v6502_v49  ;;  %v6614_v3 = vld [vmem:[%s7659_s6 + $0xf48] sm:$0xf] }
 0x19d   : > { %4109 = vmatpush.bf16.msrb.mxu1 %v6423_v12  ;;  %v3754_v12 = vadd.f32 %v8480_v30, %v3740_v26  ;;  %v6630_v30 = vld [vmem:[%s7659_s6 + $0xf68] sm:$0xf]  ;;  %v3728_v26 = vadd.f32 %v8491_v2, %v8486_v53  ;;  %v7117_v59 = vld [vmem:[%s7659_s6 + $0xc54] sm:$0xf0] }
 0x19e   : > { %4123 = vmatpush.bf16.msrb.mxu2 %v6551_v8  ;;  %v8548_v8 = vpop.f32.mrf.mxu3  ;;  %v6631_v62 = vor.u32 %v7217_v23, %v6630_v30  ;;  %v7149_v53 = vld [vmem:[%s7659_s6 + $0xd54] sm:$0xf0]  ;;  %v6486_v2 = vld [vmem:[%s7659_s6 + $0xe48] sm:$0xf] }
 0x19f   : > { %4137 = vmatpush.bf16.msrb.mxu3 %v6679_v47  ;;  %v7121_v47 = vld [vmem:[%s7659_s6 + $0xc74] sm:$0xf0]  ;;  %v3768_v37 = vadd.f32 %v8518_v11, %v3754_v12  ;;  %v3742_v11 = vadd.f32 %v8507_v43, %v3728_v26  ;;  %v6342_v22 = vld [vmem:[%s7659_s6 + $0xd28] sm:$0xf] }
 0x1a0   : > { %4096 = vmatpush.bf16.msrb.mxu0 %v6279_v25  ;;  %v3518_v25 = vadd.f32 %v8135_v9, %v3504_v21  ;;  %v6358_v9 = vld [vmem:[%s7659_s6 + $0xd48] sm:$0xf]  ;;  %v7181_v63 = vld [vmem:[%s7659_s6 + $0xe54] sm:$0xf0] }
 0x1a1   : > { %4110 = vmatpush.bf16.msrb.mxu1 %v6407_v33  ;;  %v8563_v33 = vpop.f32.mrf.mxu1  ;;  %v7213_v5 = vld [vmem:[%s7659_s6 + $0xf54] sm:$0xf0]  ;;  %v3782_v12 = vadd.f32 %v8523_v20, %v3768_v37  ;;  %v6470_v49 = vld [vmem:[%s7659_s6 + $0xe28] sm:$0xf]  ;;  %v3756_v26 = vadd.f32 %v8512_v0, %v3742_v11  ;;  %v4776_v11 = vld [vmem:[%s7659_s6 + $0xf8] sm:$0xf0] }
 0x1a2   : > { %4124 = vmatpush.bf16.msrb.mxu2 %v6535_v34  ;;  %v6247_v34 = vor.u32 %v7121_v47, %v6246_v19  ;;  %v3532_v21 = vadd.f32 %v8140_v18, %v3518_v25  ;;  %v6214_v19 = vld [vmem:[%s7659_s6 + $0xc28] sm:$0xf]  ;;  %v7113_v47 = vld [vmem:[%s7659_s6 + $0xc34] sm:$0xf0] }
 0x1a3   : > { %4138 = vmatpush.bf16.msrb.mxu3 %v6663_v55  ;;  %v6230_v55 = vld [vmem:[%s7659_s6 + $0xc48] sm:$0xf]  ;;  %v7145_v56 = vld [vmem:[%s7659_s6 + $0xd34] sm:$0xf0]  ;;  %v3823_v30 = vpop.f32.mrf.mxu0 }
 0x1a4   : > { %4097 = vmatpush.bf16.msrb.mxu0 %v6263_v7  ;;  %v6231_v7 = vor.u32 %v7117_v59, %v6230_v55  ;;  %v3546_v18 = vadd.f32 %v8196_v13, %v3532_v21  ;;  %v8581_v43 = vpop.f32.mrf.mxu2  ;;  %v7177_v20 = vld [vmem:[%s7659_s6 + $0xe34] sm:$0xf0]  ;;  %v6598_v23 = vld [vmem:[%s7659_s6 + $0xf28] sm:$0xf]  ;;  %v6215_v13 = vor.u32 %v7113_v47, %v6214_v19  ;;  %v6343_v55 = vor.u32 %v7145_v56, %v6342_v22  ;;  %v6751_v21 = vld [vmem:[%s7659_s6 + $0xec] sm:$0xf] }
 0x1a5   : > { %4111 = vmatpush.bf16.msrb.mxu1 %v6391_v14  ;;  %v6359_v14 = vor.u32 %v7149_v53, %v6358_v9  ;;  %v7209_v25 = vld [vmem:[%s7659_s6 + $0xf34] sm:$0xf0]  ;;  %v6198_v37 = vld [vmem:[%s7659_s6 + $0xc08] sm:$0xf]  ;;  %v6471_v59 = vor.u32 %v7177_v20, %v6470_v49  ;;  %v6815_v19 = vld [vmem:[%s7659_s6 + $0x2ec] sm:$0xf]  ;;  %v4779_v49 = vor.u32 %v6751_v21, %v4776_v11 }
 0x1a6   : > { %4125 = vmatpush.bf16.msrb.mxu2 %v6519_v15  ;;  %v6487_v15 = vor.u32 %v7181_v63, %v6486_v2  ;;  %v8586_v52 = vpop.f32.mrf.mxu3  ;;  %v6326_v9 = vld [vmem:[%s7659_s6 + $0xd08] sm:$0xf]  ;;  %v7141_v0 = vld [vmem:[%s7659_s6 + $0xd14] sm:$0xf0]  ;;  %v3560_v53 = vadd.f32 %v8200_v16, %v3546_v18  ;;  %v6599_v2 = vor.u32 %v7209_v25, %v6598_v23  ;;  %v5032_v47 = vld [vmem:[%s7659_s6 + $0x2f8] sm:$0xf0] }
 0x1a7   : > { %4139 = vmatpush.bf16.msrb.mxu3 %v6647_v42  ;;  %v6615_v42 = vor.u32 %v7213_v5, %v6614_v3  ;;  %v7173_v63 = vld [vmem:[%s7659_s6 + $0xe14] sm:$0xf0]  ;;  %v6582_v3 = vld [vmem:[%s7659_s6 + $0xf08] sm:$0xf]  ;;  %v6327_v22 = vor.u32 %v7141_v0, %v6326_v9  ;;  %v6847_v18 = vld [vmem:[%s7659_s6 + $0x3ec] sm:$0xf] }
 0x1a8   : > { %4098 = vmatpush.bf16.msrb.mxu0 %v6247_v34  ;;  %v7205_v5 = vld [vmem:[%s7659_s6 + $0xf14] sm:$0xf0]  ;;  %v6811_v9 = vld [vmem:[%s7659_s6 + $0x2cc] sm:$0xf]  ;;  %v5016_v0 = vld [vmem:[%s7659_s6 + $0x2d8] sm:$0xf0] }
 0x1a9   : > { %4112 = vmatpush.bf16.msrb.mxu1 %v6375_v50  ;;  %v8591_v34 = vpop.f32.mrf.mxu1  ;;  %v7109_v50 = vld [vmem:[%s7659_s6 + $0xc14] sm:$0xf0]  ;;  %v4744_v21 = vld [vmem:[%s7659_s6 + $0xb8] sm:$0xf0]  ;;  %v6775_v11 = vld [vmem:[%s7659_s6 + $0x1ac] sm:$0xf] }
 0x1aa   : > { %4126 = vmatpush.bf16.msrb.mxu2 %v6503_v51  ;;  %v3796_v51 = vadd.f32 %v8545_v6, %v3782_v12  ;;  %v3770_v6 = vadd.f32 %v8556_v44, %v3756_v26  ;;  %v3574_v12 = vadd.f32 %v8217_v4, %v3560_v53  ;;  %v6583_v4 = vor.u32 %v7205_v5, %v6582_v3  ;;  %v5144_v53 = vld [vmem:[%s7659_s6 + $0x3d8] sm:$0xf0] }
 0x1ab   : > { %4140 = vmatpush.bf16.msrb.mxu3 %v6631_v62  ;;  %v6454_v62 = vld [vmem:[%s7659_s6 + $0xe08] sm:$0xf]  ;;  %v5035_v26 = vor.u32 %v6815_v19, %v5032_v47  ;;  %v5019_v5 = vor.u32 %v6811_v9, %v5016_v0  ;;  %v6839_v19 = vld [vmem:[%s7659_s6 + $0x3ac] sm:$0xf]  ;;  %v5128_v47 = vld [vmem:[%s7659_s6 + $0x3b8] sm:$0xf0] }
 0x1ac   : > { %4099 = vmatpush.bf16.msrb.mxu0 %v6231_v7  ;;  %v6783_v7 = vld [vmem:[%s7659_s6 + $0x1ec] sm:$0xf]  ;;  %v3810_v16 = vadd.f32 %v8548_v8, %v3796_v51  ;;  %v6455_v44 = vor.u32 %v7173_v63, %v6454_v62  ;;  %v3851_v56 = vpop.f32.mrf.mxu2  ;;  %v3784_v20 = vadd.f32 %v8563_v33, %v3770_v6  ;;  %v3588_v51 = vadd.f32 %v8222_v54, %v3574_v12  ;;  %v3825_v33 = vpop.f32.mrf.mxu0 }
 0x1ad   : > { %4113 = vmatpush.bf16.msrb.mxu1 %v6359_v14  ;;  %v6199_v14 = vor.u32 %v7109_v50, %v6198_v37  ;;  %v4760_v37 = vld [vmem:[%s7659_s6 + $0xd8] sm:$0xf0]  ;;  %v6779_v50 = vld [vmem:[%s7659_s6 + $0x1cc] sm:$0xf] }
 0x1ae   : > { %4127 = vmatpush.bf16.msrb.mxu2 %v6487_v15  ;;  %v4904_v15 = vld [vmem:[%s7659_s6 + $0x1f8] sm:$0xf0]  ;;  %v3824_v23 = vadd.f32 %v3823_v30, %v3810_v16  ;;  %v8615_v8 = vpop.f32.mrf.mxu3  ;;  %v3798_v62 = vadd.f32 %v8581_v43, %v3784_v20  ;;  %v6843_v30 = vld [vmem:[%s7659_s6 + $0x3cc] sm:$0xf] }
 0x1af   : > { %4141 = vmatpush.bf16.msrb.mxu3 %v6615_v42  ;;  %v5160_v42 = vld [vmem:[%s7659_s6 + $0x3f8] sm:$0xf0]  ;;  %v4907_v25 = vor.u32 %v6783_v7, %v4904_v15  ;;  %v6743_v6 = vld [vmem:[%s7659_s6 + $0xac] sm:$0xf] }
 0x1b0   : > { %4100 = vmatpush.bf16.msrb.mxu0 %v6215_v13  ;;  %v6747_v13 = vld [vmem:[%s7659_s6 + $0xcc] sm:$0xf]  ;;  %v3838_v3 = vadd.f32 %v8591_v34, %v3824_v23  ;;  %v4872_v7 = vld [vmem:[%s7659_s6 + $0x1b8] sm:$0xf0]  ;;  %v3812_v34 = vadd.f32 %v8586_v52, %v3798_v62  ;;  %v5131_v23 = vor.u32 %v6839_v19, %v5128_v47 }
 0x1b1   : > { %4114 = vmatpush.bf16.msrb.mxu1 %v6343_v55  ;;  %v5163_v55 = vor.u32 %v6847_v18, %v5160_v42  ;;  %v3839_v63 = vpop.f32.mrf.mxu1  ;;  %v4763_v54 = vor.u32 %v6747_v13, %v4760_v37  ;;  %v6807_v12 = vld [vmem:[%s7659_s6 + $0x2ac] sm:$0xf]  ;;  %v4875_v18 = vor.u32 %v6775_v11, %v4872_v7  ;;  %v4824_v19 = vld [vmem:[%s7659_s6 + $0x158] sm:$0xf0] }
 0x1b2   : > { %4128 = vmatpush.bf16.msrb.mxu2 %v6471_v59  ;;  %v4888_v59 = vld [vmem:[%s7659_s6 + $0x1d8] sm:$0xf0]  ;;  %v3852_v15 = vadd.f32 %v3851_v56, %v3838_v3  ;;  %v6739_v52 = vld [vmem:[%s7659_s6 + $0x8c] sm:$0xf] }
 0x1b3   : > { %4142 = vmatpush.bf16.msrb.mxu3 %v6599_v2  ;;  %v3602_v2 = vadd.f32 %v8275_v57, %v3588_v51  ;;  %v4891_v43 = vor.u32 %v6779_v50, %v4888_v59  ;;  %v5147_v57 = vor.u32 %v6843_v30, %v5144_v53  ;;  %v4728_v56 = vld [vmem:[%s7659_s6 + $0x98] sm:$0xf0]  ;;  %v6835_v51 = vld [vmem:[%s7659_s6 + $0x38c] sm:$0xf] }
 0x1b4   : > { %4101 = vmatpush.bf16.msrb.mxu0 %v6199_v14  ;;  %v5000_v14 = vld [vmem:[%s7659_s6 + $0x2b8] sm:$0xf0]  ;;  %v3853_v20 = vpop.f32.mrf.mxu2  ;;  %v3866_v13 = vadd.f32 %v8615_v8, %v3852_v15  ;;  %v3879_v50 = vpop.f32.mrf.mxu0  ;;  %v4731_v59 = vor.u32 %v6739_v52, %v4728_v56  ;;  %v6767_v53 = vld [vmem:[%s7659_s6 + $0x16c] sm:$0xf] }
 0x1b5   : > { %4115 = vmatpush.bf16.msrb.mxu1 %v6327_v22  ;;  %v3616_v16 = vadd.f32 %v8279_v61, %v3602_v2  ;;  %v4747_v22 = vor.u32 %v6743_v6, %v4744_v21  ;;  %v5003_v42 = vor.u32 %v6807_v12, %v5000_v14  ;;  %v4712_v30 = vld [vmem:[%s7659_s6 + $0x78] sm:$0xf0]  ;;  %v6831_v6 = vld [vmem:[%s7659_s6 + $0x36c] sm:$0xf] }
 0x1b6   : > { %4129 = vmatpush.bf16.msrb.mxu2 %v6455_v44  ;;  %v3826_v44 = vadd.f32 %v3825_v33, %v3812_v34  ;;  %v3867_v37 = vpop.f32.mrf.mxu3  ;;  %v3880_v62 = vadd.f32 %v3879_v50, %v3866_v13  ;;  %v6735_v33 = vld [vmem:[%s7659_s6 + $0x6c] sm:$0xf]  ;;  %v4840_v3 = vld [vmem:[%s7659_s6 + $0x178] sm:$0xf0] }
 0x1b7   : > { %4143 = vmatpush.bf16.msrb.mxu3 %v6583_v4  ;;  %4102 = vmatmul.bf16.vlgmr.msrb.gmra.mxu0 %v7968_v32  ;;  %v6771_v4 = vld [vmem:[%s7659_s6 + $0x18c] sm:$0xf]  ;;  %v3630_v61 = vadd.f32 %v8296_v24, %v3616_v16  ;;  %v5096_v21 = vld [vmem:[%s7659_s6 + $0x378] sm:$0xf0]  ;;  %v4843_v14 = vor.u32 %v6767_v53, %v4840_v3 }
 0x1b8   : > { %4150 = vmatpush.bf16.msra.mxu0 %v4779_v49  ;;  %4116 = vmatmul.bf16.vlgmr.msrb.gmra.mxu1 %v7975_v41  ;;  %v4856_v49 = vld [vmem:[%s7659_s6 + $0x198] sm:$0xf0]  ;;  %v3840_v0 = vadd.f32 %v3839_v63, %v3826_v44  ;;  %v6731_v7 = vld [vmem:[%s7659_s6 + $0x4c] sm:$0xf]  ;;  %v5099_v47 = vor.u32 %v6831_v6, %v5096_v21 }
 0x1b9   : > { %4164 = vmatpush.bf16.msra.mxu1 %v4907_v25  ;;  %4130 = vmatmul.bf16.vlgmr.msrb.gmra.mxu2 %v7973_v38  ;;  %v6803_v25 = vld [vmem:[%s7659_s6 + $0x28c] sm:$0xf]  ;;  %v4859_v24 = vor.u32 %v6771_v4, %v4856_v49  ;;  %v3893_v9 = vpop.f32.mrf.mxu1  ;;  %v3644_v2 = vadd.f32 %v8301_v29, %v3630_v61  ;;  %v4715_v29 = vor.u32 %v6735_v33, %v4712_v30  ;;  %v4696_v15 = vld [vmem:[%s7659_s6 + $0x58] sm:$0xf0] }
 0x1ba   : > { %4178 = vmatpush.bf16.msra.mxu2 %v5035_v26  ;;  %4144 = vmatmul.bf16.vlgmr.msrb.gmra.mxu3 %v7979_v46  ;;  %v4984_v26 = vld [vmem:[%s7659_s6 + $0x298] sm:$0xf0]  ;;  %v3854_v63 = vadd.f32 %v3853_v20, %v3840_v0  ;;  %v3894_v12 = vadd.f32 %v3893_v9, %v3880_v62  ;;  %v6827_v61 = vld [vmem:[%s7659_s6 + $0x34c] sm:$0xf] }
 0x1bb   : > { %4192 = vmatpush.bf16.msra.mxu3 %v5163_v55  ;;  %v5112_v55 = vld [vmem:[%s7659_s6 + $0x398] sm:$0xf0]  ;;  %v4987_v8 = vor.u32 %v6803_v25, %v4984_v26  ;;  %v3658_v11 = vadd.f32 %v8431_v60, %v3644_v2  ;;  %v6763_v60 = vld [vmem:[%s7659_s6 + $0x14c] sm:$0xf]  ;;  %v4699_v25 = vor.u32 %v6731_v7, %v4696_v15 }
 0x1bc   : > { %4151 = vmatpush.bf16.msra.mxu0 %v4763_v54  ;;  %v5115_v54 = vor.u32 %v6835_v51, %v5112_v55  ;;  %v3907_v16 = vpop.f32.mrf.mxu2  ;;  %v4952_v52 = vld [vmem:[%s7659_s6 + $0x258] sm:$0xf0]  ;;  %v3881_v56 = vpop.f32.mrf.mxu0  ;;  %v4827_v26 = vor.u32 %v6763_v60, %v4824_v19  ;;  %v6727_v13 = vld [vmem:[%s7659_s6 + $0x2c] sm:$0xf] }
 0x1bd   : > { %4165 = vmatpush.bf16.msra.mxu1 %v4891_v43  ;;  %v6799_v43 = vld [vmem:[%s7659_s6 + $0x26c] sm:$0xf]  ;;  %v5080_v20 = vld [vmem:[%s7659_s6 + $0x358] sm:$0xf0] }
 0x1be   : > { %4179 = vmatpush.bf16.msra.mxu2 %v5019_v5  ;;  %v4968_v5 = vld [vmem:[%s7659_s6 + $0x278] sm:$0xf0]  ;;  %v3921_v4 = vpop.f32.mrf.mxu3  ;;  %v6791_v0 = vld [vmem:[%s7659_s6 + $0x22c] sm:$0xf] }
 0x1bf   : > { %4193 = vmatpush.bf16.msra.mxu3 %v5147_v57  ;;  %v8669_v57 = vld [vmem:[%s8666_s8] sm:$0xf]  ;;  %v4971_v34 = vor.u32 %v6799_v43, %v4968_v5  ;;  %v4680_v55 = vld [vmem:[%s7659_s6 + $0x38] sm:$0xf0]  ;;  %v6823_v53 = vld [vmem:[%s7659_s6 + $0x32c] sm:$0xf] }
 0x1c0   : > { %4152 = vmatpush.bf16.msra.mxu0 %v4747_v22  ;;  %v6795_v22 = vld [vmem:[%s7659_s6 + $0x24c] sm:$0xf]  ;;  %v4403_v44 = vperm.slane %v8669_v57, 0  ;;  %v4404_v49 = vperm.slane %v8669_v57, 1  ;;  %v4936_v62 = vld [vmem:[%s7659_s6 + $0x238] sm:$0xf0] }
 0x1c1   : > { %4166 = vmatpush.bf16.msra.mxu1 %v4875_v18  ;;  %v3868_v18 = vadd.f32 %v3867_v37, %v3854_v63  ;;  %v4955_v51 = vor.u32 %v6795_v22, %v4952_v52  ;;  %v3895_v9 = vpop.f32.mrf.mxu1  ;;  %v5064_v2 = vld [vmem:[%s7659_s6 + $0x338] sm:$0xf0]  ;;  %v6723_v43 = vld [vmem:[%s7659_s6 + $0xc] sm:$0xf] }
 0x1c2   : > { %4180 = vmatpush.bf16.msra.mxu2 %v5003_v42  ;;  %v3908_v42 = vadd.f32 %v3907_v16, %v3894_v12  ;;  %v4664_v5 = vld [vmem:[%s7659_s6 + $0x18] sm:$0xf0]  ;;  %v6755_v6 = vld [vmem:[%s7659_s6 + $0x10c] sm:$0xf] }
 0x1c3   : > { %4194 = vmatpush.bf16.msra.mxu3 %v5131_v23  ;;  %v3672_v23 = vadd.f32 %v8437_v48, %v3658_v11  ;;  %v3882_v37 = vadd.f32 %v3881_v56, %v3868_v18  ;;  %v5083_v48 = vor.u32 %v6827_v61, %v5080_v20  ;;  %v4792_v21 = vld [vmem:[%s7659_s6 + $0x118] sm:$0xf0]  ;;  %v6787_v11 = vld [vmem:[%s7659_s6 + $0x20c] sm:$0xf]  ;;  %v4667_v52 = vor.u32 %v6723_v43, %v4664_v5 }
 0x1c4   : > { %4153 = vmatpush.bf16.msra.mxu0 %v4731_v59  ;;  %v3922_v50 = vadd.f32 %v3921_v4, %v3908_v42  ;;  %v6759_v59 = vld [vmem:[%s7659_s6 + $0x12c] sm:$0xf]  ;;  %v3909_v7 = vpop.f32.mrf.mxu2  ;;  %v4920_v12 = vld [vmem:[%s7659_s6 + $0x218] sm:$0xf0]  ;;  %v4795_v4 = vor.u32 %v6755_v6, %v4792_v21 }
 0x1c5   : > { %4167 = vmatpush.bf16.msra.mxu1 %v4859_v24  ;;  %v4808_v24 = vld [vmem:[%s7659_s6 + $0x138] sm:$0xf0]  ;;  %v3686_v33 = vadd.f32 %v8451_v28, %v3672_v23  ;;  %v4939_v28 = vor.u32 %v6791_v0, %v4936_v62  ;;  %v6911_v22 = vld [vmem:[%s7659_s6 + $0x5ec] sm:$0xf]  ;;  %v4923_v61 = vor.u32 %v6787_v11, %v4920_v12 }
 0x1c6   : > { %4181 = vmatpush.bf16.msra.mxu2 %v4987_v8  ;;  %v4411_v8 = vadd.f32 %v4403_v44, %v8322_v27  ;;  %v4412_v30 = vadd.f32 %v4404_v49, %v3922_v50  ;;  %v4811_v3 = vor.u32 %v6759_v59, %v4808_v24  ;;  %v3896_v27 = vadd.f32 %v3895_v9, %v3882_v37  ;;  %v3923_v19 = vpop.f32.mrf.mxu3  ;;  %v5288_v16 = vld [vmem:[%s7659_s6 + $0x4f8] sm:$0xf0]  ;;  %v6943_v42 = vld [vmem:[%s7659_s6 + $0x6ec] sm:$0xf] }
 0x1c7   : > { %4195 = vmatpush.bf16.msra.mxu3 %v5115_v54  ;;  %v4683_v54 = vor.u32 %v6727_v13, %v4680_v55  ;;  %v3700_v15 = vadd.f32 %v8456_v45, %v3686_v33  ;;  %v5416_v18 = vld [vmem:[%s7659_s6 + $0x5f8] sm:$0xf0]  ;;  %v6975_v20 = vld [vmem:[%s7659_s6 + $0x7ec] sm:$0xf] }
 0x1c8   : > { %4154 = vmatpush.bf16.msra.mxu0 %v4715_v29  ;;  %v4419_v63 = vpack.c.bf16 %v4412_v30, %v4411_v8  ;;  %v5067_v29 = vor.u32 %v6823_v53, %v5064_v2  ;;  %v3910_v60 = vadd.f32 %v3909_v7, %v3896_v27  ;;  %v5544_v56 = vld [vmem:[%s7659_s6 + $0x6f8] sm:$0xf0]  ;;  %v5419_v50 = vor.u32 %v6911_v22, %v5416_v18  ;;  %v6875_v55 = vld [vmem:[%s7659_s6 + $0x4cc] sm:$0xf] }
 0x1c9   : > { %4168 = vmatpush.bf16.msra.mxu1 %v4843_v14  ;;  %v6819_v14 = vld [vmem:[%s7659_s6 + $0x30c] sm:$0xf]  ;;  %v5672_v23 = vld [vmem:[%s7659_s6 + $0x7f8] sm:$0xf0]  ;;  %v4415_v13 = vadd.f32 %v4403_v44, %v3700_v15 }
 0x1ca   : > { %4182 = vmatpush.bf16.msra.mxu2 %v4971_v34  ;;  %v5048_v34 = vld [vmem:[%s7659_s6 + $0x318] sm:$0xf0]  ;;  %4423 = vst [vmem:[%s8708_s20] sm:$0xff] %v4419_v63  ;;  %v3924_v45 = vadd.f32 %v3923_v19, %v3910_v60  ;;  %v6907_v24 = vld [vmem:[%s7659_s6 + $0x5cc] sm:$0xf] }
 0x1cb   : > { %4196 = vmatpush.bf16.msra.mxu3 %v5099_v47  ;;  %v6879_v47 = vld [vmem:[%s7659_s6 + $0x4ec] sm:$0xf]  ;;  %v5272_v59 = vld [vmem:[%s7659_s6 + $0x4d8] sm:$0xf0] }
 0x1cc   : > { %4155 = vmatpush.bf16.msra.mxu0 %v4699_v25  ;;  %v5051_v25 = vor.u32 %v6819_v14, %v5048_v34  ;;  %v4416_v37 = vadd.f32 %v4404_v49, %v3924_v45  ;;  %v5400_v9 = vld [vmem:[%s7659_s6 + $0x5d8] sm:$0xf0]  ;;  %v6939_v0 = vld [vmem:[%s7659_s6 + $0x6cc] sm:$0xf]  ;;  %v5275_v49 = vor.u32 %v6875_v55, %v5272_v59 }
 0x1cd   : > { %4169 = vmatpush.bf16.msra.mxu1 %v4827_v26  ;;  %v5291_v26 = vor.u32 %v6879_v47, %v5288_v16  ;;  %v5528_v62 = vld [vmem:[%s7659_s6 + $0x6d8] sm:$0xf0]  ;;  %v6971_v57 = vld [vmem:[%s7659_s6 + $0x7cc] sm:$0xf]  ;;  %v5403_v30 = vor.u32 %v6907_v24, %v5400_v9 }
 0x1ce   : > { %4183 = vmatpush.bf16.msra.mxu2 %v4955_v51  ;;  %v5547_v51 = vor.u32 %v6943_v42, %v5544_v56  ;;  %v4421_v8 = vpack.c.bf16 %v4416_v37, %v4415_v13  ;;  %v5656_v44 = vld [vmem:[%s7659_s6 + $0x7d8] sm:$0xf0]  ;;  %v6871_v33 = vld [vmem:[%s7659_s6 + $0x4ac] sm:$0xf]  ;;  %v5531_v53 = vor.u32 %v6939_v0, %v5528_v62 }
 0x1cf   : > { %4197 = vmatpush.bf16.msra.mxu3 %v5083_v48  ;;  %v5675_v48 = vor.u32 %v6975_v20, %v5672_v23  ;;  %v5256_v2 = vld [vmem:[%s7659_s6 + $0x4b8] sm:$0xf0]  ;;  %v6935_v5 = vld [vmem:[%s7659_s6 + $0x6ac] sm:$0xf] }
 0x1d0   : > { %4156 = vmatpush.bf16.msra.mxu0 %v4683_v54  ;;  %4425 = vst [vmem:[%s8708_s20 + $0x10] sm:$0xff] %v4421_v8  ;;  %v6903_v54 = vld [vmem:[%s7659_s6 + $0x5ac] sm:$0xf]  ;;  %v5384_v43 = vld [vmem:[%s7659_s6 + $0x5b8] sm:$0xf0]  ;;  %v5259_v6 = vor.u32 %v6871_v33, %v5256_v2 }
 0x1d1   : > { %4170 = vmatpush.bf16.msra.mxu1 %v4811_v3  ;;  %v5659_v3 = vor.u32 %v6971_v57, %v5656_v44  ;;  %v5512_v63 = vld [vmem:[%s7659_s6 + $0x6b8] sm:$0xf0]  ;;  %v6967_v27 = vld [vmem:[%s7659_s6 + $0x7ac] sm:$0xf]  ;;  %v5387_v21 = vor.u32 %v6903_v54, %v5384_v43 }
 0x1d2   : > { %4184 = vmatpush.bf16.msra.mxu2 %v4939_v28  ;;  %v5640_v28 = vld [vmem:[%s7659_s6 + $0x7b8] sm:$0xf0]  ;;  %v5515_v11 = vor.u32 %v6935_v5, %v5512_v63  ;;  %v6899_v7 = vld [vmem:[%s7659_s6 + $0x58c] sm:$0xf] }
 0x1d3   : > { %4198 = vmatpush.bf16.msra.mxu3 %v5067_v29  ;;  %v5240_v29 = vld [vmem:[%s7659_s6 + $0x498] sm:$0xf0]  ;;  %v6963_v34 = vld [vmem:[%s7659_s6 + $0x78c] sm:$0xf] }
 0x1d4   : > { %4157 = vmatpush.bf16.msra.mxu0 %v4667_v52  ;;  %v5368_v12 = vld [vmem:[%s7659_s6 + $0x598] sm:$0xf0]  ;;  %v6863_v22 = vld [vmem:[%s7659_s6 + $0x46c] sm:$0xf] }
 0x1d5   : > { %4171 = vmatpush.bf16.msra.mxu1 %v4795_v4  ;;  %v5496_v14 = vld [vmem:[%s7659_s6 + $0x698] sm:$0xf0]  ;;  %v3949_v19 = vpop.f32.mrf.mxu1  ;;  %v5371_v47 = vor.u32 %v6899_v7, %v5368_v12  ;;  %v6895_v18 = vld [vmem:[%s7659_s6 + $0x56c] sm:$0xf] }
 0x1d6   : > { %4185 = vmatpush.bf16.msra.mxu2 %v4923_v61  ;;  %v5624_v15 = vld [vmem:[%s7659_s6 + $0x798] sm:$0xf0]  ;;  %v6927_v4 = vld [vmem:[%s7659_s6 + $0x66c] sm:$0xf] }
 0x1d7   : > { %4199 = vmatpush.bf16.msra.mxu3 %v5051_v25  ;;  %4158 = vmatmul.bf16.vlgmr.msra.gmra.mxu0 %v7747_v58  ;;  %v6867_v58 = vld [vmem:[%s7659_s6 + $0x48c] sm:$0xf]  ;;  %v5224_v52 = vld [vmem:[%s7659_s6 + $0x478] sm:$0xf0]  ;;  %v5627_v56 = vor.u32 %v6963_v34, %v5624_v15 }
 0x1d8   : > { %4206 = vmatpush.bf16.msrb.mxu0 %v5291_v26  ;;  %4172 = vmatmul.bf16.vlgmr.msra.gmra.mxu1 %v7759_v10  ;;  %v6931_v10 = vld [vmem:[%s7659_s6 + $0x68c] sm:$0xf]  ;;  %v5243_v60 = vor.u32 %v6867_v58, %v5240_v29  ;;  %v5352_v45 = vld [vmem:[%s7659_s6 + $0x578] sm:$0xf0]  ;;  %v5227_v25 = vor.u32 %v6863_v22, %v5224_v52 }
 0x1d9   : > { %4220 = vmatpush.bf16.msrb.mxu1 %v5419_v50  ;;  %4186 = vmatmul.bf16.vlgmr.msra.gmra.mxu2 %v7752_v1  ;;  %v5643_v1 = vor.u32 %v6967_v27, %v5640_v28  ;;  %v5499_v16 = vor.u32 %v6931_v10, %v5496_v14  ;;  %v5480_v61 = vld [vmem:[%s7659_s6 + $0x678] sm:$0xf0]  ;;  %v6959_v20 = vld [vmem:[%s7659_s6 + $0x76c] sm:$0xf]  ;;  %v5355_v13 = vor.u32 %v6895_v18, %v5352_v45 }
 0x1da   : > { %4234 = vmatpush.bf16.msrb.mxu2 %v5547_v51  ;;  %4200 = vmatmul.bf16.vlgmr.msra.gmra.mxu3 %v7764_v17  ;;  %v3935_v17 = vpop.f32.mrf.mxu0  ;;  %v5608_v23 = vld [vmem:[%s7659_s6 + $0x778] sm:$0xf0]  ;;  %v6859_v26 = vld [vmem:[%s7659_s6 + $0x44c] sm:$0xf]  ;;  %v5483_v37 = vor.u32 %v6927_v4, %v5480_v61 }
 0x1db   : > { %4248 = vmatpush.bf16.msrb.mxu3 %v5675_v48  ;;  %v3950_v42 = vadd.f32 %v3949_v19, %v3935_v17  ;;  %v5208_v50 = vld [vmem:[%s7659_s6 + $0x458] sm:$0xf0]  ;;  %v6891_v51 = vld [vmem:[%s7659_s6 + $0x54c] sm:$0xf]  ;;  %v5611_v59 = vor.u32 %v6959_v20, %v5608_v23 }
 0x1dc   : > { %4207 = vmatpush.bf16.msrb.mxu0 %v5275_v49  ;;  %v5336_v55 = vld [vmem:[%s7659_s6 + $0x558] sm:$0xf0]  ;;  %v6923_v24 = vld [vmem:[%s7659_s6 + $0x64c] sm:$0xf]  ;;  %v3963_v9 = vpop.f32.mrf.mxu2  ;;  %v5211_v44 = vor.u32 %v6859_v26, %v5208_v50 }
 0x1dd   : > { %4221 = vmatpush.bf16.msrb.mxu1 %v5403_v30  ;;  %v5464_v48 = vld [vmem:[%s7659_s6 + $0x658] sm:$0xf0]  ;;  %v6955_v0 = vld [vmem:[%s7659_s6 + $0x74c] sm:$0xf]  ;;  %v3964_v8 = vadd.f32 %v3963_v9, %v3950_v42  ;;  %v3977_v57 = vpop.f32.mrf.mxu3  ;;  %v5339_v49 = vor.u32 %v6891_v51, %v5336_v55  ;;  %v3951_v30 = vpop.f32.mrf.mxu1 }
 0x1de   : > { %4235 = vmatpush.bf16.msrb.mxu2 %v5531_v53  ;;  %v5592_v62 = vld [vmem:[%s7659_s6 + $0x758] sm:$0xf0]  ;;  %v5467_v53 = vor.u32 %v6923_v24, %v5464_v48  ;;  %v6855_v2 = vld [vmem:[%s7659_s6 + $0x42c] sm:$0xf] }
 0x1df   : > { %4249 = vmatpush.bf16.msrb.mxu3 %v5659_v3  ;;  %v5192_v54 = vld [vmem:[%s7659_s6 + $0x438] sm:$0xf0]  ;;  %v6887_v3 = vld [vmem:[%s7659_s6 + $0x52c] sm:$0xf]  ;;  %v8771_v43 = vadd.f32 %v3977_v57, %v3964_v8  ;;  %v5595_v63 = vor.u32 %v6955_v0, %v5592_v62 }
 0x1e0   : > { %4208 = vmatpush.bf16.msrb.mxu0 %v5259_v6  ;;  %v5320_v27 = vld [vmem:[%s7659_s6 + $0x538] sm:$0xf0]  ;;  %v6919_v28 = vld [vmem:[%s7659_s6 + $0x62c] sm:$0xf]  ;;  %v5195_v58 = vor.u32 %v6855_v2, %v5192_v54 }
 0x1e1   : > { %4222 = vmatpush.bf16.msrb.mxu1 %v5387_v21  ;;  %v5448_v6 = vld [vmem:[%s7659_s6 + $0x638] sm:$0xf0]  ;;  %v6951_v21 = vld [vmem:[%s7659_s6 + $0x72c] sm:$0xf] }
 0x1e2   : > { %4236 = vmatpush.bf16.msrb.mxu2 %v5515_v11  ;;  %v3937_v33 = vpop.f32.mrf.mxu0  ;;  %v5576_v11 = vld [vmem:[%s7659_s6 + $0x738] sm:$0xf0]  ;;  %v6851_v29 = vld [vmem:[%s7659_s6 + $0x40c] sm:$0xf]  ;;  %v5451_v12 = vor.u32 %v6919_v28, %v5448_v6  ;;  %v9006_v6 = vld [vmem:[#allocation14_spill] sm:$0xff] }
 0x1e3   : > { %4250 = vmatpush.bf16.msrb.mxu3 %v5643_v1  ;;  %v3952_v5 = vadd.f32 %v3951_v30, %v3937_v33  ;;  %v5176_v7 = vld [vmem:[%s7659_s6 + $0x418] sm:$0xf0]  ;;  %v5323_v1 = vor.u32 %v6887_v3, %v5320_v27  ;;  %v6883_v10 = vld [vmem:[%s7659_s6 + $0x50c] sm:$0xf]  ;;  %v5579_v15 = vor.u32 %v6951_v21, %v5576_v11 }
 0x1e4   : > { %4209 = vmatpush.bf16.msrb.mxu0 %v5243_v60  ;;  %v5304_v14 = vld [vmem:[%s7659_s6 + $0x518] sm:$0xf0]  ;;  %v6915_v34 = vld [vmem:[%s7659_s6 + $0x60c] sm:$0xf]  ;;  %v5179_v42 = vor.u32 %v6851_v29, %v5176_v7 }
 0x1e5   : > { %4223 = vmatpush.bf16.msrb.mxu1 %v5371_v47  ;;  %v5432_v17 = vld [vmem:[%s7659_s6 + $0x618] sm:$0xf0]  ;;  %v6947_v60 = vld [vmem:[%s7659_s6 + $0x70c] sm:$0xf]  ;;  %v3965_v47 = vpop.f32.mrf.mxu2  ;;  %v3979_v61 = vpop.f32.mrf.mxu3  ;;  %v5307_v20 = vor.u32 %v6883_v10, %v5304_v14 }
 0x1e6   : > { %4237 = vmatpush.bf16.msrb.mxu2 %v5499_v16  ;;  %v5560_v19 = vld [vmem:[%s7659_s6 + $0x718] sm:$0xf0]  ;;  %v7007_v16 = vld [vmem:[%s7659_s6 + $0x8ec] sm:$0xf]  ;;  %v3966_v18 = vadd.f32 %v3965_v47, %v3952_v5  ;;  %v5435_v23 = vor.u32 %v6915_v34, %v5432_v17 }
 0x1e7   : > { %4251 = vmatpush.bf16.msrb.mxu3 %v5627_v56  ;;  %v5800_v22 = vld [vmem:[%s7659_s6 + $0x8f8] sm:$0xf0]  ;;  %v7039_v52 = vld [vmem:[%s7659_s6 + $0x9ec] sm:$0xf] }
 0x1e8   : > { %4210 = vmatpush.bf16.msrb.mxu0 %v5227_v25  ;;  %v5928_v56 = vld [vmem:[%s7659_s6 + $0x9f8] sm:$0xf0]  ;;  %v7071_v45 = vld [vmem:[%s7659_s6 + $0xaec] sm:$0xf]  ;;  %v5803_v50 = vor.u32 %v7007_v16, %v5800_v22 }
 0x1e9   : > { %4224 = vmatpush.bf16.msrb.mxu1 %v5355_v13  ;;  %v6056_v4 = vld [vmem:[%s7659_s6 + $0xaf8] sm:$0xf0]  ;;  %v7103_v25 = vld [vmem:[%s7659_s6 + $0xbec] sm:$0xf]  ;;  %v8794_v13 = vadd.f32 %v3979_v61, %v3966_v18  ;;  %v5931_v51 = vor.u32 %v7039_v52, %v5928_v56 }
 0x1ea   : > { %4238 = vmatpush.bf16.msrb.mxu2 %v5483_v37  ;;  %v6184_v26 = vld [vmem:[%s7659_s6 + $0xbf8] sm:$0xf0]  ;;  %v5563_v37 = vor.u32 %v6947_v60, %v5560_v19  ;;  %v6059_v55 = vor.u32 %v7071_v45, %v6056_v4  ;;  %v7035_v48 = vld [vmem:[%s7659_s6 + $0x9cc] sm:$0xf] }
 0x1eb   : > { %4252 = vmatpush.bf16.msrb.mxu3 %v5611_v59  ;;  %v7003_v59 = vld [vmem:[%s7659_s6 + $0x8cc] sm:$0xf]  ;;  %v5784_v24 = vld [vmem:[%s7659_s6 + $0x8d8] sm:$0xf0]  ;;  %v6187_v9 = vor.u32 %v7103_v25, %v6184_v26 }
 0x1ec   : > { %4211 = vmatpush.bf16.msrb.mxu0 %v5211_v44  ;;  %v5912_v0 = vld [vmem:[%s7659_s6 + $0x9d8] sm:$0xf0]  ;;  %v7067_v62 = vld [vmem:[%s7659_s6 + $0xacc] sm:$0xf] }
 0x1ed   : > { %4225 = vmatpush.bf16.msrb.mxu1 %v5339_v49  ;;  %v6040_v8 = vld [vmem:[%s7659_s6 + $0xad8] sm:$0xf0]  ;;  %v7099_v57 = vld [vmem:[%s7659_s6 + $0xbcc] sm:$0xf]  ;;  %v5787_v49 = vor.u32 %v7003_v59, %v5784_v24  ;;  %v5915_v33 = vor.u32 %v7035_v48, %v5912_v0 }
 0x1ee   : > { %4239 = vmatpush.bf16.msrb.mxu2 %v5467_v53  ;;  %v6168_v44 = vld [vmem:[%s7659_s6 + $0xbd8] sm:$0xf0]  ;;  %v6043_v30 = vor.u32 %v7067_v62, %v6040_v8  ;;  %v6999_v53 = vld [vmem:[%s7659_s6 + $0x8ac] sm:$0xf] }
 0x1ef   : > { %4253 = vmatpush.bf16.msrb.mxu3 %v5595_v63  ;;  %v5768_v2 = vld [vmem:[%s7659_s6 + $0x8b8] sm:$0xf0]  ;;  %v7031_v54 = vld [vmem:[%s7659_s6 + $0x9ac] sm:$0xf]  ;;  %v6171_v3 = vor.u32 %v7099_v57, %v6168_v44 }
 0x1f0   : > { %4212 = vmatpush.bf16.msrb.mxu0 %v5195_v58  ;;  %v5896_v5 = vld [vmem:[%s7659_s6 + $0x9b8] sm:$0xf0]  ;;  %v7063_v63 = vld [vmem:[%s7659_s6 + $0xaac] sm:$0xf] }
 0x1f1   : > { %4226 = vmatpush.bf16.msrb.mxu1 %v5323_v1  ;;  %v6024_v27 = vld [vmem:[%s7659_s6 + $0xab8] sm:$0xf0]  ;;  %v9005_v28 = vld [vmem:[#allocation13_spill] sm:$0xff]  ;;  %v5899_v29 = vor.u32 %v7031_v54, %v5896_v5 }
 0x1f2   : > { %4240 = vmatpush.bf16.msrb.mxu2 %v5451_v12  ;;  %v7095_v21 = vld [vmem:[%s7659_s6 + $0xbac] sm:$0xf]  ;;  %v6152_v11 = vld [vmem:[%s7659_s6 + $0xbb8] sm:$0xf0]  ;;  %v6027_v7 = vor.u32 %v7063_v63, %v6024_v27 }
 0x1f3   : > { %4254 = vmatpush.bf16.msrb.mxu3 %v5579_v15  ;;  %v9007_v58 = vld [vmem:[#allocation15_spill] sm:$0xff]  ;;  %v6995_v1 = vld [vmem:[%s7659_s6 + $0x88c] sm:$0xf]  ;;  %v6155_v14 = vor.u32 %v7095_v21, %v6152_v11 }
 0x1f4   : > { %4213 = vmatpush.bf16.msrb.mxu0 %v5179_v42  ;;  %v5752_v12 = vld [vmem:[%s7659_s6 + $0x898] sm:$0xf0]  ;;  %v7027_v10 = vld [vmem:[%s7659_s6 + $0x98c] sm:$0xf]  ;;  %v3991_v60 = vpop.f32.mrf.mxu0 }
 0x1f5   : > { %4227 = vmatpush.bf16.msrb.mxu1 %v5307_v20  ;;  %v5880_v34 = vld [vmem:[%s7659_s6 + $0x998] sm:$0xf0]  ;;  %v7059_v15 = vld [vmem:[%s7659_s6 + $0xa8c] sm:$0xf]  ;;  %v3992_v16 = vadd.f32 %v3991_v60, %v8771_v43  ;;  %v5755_v22 = vor.u32 %v6995_v1, %v5752_v12  ;;  %v4005_v52 = vpop.f32.mrf.mxu1 }
 0x1f6   : > { %4241 = vmatpush.bf16.msrb.mxu2 %v5435_v23  ;;  %v6008_v17 = vld [vmem:[%s7659_s6 + $0xa98] sm:$0xf0]  ;;  %v7091_v19 = vld [vmem:[%s7659_s6 + $0xb8c] sm:$0xf]  ;;  %v5883_v18 = vor.u32 %v7027_v10, %v5880_v34 }
 0x1f7   : > { %4255 = vmatpush.bf16.msrb.mxu3 %v5563_v37  ;;  %4214 = vmatmul.bf16.vlgmr.msrb.gmra.mxu0 %v7816_v39  ;;  %v5771_v39 = vor.u32 %v6999_v53, %v5768_v2  ;;  %v6136_v47 = vld [vmem:[%s7659_s6 + $0xb98] sm:$0xf0]  ;;  %v6011_v42 = vor.u32 %v7059_v15, %v6008_v17  ;;  %v6991_v56 = vld [vmem:[%s7659_s6 + $0x86c] sm:$0xf]  ;;  %v4006_v20 = vadd.f32 %v4005_v52, %v3992_v16 }
 0x1f8   : > { %4262 = vmatpush.bf16.msra.mxu0 %v5803_v50  ;;  %4228 = vmatmul.bf16.vlgmr.msrb.gmra.mxu1 %v9006_v6  ;;  %v5736_v45 = vld [vmem:[%s7659_s6 + $0x878] sm:$0xf0]  ;;  %v7023_v4 = vld [vmem:[%s7659_s6 + $0x96c] sm:$0xf]  ;;  %v6139_v61 = vor.u32 %v7091_v19, %v6136_v47 }
 0x1f9   : > { %4276 = vmatpush.bf16.msra.mxu1 %v5931_v51  ;;  %4242 = vmatmul.bf16.vlgmr.msrb.gmra.mxu2 %v9005_v28  ;;  %v5864_v23 = vld [vmem:[%s7659_s6 + $0x978] sm:$0xf0]  ;;  %v7055_v25 = vld [vmem:[%s7659_s6 + $0xa6c] sm:$0xf]  ;;  %v5739_v50 = vor.u32 %v6991_v56, %v5736_v45 }
 0x1fa   : > { %4290 = vmatpush.bf16.msra.mxu2 %v6059_v55  ;;  %4256 = vmatmul.bf16.vlgmr.msrb.gmra.mxu3 %v9007_v58  ;;  %v5992_v43 = vld [vmem:[%s7659_s6 + $0xa78] sm:$0xf0]  ;;  %v7087_v26 = vld [vmem:[%s7659_s6 + $0xb6c] sm:$0xf]  ;;  %v5867_v51 = vor.u32 %v7023_v4, %v5864_v23 }
 0x1fb   : > { %4304 = vmatpush.bf16.msra.mxu3 %v6187_v9  ;;  %v6120_v37 = vld [vmem:[%s7659_s6 + $0xb78] sm:$0xf0]  ;;  %v5995_v55 = vor.u32 %v7055_v25, %v5992_v43  ;;  %v6987_v59 = vld [vmem:[%s7659_s6 + $0x84c] sm:$0xf] }
 0x1fc   : > { %4263 = vmatpush.bf16.msra.mxu0 %v5787_v49  ;;  %v5720_v24 = vld [vmem:[%s7659_s6 + $0x858] sm:$0xf0]  ;;  %v7019_v48 = vld [vmem:[%s7659_s6 + $0x94c] sm:$0xf]  ;;  %v6123_v9 = vor.u32 %v7087_v26, %v6120_v37  ;;  %v4019_v0 = vpop.f32.mrf.mxu2  ;;  %v3993_v49 = vpop.f32.mrf.mxu0 }
 0x1fd   : > { %4277 = vmatpush.bf16.msra.mxu1 %v5915_v33  ;;  %v5848_v62 = vld [vmem:[%s7659_s6 + $0x958] sm:$0xf0]  ;;  %v7051_v8 = vld [vmem:[%s7659_s6 + $0xa4c] sm:$0xf]  ;;  %v4020_v44 = vadd.f32 %v4019_v0, %v4006_v20  ;;  %v4033_v33 = vpop.f32.mrf.mxu3  ;;  %v3994_v2 = vadd.f32 %v3993_v49, %v8794_v13  ;;  %v5723_v54 = vor.u32 %v6987_v59, %v5720_v24 }
 0x1fe   : > { %4291 = vmatpush.bf16.msra.mxu2 %v6043_v30  ;;  %v5976_v57 = vld [vmem:[%s7659_s6 + $0xa58] sm:$0xf0]  ;;  %v7083_v30 = vld [vmem:[%s7659_s6 + $0xb4c] sm:$0xf]  ;;  %v5851_v63 = vor.u32 %v7019_v48, %v5848_v62 }
 0x1ff   : > { %4305 = vmatpush.bf16.msra.mxu3 %v6171_v3  ;;  %v6104_v53 = vld [vmem:[%s7659_s6 + $0xb58] sm:$0xf0]  ;;  %v4007_v3 = vpop.f32.mrf.mxu1  ;;  %v8842_v5 = vadd.f32 %v4033_v33, %v4020_v44  ;;  %v5979_v27 = vor.u32 %v7051_v8, %v5976_v57  ;;  %v6983_v28 = vld [vmem:[%s7659_s6 + $0x82c] sm:$0xf] }
 0x200   : > { %4264 = vmatpush.bf16.msra.mxu0 %v5771_v39  ;;  %v5704_v6 = vld [vmem:[%s7659_s6 + $0x838] sm:$0xf0]  ;;  %v7015_v21 = vld [vmem:[%s7659_s6 + $0x92c] sm:$0xf]  ;;  %v6107_v11 = vor.u32 %v7083_v30, %v6104_v53  ;;  %v4008_v13 = vadd.f32 %v4007_v3, %v3994_v2 }
 0x201   : > { %4278 = vmatpush.bf16.msra.mxu1 %v5899_v29  ;;  %v5832_v58 = vld [vmem:[%s7659_s6 + $0x938] sm:$0xf0]  ;;  %v7047_v39 = vld [vmem:[%s7659_s6 + $0xa2c] sm:$0xf]  ;;  %v5707_v12 = vor.u32 %v6983_v28, %v5704_v6 }
 0x202   : > { %4292 = vmatpush.bf16.msra.mxu2 %v6027_v7  ;;  %v5960_v29 = vld [vmem:[%s7659_s6 + $0xa38] sm:$0xf0]  ;;  %v7079_v7 = vld [vmem:[%s7659_s6 + $0xb2c] sm:$0xf]  ;;  %v5835_v34 = vor.u32 %v7015_v21, %v5832_v58 }
 0x203   : > { %4306 = vmatpush.bf16.msra.mxu3 %v6155_v14  ;;  %v6088_v1 = vld [vmem:[%s7659_s6 + $0xb38] sm:$0xf0]  ;;  %v6979_v10 = vld [vmem:[%s7659_s6 + $0x80c] sm:$0xf]  ;;  %v5963_v15 = vor.u32 %v7047_v39, %v5960_v29 }
 0x204   : > { %4265 = vmatpush.bf16.msra.mxu0 %v5755_v22  ;;  %v5688_v14 = vld [vmem:[%s7659_s6 + $0x818] sm:$0xf0]  ;;  %v7011_v17 = vld [vmem:[%s7659_s6 + $0x90c] sm:$0xf]  ;;  %v6091_v47 = vor.u32 %v7079_v7, %v6088_v1  ;;  %v4021_v16 = vpop.f32.mrf.mxu2 }
 0x205   : > { %4279 = vmatpush.bf16.msra.mxu1 %v5883_v18  ;;  %v5816_v60 = vld [vmem:[%s7659_s6 + $0x918] sm:$0xf0]  ;;  %v7043_v19 = vld [vmem:[%s7659_s6 + $0xa0c] sm:$0xf]  ;;  %v4035_v56 = vpop.f32.mrf.mxu3  ;;  %v5691_v20 = vor.u32 %v6979_v10, %v5688_v14 }
 0x206   : > { %4293 = vmatpush.bf16.msra.mxu2 %v6011_v42  ;;  %v5944_v22 = vld [vmem:[%s7659_s6 + $0xa18] sm:$0xf0]  ;;  %v7075_v52 = vld [vmem:[%s7659_s6 + $0xb0c] sm:$0xf]  ;;  %v4022_v42 = vadd.f32 %v4021_v16, %v4008_v13  ;;  %v5819_v37 = vor.u32 %v7011_v17, %v5816_v60 }
 0x207   : > { %4307 = vmatpush.bf16.msra.mxu3 %v6139_v61  ;;  %v6072_v18 = vld [vmem:[%s7659_s6 + $0xb18] sm:$0xf0]  ;;  %v7135_v45 = vld [vmem:[%s7659_s6 + $0xcec] sm:$0xf] }
 0x208   : > { %4266 = vmatpush.bf16.msra.mxu0 %v5739_v50  ;;  %v6312_v4 = vld [vmem:[%s7659_s6 + $0xcf8] sm:$0xf0]  ;;  %v7167_v61 = vld [vmem:[%s7659_s6 + $0xdec] sm:$0xf]  ;;  %v8866_v26 = vadd.f32 %v4035_v56, %v4022_v42  ;;  %v5947_v50 = vor.u32 %v7043_v19, %v5944_v22  ;;  %v6075_v59 = vor.u32 %v7075_v52, %v6072_v18 }
 0x209   : > { %4280 = vmatpush.bf16.msra.mxu1 %v5867_v51  ;;  %v6440_v23 = vld [vmem:[%s7659_s6 + $0xdf8] sm:$0xf0]  ;;  %v7199_v25 = vld [vmem:[%s7659_s6 + $0xeec] sm:$0xf]  ;;  %v6315_v24 = vor.u32 %v7135_v45, %v6312_v4 }
 0x20a   : > { %4294 = vmatpush.bf16.msra.mxu2 %v5995_v55  ;;  %v6568_v43 = vld [vmem:[%s7659_s6 + $0xef8] sm:$0xf0]  ;;  %v7231_v51 = vld [vmem:[%s7659_s6 + $0xfec] sm:$0xf]  ;;  %v6443_v48 = vor.u32 %v7167_v61, %v6440_v23 }
 0x20b   : > { %4308 = vmatpush.bf16.msra.mxu3 %v6123_v9  ;;  %v6696_v55 = vld [vmem:[%s7659_s6 + $0xff8] sm:$0xf0]  ;;  %v6571_v9 = vor.u32 %v7199_v25, %v6568_v43  ;;  %v7131_v0 = vld [vmem:[%s7659_s6 + $0xccc] sm:$0xf] }
 0x20c   : > { %4267 = vmatpush.bf16.msra.mxu0 %v5723_v54  ;;  %v6296_v62 = vld [vmem:[%s7659_s6 + $0xcd8] sm:$0xf0]  ;;  %v7163_v8 = vld [vmem:[%s7659_s6 + $0xdcc] sm:$0xf]  ;;  %v6699_v57 = vor.u32 %v7231_v51, %v6696_v55 }
 0x20d   : > { %4281 = vmatpush.bf16.msra.mxu1 %v5851_v63  ;;  %v6424_v44 = vld [vmem:[%s7659_s6 + $0xdd8] sm:$0xf0]  ;;  %v7195_v49 = vld [vmem:[%s7659_s6 + $0xecc] sm:$0xf]  ;;  %v6299_v2 = vor.u32 %v7131_v0, %v6296_v62 }
 0x20e   : > { %4295 = vmatpush.bf16.msra.mxu2 %v5979_v27  ;;  %v6552_v33 = vld [vmem:[%s7659_s6 + $0xed8] sm:$0xf0]  ;;  %v7227_v30 = vld [vmem:[%s7659_s6 + $0xfcc] sm:$0xf]  ;;  %v6427_v54 = vor.u32 %v7163_v8, %v6424_v44 }
 0x20f   : > { %4309 = vmatpush.bf16.msra.mxu3 %v6107_v11  ;;  %v6680_v53 = vld [vmem:[%s7659_s6 + $0xfd8] sm:$0xf0]  ;;  %v6555_v3 = vor.u32 %v7195_v49, %v6552_v33  ;;  %v7127_v63 = vld [vmem:[%s7659_s6 + $0xcac] sm:$0xf] }
 0x210   : > { %4268 = vmatpush.bf16.msra.mxu0 %v5707_v12  ;;  %v6280_v27 = vld [vmem:[%s7659_s6 + $0xcb8] sm:$0xf0]  ;;  %v7159_v28 = vld [vmem:[%s7659_s6 + $0xdac] sm:$0xf]  ;;  %v6683_v6 = vor.u32 %v7227_v30, %v6680_v53 }
 0x211   : > { %4282 = vmatpush.bf16.msra.mxu1 %v5835_v34  ;;  %v6408_v21 = vld [vmem:[%s7659_s6 + $0xdb8] sm:$0xf0]  ;;  %v7191_v11 = vld [vmem:[%s7659_s6 + $0xeac] sm:$0xf] }
 0x212   : > { %4296 = vmatpush.bf16.msra.mxu2 %v5963_v15  ;;  %v6536_v13 = vld [vmem:[%s7659_s6 + $0xeb8] sm:$0xf0]  ;;  %v7223_v58 = vld [vmem:[%s7659_s6 + $0xfac] sm:$0xf]  ;;  %v6411_v29 = vor.u32 %v7159_v28, %v6408_v21 }
 0x213   : > { %4310 = vmatpush.bf16.msra.mxu3 %v6091_v47  ;;  %v6664_v39 = vld [vmem:[%s7659_s6 + $0xfb8] sm:$0xf0]  ;;  %v6539_v7 = vor.u32 %v7191_v11, %v6536_v13  ;;  %v7123_v1 = vld [vmem:[%s7659_s6 + $0xc8c] sm:$0xf] }
 0x214   : > { %4269 = vmatpush.bf16.msra.mxu0 %v5691_v20  ;;  %v6264_v12 = vld [vmem:[%s7659_s6 + $0xc98] sm:$0xf0]  ;;  %v7187_v14 = vld [vmem:[%s7659_s6 + $0xe8c] sm:$0xf] }
 0x215   : > { %4283 = vmatpush.bf16.msra.mxu1 %v5819_v37  ;;  %v6392_v10 = vld [vmem:[%s7659_s6 + $0xd98] sm:$0xf0]  ;;  %v7219_v15 = vld [vmem:[%s7659_s6 + $0xf8c] sm:$0xf]  ;;  %v6267_v19 = vor.u32 %v7123_v1, %v6264_v12  ;;  %v4061_v47 = vpop.f32.mrf.mxu1 }
 0x216   : > { %4297 = vmatpush.bf16.msra.mxu2 %v5947_v50  ;;  %v6520_v34 = vld [vmem:[%s7659_s6 + $0xe98] sm:$0xf0]  ;;  %v7119_v52 = vld [vmem:[%s7659_s6 + $0xc6c] sm:$0xf] }
 0x217   : > { %4311 = vmatpush.bf16.msra.mxu3 %v6075_v59  ;;  %4270 = vmatmul.bf16.vlgmr.msra.gmra.mxu0 %v7892_v31  ;;  %v6283_v31 = vor.u32 %v7127_v63, %v6280_v27  ;;  %v6648_v17 = vld [vmem:[%s7659_s6 + $0xf98] sm:$0xf0]  ;;  %v6523_v22 = vor.u32 %v7187_v14, %v6520_v34  ;;  %v7151_v42 = vld [vmem:[%s7659_s6 + $0xd6c] sm:$0xf] }
 0x218   : > { %4318 = vmatpush.bf16.msrb.mxu0 %v6315_v24  ;;  %4284 = vmatmul.bf16.vlgmr.msra.gmra.mxu1 %v7899_v36  ;;  %v6667_v36 = vor.u32 %v7223_v58, %v6664_v39  ;;  %v6248_v18 = vld [vmem:[%s7659_s6 + $0xc78] sm:$0xf0]  ;;  %v6651_v56 = vor.u32 %v7219_v15, %v6648_v17  ;;  %v7183_v61 = vld [vmem:[%s7659_s6 + $0xe6c] sm:$0xf] }
 0x219   : > { %4332 = vmatpush.bf16.msrb.mxu1 %v6443_v48  ;;  %4298 = vmatmul.bf16.vlgmr.msra.gmra.mxu2 %v7897_v35  ;;  %v7155_v35 = vld [vmem:[%s7659_s6 + $0xd8c] sm:$0xf]  ;;  %v6376_v4 = vld [vmem:[%s7659_s6 + $0xd78] sm:$0xf0]  ;;  %v6251_v25 = vor.u32 %v7119_v52, %v6248_v18 }
 0x21a   : > { %4346 = vmatpush.bf16.msrb.mxu2 %v6571_v9  ;;  %4312 = vmatmul.bf16.vlgmr.msra.gmra.mxu3 %v7903_v40  ;;  %v4047_v40 = vpop.f32.mrf.mxu0  ;;  %v6395_v16 = vor.u32 %v7155_v35, %v6392_v10  ;;  %v7215_v20 = vld [vmem:[%s7659_s6 + $0xf6c] sm:$0xf]  ;;  %v6632_v23 = vld [vmem:[%s7659_s6 + $0xf78] sm:$0xf0]  ;;  %v6379_v43 = vor.u32 %v7151_v42, %v6376_v4 }
 0x21b   : > { %4360 = vmatpush.bf16.msrb.mxu3 %v6699_v57  ;;  %v4048_v60 = vadd.f32 %v4047_v40, %v8842_v5  ;;  %v6504_v5 = vld [vmem:[%s7659_s6 + $0xe78] sm:$0xf0]  ;;  %v7115_v50 = vld [vmem:[%s7659_s6 + $0xc4c] sm:$0xf]  ;;  %v6635_v59 = vor.u32 %v7215_v20, %v6632_v23 }
 0x21c   : > { %4319 = vmatpush.bf16.msrb.mxu0 %v6299_v2  ;;  %v6507_v37 = vor.u32 %v7183_v61, %v6504_v5  ;;  %v6232_v51 = vld [vmem:[%s7659_s6 + $0xc58] sm:$0xf0]  ;;  %v7147_v55 = vld [vmem:[%s7659_s6 + $0xd4c] sm:$0xf]  ;;  %v4075_v24 = vpop.f32.mrf.mxu2 }
 0x21d   : > { %4333 = vmatpush.bf16.msrb.mxu1 %v6427_v54  ;;  %v4062_v45 = vadd.f32 %v4061_v47, %v4048_v60  ;;  %v6360_v48 = vld [vmem:[%s7659_s6 + $0xd58] sm:$0xf0]  ;;  %v7179_v9 = vld [vmem:[%s7659_s6 + $0xe4c] sm:$0xf]  ;;  %v4089_v57 = vpop.f32.mrf.mxu3  ;;  %v6235_v30 = vor.u32 %v7115_v50, %v6232_v51  ;;  %v4063_v53 = vpop.f32.mrf.mxu1 }
 0x21e   : > { %4347 = vmatpush.bf16.msrb.mxu2 %v6555_v3  ;;  %v6488_v0 = vld [vmem:[%s7659_s6 + $0xe58] sm:$0xf0]  ;;  %v7211_v44 = vld [vmem:[%s7659_s6 + $0xf4c] sm:$0xf]  ;;  %v6363_v54 = vor.u32 %v7147_v55, %v6360_v48 }
 0x21f   : > { %4361 = vmatpush.bf16.msrb.mxu3 %v6683_v6  ;;  %v4076_v62 = vadd.f32 %v4075_v24, %v4062_v45  ;;  %v6616_v49 = vld [vmem:[%s7659_s6 + $0xf58] sm:$0xf0]  ;;  %v6491_v3 = vor.u32 %v7179_v9, %v6488_v0  ;;  %v7111_v63 = vld [vmem:[%s7659_s6 + $0xc2c] sm:$0xf] }
 0x220   : > { %4320 = vmatpush.bf16.msrb.mxu0 %v6283_v31  ;;  %v6216_v27 = vld [vmem:[%s7659_s6 + $0xc38] sm:$0xf0]  ;;  %v7143_v28 = vld [vmem:[%s7659_s6 + $0xd2c] sm:$0xf]  ;;  %v6619_v6 = vor.u32 %v7211_v44, %v6616_v49 }
 0x221   : > { %4334 = vmatpush.bf16.msrb.mxu1 %v6411_v29  ;;  %v4090_v2 = vadd.f32 %v4089_v57, %v4076_v62  ;;  %v7175_v11 = vld [vmem:[%s7659_s6 + $0xe2c] sm:$0xf]  ;;  %v6472_v13 = vld [vmem:[%s7659_s6 + $0xe38] sm:$0xf0]  ;;  %v6219_v31 = vor.u32 %v7111_v63, %v6216_v27 }
 0x222   : > { %4348 = vmatpush.bf16.msrb.mxu2 %v6539_v7  ;;  %v4049_v8 = vpop.f32.mrf.mxu0  ;;  %v7207_v58 = vld [vmem:[%s7659_s6 + $0xf2c] sm:$0xf]  ;;  %v6600_v39 = vld [vmem:[%s7659_s6 + $0xf38] sm:$0xf0]  ;;  %v6475_v7 = vor.u32 %v7175_v11, %v6472_v13 }
 0x223   : > { %4362 = vmatpush.bf16.msrb.mxu3 %v6667_v36  ;;  %v4050_v33 = vadd.f32 %v4049_v8, %v8866_v26  ;;  %v6344_v26 = vld [vmem:[%s7659_s6 + $0xd38] sm:$0xf0]  ;;  %v7107_v1 = vld [vmem:[%s7659_s6 + $0xc0c] sm:$0xf]  ;;  %v6603_v36 = vor.u32 %v7207_v58, %v6600_v39 }
 0x224   : > { %4321 = vmatpush.bf16.msrb.mxu0 %v6267_v19  ;;  %v6347_v29 = vor.u32 %v7143_v28, %v6344_v26  ;;  %v6200_v12 = vld [vmem:[%s7659_s6 + $0xc18] sm:$0xf0]  ;;  %v7139_v35 = vld [vmem:[%s7659_s6 + $0xd0c] sm:$0xf]  ;;  %v4077_v10 = vpop.f32.mrf.mxu2 }
 0x225   : > { %4335 = vmatpush.bf16.msrb.mxu1 %v6395_v16  ;;  %v4064_v21 = vadd.f32 %v4063_v53, %v4050_v33  ;;  %v6328_v14 = vld [vmem:[%s7659_s6 + $0xd18] sm:$0xf0]  ;;  %v7171_v34 = vld [vmem:[%s7659_s6 + $0xe0c] sm:$0xf]  ;;  %v4091_v17 = vpop.f32.mrf.mxu3  ;;  %v6203_v47 = vor.u32 %v7107_v1, %v6200_v12 }
 0x226   : > { %4349 = vmatpush.bf16.msrb.mxu2 %v6523_v22  ;;  %v6456_v40 = vld [vmem:[%s7659_s6 + $0xe18] sm:$0xf0]  ;;  %v7203_v60 = vld [vmem:[%s7659_s6 + $0xf0c] sm:$0xf]  ;;  %v6331_v22 = vor.u32 %v7139_v35, %v6328_v14 }
 0x227   : > { %4363 = vmatpush.bf16.msrb.mxu3 %v6651_v56  ;;  %v4078_v15 = vadd.f32 %v4077_v10, %v4064_v21  ;;  %v6584_v19 = vld [vmem:[%s7659_s6 + $0xf18] sm:$0xf0]  ;;  %v6459_v52 = vor.u32 %v7171_v34, %v6456_v40 }
 0x228   : > { %4322 = vmatpush.bf16.msrb.mxu0 %v6251_v25  ;;  %v6587_v18 = vor.u32 %v7203_v60, %v6584_v19 }
 0x229   : > { %4336 = vmatpush.bf16.msrb.mxu1 %v6379_v43  ;;  %v4092_v16 = vadd.f32 %v4091_v17, %v4078_v15 }
 0x22a   : > { %4350 = vmatpush.bf16.msrb.mxu2 %v6507_v37 }
 0x22b   : > { %4364 = vmatpush.bf16.msrb.mxu3 %v6635_v59 }
 0x22c   : > { %4323 = vmatpush.bf16.msrb.mxu0 %v6235_v30 }
 0x22d   : > { %4337 = vmatpush.bf16.msrb.mxu1 %v6363_v54 }
 0x22e   : > { %4351 = vmatpush.bf16.msrb.mxu2 %v6491_v3 }
 0x22f   : > { %4365 = vmatpush.bf16.msrb.mxu3 %v6619_v6 }
 0x230   : > { %4324 = vmatpush.bf16.msrb.mxu0 %v6219_v31 }
 0x231   : > { %4338 = vmatpush.bf16.msrb.mxu1 %v6347_v29 }
 0x232   : > { %4352 = vmatpush.bf16.msrb.mxu2 %v6475_v7 }
 0x233   : > { %4366 = vmatpush.bf16.msrb.mxu3 %v6603_v36 }
 0x234   : > { %4325 = vmatpush.bf16.msrb.mxu0 %v6203_v47  ;;  %v4103_v42 = vpop.f32.mrf.mxu0 }
 0x235   : > { %4339 = vmatpush.bf16.msrb.mxu1 %v6331_v22  ;;  %v4104_v56 = vadd.f32 %v4103_v42, %v4090_v2  ;;  %v4117_v45 = vpop.f32.mrf.mxu1 }
 0x236   : > { %4353 = vmatpush.bf16.msrb.mxu2 %v6459_v52 }
 0x237   : > { %4367 = vmatpush.bf16.msrb.mxu3 %v6587_v18  ;;  %4326 = vmatmul.bf16.vlgmr.msrb.gmra.mxu0 %v7968_v32  ;;  %v4118_v4 = vadd.f32 %v4117_v45, %v4104_v56  ;;  %v7320_v45 = vld [vmem:[%s8666_s8] sm:$0xf] }
 0x238   : > { %4340 = vmatmul.bf16.vlgmr.msrb.gmra.mxu1 %v7975_v41 }
 0x239   : > { %4354 = vmatmul.bf16.vlgmr.msrb.gmra.mxu2 %v7973_v38 }
 0x23a   : > { %4368 = vmatmul.bf16.vlgmr.msrb.gmra.mxu3 %v7979_v46 }
 0x23c   : > { %v4131_v61 = vpop.f32.mrf.mxu2  ;;  %v4105_v20 = vpop.f32.mrf.mxu0 }
 0x23d   : > { %v4132_v5 = vadd.f32 %v4131_v61, %v4118_v4  ;;  %v4145_v23 = vpop.f32.mrf.mxu3  ;;  %v4106_v25 = vadd.f32 %v4105_v20, %v4092_v16  ;;  %v4119_v43 = vpop.f32.mrf.mxu1  ;;  %v4405_v4 = vperm.slane %v7320_v45, 2 }
 0x23f   : > { %v8936_v37 = vadd.f32 %v4145_v23, %v4132_v5  ;;  %v4120_v50 = vadd.f32 %v4119_v43, %v4106_v25  ;;  %v4406_v23 = vperm.slane %v7320_v45, 3 }
 0x244   : > { %v4133_v32 = vpop.f32.mrf.mxu2 }
 0x245   : > { %v4134_v51 = vadd.f32 %v4133_v32, %v4120_v50  ;;  %v4147_v41 = vpop.f32.mrf.mxu3  ;;  %v4413_v32 = vadd.f32 %v4405_v4, %v8936_v37 }
 0x247   : > { %v8938_v55 = vadd.f32 %v4147_v41, %v4134_v51 }
 0x249   : > { %v4417_v37 = vadd.f32 %v4405_v4, %v8938_v55 }
 0x254   : > { %v4159_v38 = vpop.f32.mrf.mxu0 }
 0x255   : > { %v4173_v46 = vpop.f32.mrf.mxu1 }
 0x256   : > { %v4174_v8 = vadd.f32 %v4173_v46, %v4159_v38 }
 0x25c   : > { %v4187_v59 = vpop.f32.mrf.mxu2  ;;  %v4161_v48 = vpop.f32.mrf.mxu0 }
 0x25d   : > { %v4201_v24 = vpop.f32.mrf.mxu3  ;;  %v4175_v9 = vpop.f32.mrf.mxu1  ;;  %v4188_v49 = vadd.f32 %v4187_v59, %v4174_v8 }
 0x25e   : > { %v4176_v54 = vadd.f32 %v4175_v9, %v4161_v48 }
 0x25f   : > { %v4202_v30 = vadd.f32 %v4201_v24, %v4188_v49 }
 0x264   : > { %v4189_v0 = vpop.f32.mrf.mxu2 }
 0x265   : > { %v4203_v62 = vpop.f32.mrf.mxu3  ;;  %v4190_v27 = vadd.f32 %v4189_v0, %v4176_v54 }
 0x267   : > { %v4204_v11 = vadd.f32 %v4203_v62, %v4190_v27 }
 0x274   : > { %v4215_v57 = vpop.f32.mrf.mxu0 }
 0x275   : > { %v4229_v44 = vpop.f32.mrf.mxu1  ;;  %v4216_v3 = vadd.f32 %v4215_v57, %v4202_v30 }
 0x277   : > { %v4230_v28 = vadd.f32 %v4229_v44, %v4216_v3 }
 0x27c   : > { %v4243_v33 = vpop.f32.mrf.mxu2  ;;  %v4217_v2 = vpop.f32.mrf.mxu0 }
 0x27d   : > { %v4257_v53 = vpop.f32.mrf.mxu3  ;;  %v4231_v63 = vpop.f32.mrf.mxu1  ;;  %v4244_v13 = vadd.f32 %v4243_v33, %v4230_v28  ;;  %v4218_v39 = vadd.f32 %v4217_v2, %v4204_v11 }
 0x27f   : > { %v4258_v31 = vadd.f32 %v4257_v53, %v4244_v13  ;;  %v4232_v7 = vadd.f32 %v4231_v63, %v4218_v39 }
 0x284   : > { %v4245_v6 = vpop.f32.mrf.mxu2 }
 0x285   : > { %v4259_v21 = vpop.f32.mrf.mxu3  ;;  %v4246_v35 = vadd.f32 %v4245_v6, %v4232_v7 }
 0x287   : > { %v4260_v34 = vadd.f32 %v4259_v21, %v4246_v35 }
 0x294   : > { %v4271_v26 = vpop.f32.mrf.mxu0 }
 0x295   : > { %v4285_v58 = vpop.f32.mrf.mxu1  ;;  %v4272_v1 = vadd.f32 %v4271_v26, %v4258_v31 }
 0x297   : > { %v4286_v10 = vadd.f32 %v4285_v58, %v4272_v1 }
 0x29c   : > { %v4299_v29 = vpop.f32.mrf.mxu2  ;;  %v4273_v36 = vpop.f32.mrf.mxu0 }
 0x29d   : > { %v4313_v12 = vpop.f32.mrf.mxu3  ;;  %v4287_v14 = vpop.f32.mrf.mxu1  ;;  %v4300_v40 = vadd.f32 %v4299_v29, %v4286_v10  ;;  %v4274_v15 = vadd.f32 %v4273_v36, %v4260_v34 }
 0x29f   : > { %v4314_v60 = vadd.f32 %v4313_v12, %v4300_v40  ;;  %v4288_v16 = vadd.f32 %v4287_v14, %v4274_v15 }
 0x2a4   : > { %v4301_v17 = vpop.f32.mrf.mxu2 }
 0x2a5   : > { %v4315_v19 = vpop.f32.mrf.mxu3  ;;  %v4302_v18 = vadd.f32 %v4301_v17, %v4288_v16 }
 0x2a7   : > { %v4316_v61 = vadd.f32 %v4315_v19, %v4302_v18 }
 0x2b4   : > { %v4327_v47 = vpop.f32.mrf.mxu0 }
 0x2b5   : > { %v4328_v22 = vadd.f32 %v4327_v47, %v4314_v60  ;;  %v4341_v52 = vpop.f32.mrf.mxu1 }
 0x2b7   : > { %v4342_v42 = vadd.f32 %v4341_v52, %v4328_v22 }
 0x2bc   : > { %v4355_v56 = vpop.f32.mrf.mxu2  ;;  %v4329_v25 = vpop.f32.mrf.mxu0 }
 0x2bd   : > { %v4356_v5 = vadd.f32 %v4355_v56, %v4342_v42  ;;  %v4369_v20 = vpop.f32.mrf.mxu3  ;;  %v4330_v50 = vadd.f32 %v4329_v25, %v4316_v61  ;;  %v4343_v41 = vpop.f32.mrf.mxu1 }
 0x2bf   : > { %v4370_v43 = vadd.f32 %v4369_v20, %v4356_v5  ;;  %v4344_v46 = vadd.f32 %v4343_v41, %v4330_v50 }
 0x2c1   : > { %v4414_v51 = vadd.f32 %v4406_v23, %v4370_v43 }
 0x2c3   : > { %v4420_v38 = vpack.c.bf16 %v4414_v51, %v4413_v32 }
 0x2c4   : > { %v4357_v59 = vpop.f32.mrf.mxu2 }
 0x2c5   : > { %4424 = vst [vmem:[%s8708_s20 + $0x8] sm:$0xff] %v4420_v38  ;;  %v4358_v24 = vadd.f32 %v4357_v59, %v4344_v46  ;;  %v4371_v48 = vpop.f32.mrf.mxu3 }
 0x2c7   : > { %v4372_v9 = vadd.f32 %v4371_v48, %v4358_v24 }
 0x2c9   : > { %v4418_v0 = vadd.f32 %v4406_v23, %v4372_v9 }
 0x2cb   : > { %v4422_v62 = vpack.c.bf16 %v4418_v0, %v4417_v37 }
 0x2cd   : > { %4426 = vst [vmem:[%s8708_s20 + $0x18] sm:$0xff] %v4422_v62 }
 0x2ce   : > { %7438 = shalt.err (!%p7435_p11)
}
 0x2cf   : > { %s7504_s29 = smov 256   ;;  %s7505_s6 = smov 1024  }
 0x2d0   : > { %s7506_s7 = smov 16  }
 0x2d1   : > { %7243 = dma.vmem_to_hbm [thread:$0]  (%p7617_p13), %s4444_s5, 512, %s4446_s9, %s4428_s15, %s7504_s29, %s7505_s6, %s7506_s7  }
 0x2d2 PF: > { %p7263_p12 = scmp.ge.s32.totalorder %s7497_s17, 2  ;;  %s4460_s8 = sand.u32 1, %s7477_s12  }
 0x2d3   : > { %s4461_s11 = scalar_lea.sflag [#allocation5], %s4460_s8 }
 0x2d4   : > { %p7257_p2 = pnand %p7263_p12, %p7621_p0 }
 0x2d6   : > { %p7258_p3 = pneg %p7257_p2 }
 0x2d8   : > { %7472 = dma.done.wait (%p7258_p3), %s4461_s11, 512  }
 0x2d9   : > { %7474 = vsyncadd (%p7258_p3), %s4461_s11, 4294966784  ;;  %s20_s17 = sadd.s32 1, %s7497_s17   ;;  %s9008_s12 = smov %s7481_s13 }
 0x2da   : > { %p17_p1 = scmp.ge.s32.totalorder %s20_s17, 6   ;;  %s9009_s13 = smov %s7485_s14 }
 0x2db   : > { %s9010_s14 = smov %s7577_s24  ;;  %s9011_s15 = smov %s7493_s16 }
 0x2dc   : > { %s9012_s16 = smov %s9014_s18  ;;  %19 = sbr.rel (!%p17_p1) target bundleno = 10 (0xa), region = 102 }
 0x2e1   :  { %4467 = vsyncpa [#allocation4], 1 }
 0x2e2   :  { %4469 = vsyncpa [#allocation4 + $0x1], 1 }
 0x2e3   :  { %4470 = vsyncpa [#allocation7], 1 }
 0x2e4   :  { %4472 = vsyncpa [#allocation7 + $0x1], 1 }
 0x2e5   :  { %4473 = vsyncpa [#allocation5], 1 }
 0x2e6   :  { %4475 = vsyncpa [#allocation5 + $0x1], 1 }

</bundles_post_ra>
